<compile_context>
chip_gen: v7x
topology: tpu7x:2x2x1
jax: 0.10.0
libtpu: 0.0.40
codegen_flags: <defaults>
</compile_context>

<pallas_src>
import functools

import jax
import jax.numpy as jnp
from jax import lax
from jax.experimental import pallas as pl
from jax.experimental.pallas import tpu as pltpu


_VMEM_LIMIT_BYTES = 48 * 1024 * 1024     # safe on v5e/v6e (128 MiB phys) and v7x (64 MiB)
_VMEM_BLOCK_BUDGET = 20 * 1024 * 1024    # target footprint of blocks + scratch per step


def _pick_time_chunk(T, B, H, P, Dp, budget):
    """Largest divisor Tc of T whose per-grid-step VMEM footprint fits `budget`."""
    G = 3 * H

    def est(Tc):
        x_blk = 2 * P * Tc * B * Dp * 2 * 2        # fwd+bwd bf16 input streams, double-buffered
        out_blk = 2 * Tc * B * H * 2 * 2           # two bf16 output streams, double-buffered
        gi = 2 * Tc * B * G * 4                    # f32 gi scratch (both directions)
        w = (2 * P * Dp * G * 2 + 2 * H * G * 4 + 4 * G * 4) * 2
        return x_blk + out_blk + gi + w + 2 * B * H * 4

    for Tc in range(T, 0, -1):
        if T % Tc == 0 and est(Tc) <= budget:
            return Tc
    return 1


# ----------------------------------------------------------------------------
# Fused bidirectional GRU layer kernel (PyTorch gate order r, z, n).
#   grid = (time-chunk,).  fwd walks chunks 0..nc-1, bwd walks nc-1..0; both
#   directions are processed in the same fori_loop body (ILP interleave).
#   Input projection for the chunk is done up front on the MXU (bf16 inputs).
#   Non-last layers emit two bf16 sequence outputs (fwd, bwd); the last layer
#   accumulates sum/max pooling into constant-index f32 output blocks instead.
# ----------------------------------------------------------------------------
def _make_gru_layer_kernel(P, H, Tc, last):
    G = 3 * H

    def kernel(*refs):
        xf = refs[:P]                                   # fwd chunk parts (Tc, B, Dp)
        xb = refs[P:2 * P]                              # bwd chunk parts (Tc, B, Dp)
        w_in_ref, b_in_ref, w_hh_ref, b_hh_ref = refs[2 * P:2 * P + 4]
        o0_ref, o1_ref = refs[2 * P + 4:2 * P + 6]      # non-last: (out_f, out_b)
        gi_f_scr, gi_b_scr, h_scr = refs[2 * P + 6:]    # last: (sum, max)

        c = pl.program_id(0)
        B = xf[0].shape[1]

        @pl.when(c == 0)
        def _init():
            h_scr[...] = jnp.zeros(h_scr.shape, h_scr.dtype)
            if last:
                o0_ref[...] = jnp.zeros(o0_ref.shape, o0_ref.dtype)           # sum
                o1_ref[...] = jnp.full(o1_ref.shape, -jnp.inf, o1_ref.dtype)  # max

        # ---- fused input projection for this chunk (MXU, bf16 in / f32 acc) ----
        for d in range(2):
            xs = xf if d == 0 else xb
            acc = None
            for p in range(P):
                Dp = xs[p].shape[2]
                xp = xs[p][...].astype(jnp.bfloat16).reshape(Tc * B, Dp)
                w = w_in_ref[d, p].astype(jnp.bfloat16)                # (Dp, 3H)
                t = jnp.dot(xp, w, preferred_element_type=jnp.float32)
                acc = t if acc is None else acc + t
            gi = (acc + b_in_ref[d]).reshape(Tc, B, G)
            if d == 0:
                gi_f_scr[...] = gi
            else:
                gi_b_scr[...] = gi

        whh_f = w_hh_ref[0]
        whh_b = w_hh_ref[1]
        bhh_f = b_hh_ref[0]
        bhh_b = b_hh_ref[1]

        def gru_cell(gi_t, gh, h):
            r = jax.nn.sigmoid(gi_t[:, :H] + gh[:, :H])
            z = jax.nn.sigmoid(gi_t[:, H:2 * H] + gh[:, H:2 * H])
            n = jnp.tanh(gi_t[:, 2 * H:] + r * gh[:, 2 * H:])
            return (1.0 - z) * n + z * h

        def step(t, carry):
            h_f, h_b = carry
            tb = Tc - 1 - t
            gi_f = gi_f_scr[t]                              # (B, 3H)
            gi_b = gi_b_scr[tb]
            # two independent recurrent matmuls -> ILP across directions
            gh_f = jnp.dot(h_f, whh_f, preferred_element_type=jnp.float32) + bhh_f
            gh_b = jnp.dot(h_b, whh_b, preferred_element_type=jnp.float32) + bhh_b
            h_f = gru_cell(gi_f, gh_f, h_f)
            h_b = gru_cell(gi_b, gh_b, h_b)
            if last:
                o0_ref[0] = o0_ref[0] + h_f                 # running sum
                o0_ref[1] = o0_ref[1] + h_b
                o1_ref[0] = jnp.maximum(o1_ref[0], h_f)     # running max
                o1_ref[1] = jnp.maximum(o1_ref[1], h_b)
            else:
                o0_ref[t] = h_f.astype(o0_ref.dtype)
                o1_ref[tb] = h_b.astype(o1_ref.dtype)
            return (h_f, h_b)

        h_f, h_b = lax.fori_loop(0, Tc, step, (h_scr[0], h_scr[1]),
                                 unroll=min(Tc, 8))
        h_scr[0] = h_f
        h_scr[1] = h_b

    return kernel


def gru_layer_pallas(x_parts, lp, *, last):
    """x_parts: list of P arrays (T, B, Dp).  Returns (out_f, out_b) bf16 sequences
    for non-last layers, or (sum, max) f32 pooled accumulators for the last one."""
    P = len(x_parts)
    T, B, Dp = x_parts[0].shape
    G = lp["w_hh"].shape[-1]
    H = G // 3
    Tc = _pick_time_chunk(T, B, H, P, Dp, _VMEM_BLOCK_BUDGET)
    nc = T // Tc

    x_specs_f = [pl.BlockSpec((Tc, B, Dp), lambda c: (c, 0, 0)) for _ in range(P)]
    x_specs_b = [pl.BlockSpec((Tc, B, Dp), lambda c: (nc - 1 - c, 0, 0)) for _ in range(P)]
    w_specs = [
        pl.BlockSpec((2, P, Dp, G), lambda c: (0, 0, 0, 0)),
        pl.BlockSpec((2, 1, G), lambda c: (0, 0, 0)),
        pl.BlockSpec((2, H, G), lambda c: (0, 0, 0)),
        pl.BlockSpec((2, 1, G), lambda c: (0, 0, 0)),
    ]
    if last:
        out_shape = (jax.ShapeDtypeStruct((2, B, H), jnp.float32),
                     jax.ShapeDtypeStruct((2, B, H), jnp.float32))
        out_specs = [pl.BlockSpec((2, B, H), lambda c: (0, 0, 0)),
                     pl.BlockSpec((2, B, H), lambda c: (0, 0, 0))]
    else:
        out_shape = (jax.ShapeDtypeStruct((T, B, H), jnp.bfloat16),
                     jax.ShapeDtypeStruct((T, B, H), jnp.bfloat16))
        out_specs = [pl.BlockSpec((Tc, B, H), lambda c: (c, 0, 0)),
                     pl.BlockSpec((Tc, B, H), lambda c: (nc - 1 - c, 0, 0))]

    kernel = _make_gru_layer_kernel(P=P, H=H, Tc=Tc, last=last)
    return pl.pallas_call(
        kernel,
        out_shape=out_shape,
        grid_spec=pltpu.PrefetchScalarGridSpec(
            num_scalar_prefetch=0,
            grid=(nc,),
            in_specs=x_specs_f + x_specs_b + w_specs,
            out_specs=out_specs,
            scratch_shapes=[pltpu.VMEM((Tc, B, G), jnp.float32),
                            pltpu.VMEM((Tc, B, G), jnp.float32),
                            pltpu.VMEM((2, B, H), jnp.float32)]),
        compiler_params=pltpu.CompilerParams(
            dimension_semantics=("arbitrary",),        # recurrence carried in h_scr
            vmem_limit_bytes=_VMEM_LIMIT_BYTES),
    )(*x_parts, *x_parts, lp["w_in"], lp["b_in"], lp["w_hh"], lp["b_hh"])


# ----------------------------------------------------------------------------
# Finalize head: mean/max features -> linear1 -> LayerNorm -> ReLU -> linear2
# ----------------------------------------------------------------------------
def _head_kernel(sum_ref, max_ref, w1_ref, b1_ref, g_ref, be_ref, w2_ref, b2_ref,
                 o_ref, *, inv_T):
    mean = (sum_ref[...] * inv_T).astype(jnp.bfloat16)   # (2, B, H)
    mx = max_ref[...].astype(jnp.bfloat16)
    # linear1 on concat([mean_f, mean_b, max_f, max_b]) via split matmuls
    h = (jnp.dot(mean[0], w1_ref[0], preferred_element_type=jnp.float32)
         + jnp.dot(mean[1], w1_ref[1], preferred_element_type=jnp.float32)
         + jnp.dot(mx[0], w1_ref[2], preferred_element_type=jnp.float32)
         + jnp.dot(mx[1], w1_ref[3], preferred_element_type=jnp.float32)
         + b1_ref[...])                                  # (B, 1024)
    mu = jnp.mean(h, axis=-1, keepdims=True)
    var = jnp.mean((h - mu) ** 2, axis=-1, keepdims=True)
    hn = (h - mu) * lax.rsqrt(var + 1e-5) * g_ref[...] + be_ref[...]
    hr = jnp.maximum(hn, 0.0)
    o_ref[...] = (jnp.dot(hr.astype(jnp.bfloat16), w2_ref[...],
                          preferred_element_type=jnp.float32) + b2_ref[...])


def head_pallas(sum_p, max_p, w1p, b1, gamma, beta, w2t, b2p, *, T):
    _, B, H = sum_p.shape
    D1 = w1p.shape[-1]
    Cp = w2t.shape[-1]
    return pl.pallas_call(
        functools.partial(_head_kernel, inv_T=1.0 / T),
        out_shape=jax.ShapeDtypeStruct((B, Cp), jnp.float32),
        grid_spec=pltpu.PrefetchScalarGridSpec(
            num_scalar_prefetch=0,
            grid=(1,),
            in_specs=[
                pl.BlockSpec((2, B, H), lambda i: (0, 0, 0)),
                pl.BlockSpec((2, B, H), lambda i: (0, 0, 0)),
                pl.BlockSpec((4, H, D1), lambda i: (0, 0, 0)),
                pl.BlockSpec((1, D1), lambda i: (0, 0)),
                pl.BlockSpec((1, D1), lambda i: (0, 0)),
                pl.BlockSpec((1, D1), lambda i: (0, 0)),
                pl.BlockSpec((D1, Cp), lambda i: (0, 0)),
                pl.BlockSpec((1, Cp), lambda i: (0, 0)),
            ],
            out_specs=pl.BlockSpec((B, Cp), lambda i: (0, 0)),
        ),
        compiler_params=pltpu.CompilerParams(dimension_semantics=("arbitrary",)),
    )(sum_p, max_p, w1p, b1, gamma, beta, w2t, b2p)


# ----------------------------------------------------------------------------
# Full forward (glue in plain JAX: embedding gather, transpose, batch pad)
# ----------------------------------------------------------------------------
def textrnn_meanmaxpool_forward(text_bt, kp):
    emb = kp["embed"][text_bt]                           # (B, T, E) gather (glue)
    B, T, E = emb.shape
    Bp = ((B + 15) // 16) * 16                           # sublane-aligned batch
    x = jnp.transpose(emb, (1, 0, 2))                    # (T, B, E)
    if Bp != B:
        x = jnp.pad(x, ((0, 0), (0, Bp - B), (0, 0)))
    x_parts = [x.astype(jnp.bfloat16)]                   # P=1 for layer 0

    n_layers = len(kp["gru"])
    pooled_sum = pooled_max = None
    for li, lp in enumerate(kp["gru"]):
        last = li == n_layers - 1
        res = gru_layer_pallas(x_parts, lp, last=last)
        if last:
            pooled_sum, pooled_max = res                 # (2, Bp, H) f32 each
        else:
            x_parts = list(res)                          # [out_f, out_b] bf16 (T, Bp, H)

    logits_p = head_pallas(pooled_sum, pooled_max, kp["w1p"], kp["b1"],
                           kp["gamma"], kp["beta"], kp["w2t"], kp["b2p"], T=T)
    return logits_p[:B, :kp["num_class"]]


# ----------------------------------------------------------------------------
# Host-side parameter preparation: pre-transpose / pre-split / pad / bf16-cast
# ----------------------------------------------------------------------------
def prepare_params(params):
    H = params["gru"][0]["fwd"][1].shape[1]              # W_hh: (3H, H)
    kp = {"embed": params["embed"]}

    layers = []
    for li, lp in enumerate(params["gru"]):
        wih_f, whh_f, bih_f, bhh_f = lp["fwd"]
        wih_b, whh_b, bih_b, bhh_b = lp["bwd"]
        if li == 0:
            w_in = jnp.stack([wih_f.T[None], wih_b.T[None]])         # (2, 1, E, 3H)
        else:
            # input features are [fwd | bwd]; split W_ih columns per part
            w_in = jnp.stack([
                jnp.stack([wih_f[:, :H].T, wih_f[:, H:].T]),         # (2, H, 3H)
                jnp.stack([wih_b[:, :H].T, wih_b[:, H:].T]),
            ])                                                       # (2, 2, H, 3H)
        layers.append(dict(
            w_in=w_in.astype(jnp.bfloat16),                          # MXU-only weight
            b_in=jnp.stack([bih_f, bih_b]),                          # (2, 1, 3H) f32
            w_hh=jnp.stack([whh_f.T, whh_b.T]),                      # (2, H, 3H) f32
            b_hh=jnp.stack([bhh_f, bhh_b]),                          # (2, 1, 3H) f32
        ))
    kp["gru"] = layers

    W1 = params["w1"]                                                # (1024, 4H)
    kp["w1p"] = jnp.stack([W1[:, :H].T, W1[:, H:2 * H].T,
                           W1[:, 2 * H:3 * H].T, W1[:, 3 * H:].T]
                          ).astype(jnp.bfloat16)                     # (4, H, 1024)
    kp["b1"] = params["b1"]
    kp["gamma"] = params["gamma"]
    kp["beta"] = params["beta"]

    C = params["w2"].shape[0]
    Cp = ((C + 127) // 128) * 128                                    # lane-dense logits
    kp["w2t"] = jnp.pad(params["w2"].T, ((0, 0), (0, Cp - C))).astype(jnp.bfloat16)
    kp["b2p"] = jnp.pad(params["b2"], ((0, 0), (0, Cp - C)))
    kp["num_class"] = C
    return kp


# ----------------------------------------------------------------------------
# Pure-JAX f32 reference (same math) for a correctness sanity check
# ----------------------------------------------------------------------------
def _gru_layer_ref(x_tbd, w_ih, w_hh, b_ih, b_hh, reverse):
    H = w_hh.shape[1]
    hi = lax.Precision.HIGHEST

    def step(h, xt):
        gi = jnp.dot(xt, w_ih.T, precision=hi) + b_ih
        gh = jnp.dot(h, w_hh.T, precision=hi) + b_hh
        r = jax.nn.sigmoid(gi[:, :H] + gh[:, :H])
        z = jax.nn.sigmoid(gi[:, H:2 * H] + gh[:, H:2 * H])
        n = jnp.tanh(gi[:, 2 * H:] + r * gh[:, 2 * H:])
        h_new = (1.0 - z) * n + z * h
        return h_new, h_new

    xs = x_tbd[::-1] if reverse else x_tbd
    h0 = jnp.zeros((x_tbd.shape[1], H), jnp.float32)
    _, ys = lax.scan(step, h0, xs)
    return ys[::-1] if reverse else ys


def textrnn_ref(text_bt, params):
    hi = lax.Precision.HIGHEST
    emb = params["embed"][text_bt]
    x = jnp.transpose(emb, (1, 0, 2)).astype(jnp.float32)
    for layer_params in params["gru"]:
        fwd = _gru_layer_ref(x, *layer_params["fwd"], reverse=False)
        bwd = _gru_layer_ref(x, *layer_params["bwd"], reverse=True)
        x = jnp.concatenate([fwd, bwd], axis=-1)
    feat_mean = jnp.mean(x, axis=0)
    feat_max = jnp.max(x, axis=0)
    feat = jnp.concatenate([feat_mean, feat_max], axis=1)
    h = jnp.dot(feat, params["w1"].T, precision=hi) + params["b1"]
    mu = jnp.mean(h, axis=-1, keepdims=True)
    var = jnp.mean((h - mu) ** 2, axis=-1, keepdims=True)
    hn = (h - mu) * lax.rsqrt(var + 1e-5) * params["gamma"] + params["beta"]
    hr = jnp.maximum(hn, 0.0)
    return jnp.dot(hr, params["w2"].T, precision=hi) + params["b2"]


# ----------------------------------------------------------------------------
# Deterministic parameter init (synthetic, PyTorch-like uniform ranges)
# ----------------------------------------------------------------------------
def init_params(key, *, num_class, vocab_size, embedding_size, hidden_size, num_layers):
    H = hidden_size
    k_gru = 1.0 / jnp.sqrt(H)

    def uniform(key, shape, k):
        return jax.random.uniform(key, shape, jnp.float32, -k, k)

    keys = iter(jax.random.split(key, 64))
    params = {"embed": jax.random.normal(next(keys), (vocab_size, embedding_size), jnp.float32)}

    gru = []
    for layer in range(num_layers):
        d_in = embedding_size if layer == 0 else 2 * H
        layer_p = {}
        for direction in ("fwd", "bwd"):
            layer_p[direction] = (
                uniform(next(keys), (3 * H, d_in), k_gru),   # W_ih
                uniform(next(keys), (3 * H, H), k_gru),      # W_hh
                uniform(next(keys), (1, 3 * H), k_gru),      # b_ih
                uniform(next(keys), (1, 3 * H), k_gru),      # b_hh
            )
        gru.append(layer_p)
    params["gru"] = gru

    feat_dim = 2 * H * 2      # (mean ++ max) of bidirectional output
    k1 = 1.0 / jnp.sqrt(feat_dim)
    params["w1"] = uniform(next(keys), (1024, feat_dim), k1)
    params["b1"] = uniform(next(keys), (1, 1024), k1)
    params["gamma"] = jnp.ones((1, 1024), jnp.float32)
    params["beta"] = jnp.zeros((1, 1024), jnp.float32)
    k2 = 1.0 / jnp.sqrt(1024.0)
    params["w2"] = uniform(next(keys), (num_class, 1024), k2)
    params["b2"] = uniform(next(keys), (1, num_class), k2)
    return params


if __name__ == "__main__":
    NUM_CLASS = 14
    VOCAB = 100
    EMBED = 32
    HIDDEN = 32
    LAYERS = 2
    B, T = 2, 8

    key = jax.random.PRNGKey(0)
    k_tok, k_par = jax.random.split(key)
    text = jax.random.randint(k_tok, (B, T), 0, VOCAB, dtype=jnp.int32)
    params = init_params(k_par, num_class=NUM_CLASS, vocab_size=VOCAB,
                         embedding_size=EMBED, hidden_size=HIDDEN, num_layers=LAYERS)
    kparams = prepare_params(params)

    logits = jax.block_until_ready(textrnn_meanmaxpool_forward(text, kparams))
    assert logits.shape == (B, NUM_CLASS) and logits.dtype == jnp.float32

    ref = jax.block_until_ready(textrnn_ref(text, params))
    # bf16 is used for inter-layer activations and MXU matmul inputs (per perf
    # review), so the tolerance is relaxed relative to the pure-f32 reference.
    assert jnp.allclose(logits, ref, rtol=5e-2, atol=5e-2), (logits, ref)

    print("KERNEL_OK")
</pallas_src>

<mosaic_0001>
module attributes {stable_mosaic.version = 11 : i64} {
  func.func @kernel(%arg0: i32, %arg1: memref<8x16x32xbf16, #tpu.memory_space<vmem>>, %arg2: memref<8x16x32xbf16, #tpu.memory_space<vmem>>, %arg3: memref<2x1x32x96xbf16, #tpu.memory_space<vmem>>, %arg4: memref<2x1x96xf32, #tpu.memory_space<vmem>>, %arg5: memref<2x32x96xf32, #tpu.memory_space<vmem>>, %arg6: memref<2x1x96xf32, #tpu.memory_space<vmem>>, %arg7: memref<8x16x32xbf16, #tpu.memory_space<vmem>>, %arg8: memref<8x16x32xbf16, #tpu.memory_space<vmem>>, %arg9: memref<8x16x96xf32, #tpu.memory_space<vmem>>, %arg10: memref<8x16x96xf32, #tpu.memory_space<vmem>>, %arg11: memref<2x16x32xf32, #tpu.memory_space<vmem>>) attributes {dimension_semantics = [#tpu.dimension_semantics<arbitrary>], iteration_bounds = array<i64: 1>, scalar_prefetch = 0 : i64, scratch_operands = 3 : i64, tpu.core_type = #tpu.core_type<tc>, window_params = [{transform_indices = @transform_0, window_bounds = array<i64: 8, 16, 32>}, {transform_indices = @transform_1, window_bounds = array<i64: 8, 16, 32>}, {pipeline_mode = #tpu.pipeline_mode<synchronous>, transform_indices = @transform_2, window_bounds = array<i64: 2, 1, 32, 96>}, {pipeline_mode = #tpu.pipeline_mode<synchronous>, transform_indices = @transform_3, window_bounds = array<i64: 2, 1, 96>}, {pipeline_mode = #tpu.pipeline_mode<synchronous>, transform_indices = @transform_4, window_bounds = array<i64: 2, 32, 96>}, {pipeline_mode = #tpu.pipeline_mode<synchronous>, transform_indices = @transform_5, window_bounds = array<i64: 2, 1, 96>}, {transform_indices = @transform_6, window_bounds = array<i64: 8, 16, 32>}, {transform_indices = @transform_7, window_bounds = array<i64: 8, 16, 32>}]} {
    %c0_i32 = arith.constant 0 : i32
    %0 = arith.cmpi eq, %arg0, %c0_i32 : i32
    %1 = arith.extui %0 : i1 to i32
    %c0_i32_0 = arith.constant 0 : i32
    %2 = arith.cmpi ne, %1, %c0_i32_0 : i32
    scf.if %2 {
      %cst_187 = arith.constant 0.000000e+00 : f32
      %643 = vector.broadcast %cst_187 : f32 to vector<2x16x32xf32>
      %c0_188 = arith.constant 0 : index
      %c0_189 = arith.constant 0 : index
      %c0_190 = arith.constant 0 : index
      %644 = vector.load %arg11[%c0_188, %c0_189, %c0_190] : memref<2x16x32xf32, #tpu.memory_space<vmem>>, vector<2x16x32xf32>
      tpu.vector_store %arg11[%c0_188, %c0_189, %c0_190], %643 {strides = array<i32>} : memref<2x16x32xf32, #tpu.memory_space<vmem>>, vector<2x16x32xf32>,
    } else {
    }
    %c0 = arith.constant 0 : index
    %c0_1 = arith.constant 0 : index
    %c0_2 = arith.constant 0 : index
    %3 = vector.load %arg1[%c0, %c0_1, %c0_2] : memref<8x16x32xbf16, #tpu.memory_space<vmem>>, vector<8x16x32xbf16>
    %4 = vector.shape_cast %3 : vector<8x16x32xbf16> to vector<128x32xbf16>
    %c0_3 = arith.constant 0 : index
    %c0_4 = arith.constant 0 : index
    %c0_5 = arith.constant 0 : index
    %c0_6 = arith.constant 0 : index
    %5 = vector.load %arg3[%c0_3, %c0_4, %c0_5, %c0_6] : memref<2x1x32x96xbf16, #tpu.memory_space<vmem>>, vector<1x1x32x96xbf16>
    %6 = vector.shape_cast %5 : vector<1x1x32x96xbf16> to vector<32x96xbf16>
    %cst = arith.constant dense<0.000000e+00> : vector<128x96xf32>
    %7 = tpu.matmul %4, %6, %cst {dimension_numbers = #tpu.dot_dimension_numbers<[1], [0], [0], [1], [0, 0, 1, 1], [], []>} : vector<128x32xbf16>, vector<32x96xbf16>, vector<128x96xf32> -> vector<128x96xf32>
    %c0_7 = arith.constant 0 : index
    %c0_8 = arith.constant 0 : index
    %c0_9 = arith.constant 0 : index
    %8 = vector.load %arg4[%c0_7, %c0_8, %c0_9] : memref<2x1x96xf32, #tpu.memory_space<vmem>>, vector<1x1x96xf32>
    %9 = vector.shape_cast %8 : vector<1x1x96xf32> to vector<1x96xf32>
    %10 = vector.broadcast %9 : vector<1x96xf32> to vector<128x96xf32>
    %11 = arith.addf %7, %10 : vector<128x96xf32>
    %12 = vector.shape_cast %11 : vector<128x96xf32> to vector<8x16x96xf32>
    %c0_10 = arith.constant 0 : index
    %c0_11 = arith.constant 0 : index
    %c0_12 = arith.constant 0 : index
    %13 = vector.load %arg9[%c0_10, %c0_11, %c0_12] : memref<8x16x96xf32, #tpu.memory_space<vmem>>, vector<8x16x96xf32>
    tpu.vector_store %arg9[%c0_10, %c0_11, %c0_12], %12 {strides = array<i32>} : memref<8x16x96xf32, #tpu.memory_space<vmem>>, vector<8x16x96xf32>,
    %c0_13 = arith.constant 0 : index
    %c0_14 = arith.constant 0 : index
    %c0_15 = arith.constant 0 : index
    %14 = vector.load %arg2[%c0_13, %c0_14, %c0_15] : memref<8x16x32xbf16, #tpu.memory_space<vmem>>, vector<8x16x32xbf16>
    %15 = vector.shape_cast %14 : vector<8x16x32xbf16> to vector<128x32xbf16>
    %c1 = arith.constant 1 : index
    %c0_16 = arith.constant 0 : index
    %c0_17 = arith.constant 0 : index
    %c0_18 = arith.constant 0 : index
    %16 = vector.load %arg3[%c1, %c0_16, %c0_17, %c0_18] : memref<2x1x32x96xbf16, #tpu.memory_space<vmem>>, vector<1x1x32x96xbf16>
    %17 = vector.shape_cast %16 : vector<1x1x32x96xbf16> to vector<32x96xbf16>
    %cst_19 = arith.constant dense<0.000000e+00> : vector<128x96xf32>
    %18 = tpu.matmul %15, %17, %cst_19 {dimension_numbers = #tpu.dot_dimension_numbers<[1], [0], [0], [1], [0, 0, 1, 1], [], []>} : vector<128x32xbf16>, vector<32x96xbf16>, vector<128x96xf32> -> vector<128x96xf32>
    %c1_20 = arith.constant 1 : index
    %c0_21 = arith.constant 0 : index
    %c0_22 = arith.constant 0 : index
    %19 = vector.load %arg4[%c1_20, %c0_21, %c0_22] : memref<2x1x96xf32, #tpu.memory_space<vmem>>, vector<1x1x96xf32>
    %20 = vector.shape_cast %19 : vector<1x1x96xf32> to vector<1x96xf32>
    %21 = vector.broadcast %20 : vector<1x96xf32> to vector<128x96xf32>
    %22 = arith.addf %18, %21 : vector<128x96xf32>
    %23 = vector.shape_cast %22 : vector<128x96xf32> to vector<8x16x96xf32>
    %c0_23 = arith.constant 0 : index
    %c0_24 = arith.constant 0 : index
    %c0_25 = arith.constant 0 : index
    %24 = vector.load %arg10[%c0_23, %c0_24, %c0_25] : memref<8x16x96xf32, #tpu.memory_space<vmem>>, vector<8x16x96xf32>
    tpu.vector_store %arg10[%c0_23, %c0_24, %c0_25], %23 {strides = array<i32>} : memref<8x16x96xf32, #tpu.memory_space<vmem>>, vector<8x16x96xf32>,
    %c0_26 = arith.constant 0 : index
    %c0_27 = arith.constant 0 : index
    %c0_28 = arith.constant 0 : index
    %25 = vector.load %arg5[%c0_26, %c0_27, %c0_28] : memref<2x32x96xf32, #tpu.memory_space<vmem>>, vector<1x32x96xf32>
    %26 = vector.shape_cast %25 : vector<1x32x96xf32> to vector<32x96xf32>
    %c1_29 = arith.constant 1 : index
    %c0_30 = arith.constant 0 : index
    %c0_31 = arith.constant 0 : index
    %27 = vector.load %arg5[%c1_29, %c0_30, %c0_31] : memref<2x32x96xf32, #tpu.memory_space<vmem>>, vector<1x32x96xf32>
    %28 = vector.shape_cast %27 : vector<1x32x96xf32> to vector<32x96xf32>
    %c0_32 = arith.constant 0 : index
    %c0_33 = arith.constant 0 : index
    %c0_34 = arith.constant 0 : index
    %29 = vector.load %arg6[%c0_32, %c0_33, %c0_34] : memref<2x1x96xf32, #tpu.memory_space<vmem>>, vector<1x1x96xf32>
    %30 = vector.shape_cast %29 : vector<1x1x96xf32> to vector<1x96xf32>
    %c1_35 = arith.constant 1 : index
    %c0_36 = arith.constant 0 : index
    %c0_37 = arith.constant 0 : index
    %31 = vector.load %arg6[%c1_35, %c0_36, %c0_37] : memref<2x1x96xf32, #tpu.memory_space<vmem>>, vector<1x1x96xf32>
    %32 = vector.shape_cast %31 : vector<1x1x96xf32> to vector<1x96xf32>
    %c0_38 = arith.constant 0 : index
    %c0_39 = arith.constant 0 : index
    %c0_40 = arith.constant 0 : index
    %33 = vector.load %arg11[%c0_38, %c0_39, %c0_40] : memref<2x16x32xf32, #tpu.memory_space<vmem>>, vector<1x16x32xf32>
    %34 = vector.shape_cast %33 : vector<1x16x32xf32> to vector<16x32xf32>
    %c1_41 = arith.constant 1 : index
    %c0_42 = arith.constant 0 : index
    %c0_43 = arith.constant 0 : index
    %35 = vector.load %arg11[%c1_41, %c0_42, %c0_43] : memref<2x16x32xf32, #tpu.memory_space<vmem>>, vector<1x16x32xf32>
    %36 = vector.shape_cast %35 : vector<1x16x32xf32> to vector<16x32xf32>
    %c0_i32_44 = arith.constant 0 : i32
    %c7_i32 = arith.constant 7 : i32
    %37 = arith.subi %c7_i32, %c0_i32_44 : i32
    %38 = arith.index_cast %c0_i32_44 : i32 to index
    %c0_45 = arith.constant 0 : index
    %c0_46 = arith.constant 0 : index
    %39 = vector.load %arg9[%38, %c0_45, %c0_46] : memref<8x16x96xf32, #tpu.memory_space<vmem>>, vector<1x16x96xf32>
    %40 = vector.shape_cast %39 : vector<1x16x96xf32> to vector<16x96xf32>
    %41 = arith.index_cast %37 : i32 to index
    %c0_47 = arith.constant 0 : index
    %c0_48 = arith.constant 0 : index
    %42 = vector.load %arg10[%41, %c0_47, %c0_48] : memref<8x16x96xf32, #tpu.memory_space<vmem>>, vector<1x16x96xf32>
    %43 = vector.shape_cast %42 : vector<1x16x96xf32> to vector<16x96xf32>
    %cst_49 = arith.constant dense<0.000000e+00> : vector<16x96xf32>
    %44 = tpu.matmul %34, %26, %cst_49 {dimension_numbers = #tpu.dot_dimension_numbers<[1], [0], [0], [1], [0, 0, 1, 1], [], []>} : vector<16x32xf32>, vector<32x96xf32>, vector<16x96xf32> -> vector<16x96xf32>
    %45 = vector.broadcast %30 : vector<1x96xf32> to vector<16x96xf32>
    %46 = arith.addf %44, %45 : vector<16x96xf32>
    %cst_50 = arith.constant dense<0.000000e+00> : vector<16x96xf32>
    %47 = tpu.matmul %36, %28, %cst_50 {dimension_numbers = #tpu.dot_dimension_numbers<[1], [0], [0], [1], [0, 0, 1, 1], [], []>} : vector<16x32xf32>, vector<32x96xf32>, vector<16x96xf32> -> vector<16x96xf32>
    %48 = vector.broadcast %32 : vector<1x96xf32> to vector<16x96xf32>
    %49 = arith.addf %47, %48 : vector<16x96xf32>
    %50 = vector.extract_strided_slice %40 {offsets = [0, 0], sizes = [16, 32], strides = [1, 1]} : vector<16x96xf32> to vector<16x32xf32>
    %51 = vector.extract_strided_slice %46 {offsets = [0, 0], sizes = [16, 32], strides = [1, 1]} : vector<16x96xf32> to vector<16x32xf32>
    %52 = arith.addf %50, %51 : vector<16x32xf32>
    %53 = arith.negf %52 : vector<16x32xf32>
    %54 = math.exp %53 : vector<16x32xf32>
    %cst_51 = arith.constant 1.000000e+00 : f32
    %55 = vector.broadcast %cst_51 : f32 to vector<16x32xf32>
    %56 = arith.addf %55, %54 : vector<16x32xf32>
    %57 = arith.divf %55, %56 : vector<16x32xf32>
    %58 = vector.extract_strided_slice %40 {offsets = [0, 32], sizes = [16, 32], strides = [1, 1]} : vector<16x96xf32> to vector<16x32xf32>
    %59 = vector.extract_strided_slice %46 {offsets = [0, 32], sizes = [16, 32], strides = [1, 1]} : vector<16x96xf32> to vector<16x32xf32>
    %60 = arith.addf %58, %59 : vector<16x32xf32>
    %61 = arith.negf %60 : vector<16x32xf32>
    %62 = math.exp %61 : vector<16x32xf32>
    %cst_52 = arith.constant 1.000000e+00 : f32
    %63 = vector.broadcast %cst_52 : f32 to vector<16x32xf32>
    %64 = arith.addf %63, %62 : vector<16x32xf32>
    %65 = arith.divf %63, %64 : vector<16x32xf32>
    %66 = vector.extract_strided_slice %40 {offsets = [0, 64], sizes = [16, 32], strides = [1, 1]} : vector<16x96xf32> to vector<16x32xf32>
    %67 = vector.extract_strided_slice %46 {offsets = [0, 64], sizes = [16, 32], strides = [1, 1]} : vector<16x96xf32> to vector<16x32xf32>
    %68 = arith.mulf %57, %67 : vector<16x32xf32>
    %69 = arith.addf %66, %68 : vector<16x32xf32>
    %70 = math.tanh %69 : vector<16x32xf32>
    %cst_53 = arith.constant 1.000000e+00 : f32
    %71 = vector.broadcast %cst_53 : f32 to vector<16x32xf32>
    %72 = arith.subf %71, %65 : vector<16x32xf32>
    %73 = arith.mulf %72, %70 : vector<16x32xf32>
    %74 = arith.mulf %65, %34 : vector<16x32xf32>
    %75 = arith.addf %73, %74 : vector<16x32xf32>
    %76 = vector.extract_strided_slice %43 {offsets = [0, 0], sizes = [16, 32], strides = [1, 1]} : vector<16x96xf32> to vector<16x32xf32>
    %77 = vector.extract_strided_slice %49 {offsets = [0, 0], sizes = [16, 32], strides = [1, 1]} : vector<16x96xf32> to vector<16x32xf32>
    %78 = arith.addf %76, %77 : vector<16x32xf32>
    %79 = arith.negf %78 : vector<16x32xf32>
    %80 = math.exp %79 : vector<16x32xf32>
    %cst_54 = arith.constant 1.000000e+00 : f32
    %81 = vector.broadcast %cst_54 : f32 to vector<16x32xf32>
    %82 = arith.addf %81, %80 : vector<16x32xf32>
    %83 = arith.divf %81, %82 : vector<16x32xf32>
    %84 = vector.extract_strided_slice %43 {offsets = [0, 32], sizes = [16, 32], strides = [1, 1]} : vector<16x96xf32> to vector<16x32xf32>
    %85 = vector.extract_strided_slice %49 {offsets = [0, 32], sizes = [16, 32], strides = [1, 1]} : vector<16x96xf32> to vector<16x32xf32>
    %86 = arith.addf %84, %85 : vector<16x32xf32>
    %87 = arith.negf %86 : vector<16x32xf32>
    %88 = math.exp %87 : vector<16x32xf32>
    %cst_55 = arith.constant 1.000000e+00 : f32
    %89 = vector.broadcast %cst_55 : f32 to vector<16x32xf32>
    %90 = arith.addf %89, %88 : vector<16x32xf32>
    %91 = arith.divf %89, %90 : vector<16x32xf32>
    %92 = vector.extract_strided_slice %43 {offsets = [0, 64], sizes = [16, 32], strides = [1, 1]} : vector<16x96xf32> to vector<16x32xf32>
    %93 = vector.extract_strided_slice %49 {offsets = [0, 64], sizes = [16, 32], strides = [1, 1]} : vector<16x96xf32> to vector<16x32xf32>
    %94 = arith.mulf %83, %93 : vector<16x32xf32>
    %95 = arith.addf %92, %94 : vector<16x32xf32>
    %96 = math.tanh %95 : vector<16x32xf32>
    %cst_56 = arith.constant 1.000000e+00 : f32
    %97 = vector.broadcast %cst_56 : f32 to vector<16x32xf32>
    %98 = arith.subf %97, %91 : vector<16x32xf32>
    %99 = arith.mulf %98, %96 : vector<16x32xf32>
    %100 = arith.mulf %91, %36 : vector<16x32xf32>
    %101 = arith.addf %99, %100 : vector<16x32xf32>
    %102 = arith.truncf %75 : vector<16x32xf32> to vector<16x32xbf16>
    %103 = arith.index_cast %c0_i32_44 : i32 to index
    %c0_57 = arith.constant 0 : index
    %c0_58 = arith.constant 0 : index
    %104 = vector.load %arg7[%103, %c0_57, %c0_58] : memref<8x16x32xbf16, #tpu.memory_space<vmem>>, vector<1x16x32xbf16>
    %105 = vector.shape_cast %104 : vector<1x16x32xbf16> to vector<16x32xbf16>
    %106 = vector.shape_cast %102 : vector<16x32xbf16> to vector<1x16x32xbf16>
    tpu.vector_store %arg7[%103, %c0_57, %c0_58], %106 {strides = array<i32>} : memref<8x16x32xbf16, #tpu.memory_space<vmem>>, vector<1x16x32xbf16>,
    %107 = arith.truncf %101 : vector<16x32xf32> to vector<16x32xbf16>
    %108 = arith.index_cast %37 : i32 to index
    %c0_59 = arith.constant 0 : index
    %c0_60 = arith.constant 0 : index
    %109 = vector.load %arg8[%108, %c0_59, %c0_60] : memref<8x16x32xbf16, #tpu.memory_space<vmem>>, vector<1x16x32xbf16>
    %110 = vector.shape_cast %109 : vector<1x16x32xbf16> to vector<16x32xbf16>
    %111 = vector.shape_cast %107 : vector<16x32xbf16> to vector<1x16x32xbf16>
    tpu.vector_store %arg8[%108, %c0_59, %c0_60], %111 {strides = array<i32>} : memref<8x16x32xbf16, #tpu.memory_space<vmem>>, vector<1x16x32xbf16>,
    %c1_i32 = arith.constant 1 : i32
    %c7_i32_61 = arith.constant 7 : i32
    %112 = arith.subi %c7_i32_61, %c1_i32 : i32
    %113 = arith.index_cast %c1_i32 : i32 to index
    %c0_62 = arith.constant 0 : index
    %c0_63 = arith.constant 0 : index
    %114 = vector.load %arg9[%113, %c0_62, %c0_63] : memref<8x16x96xf32, #tpu.memory_space<vmem>>, vector<1x16x96xf32>
    %115 = vector.shape_cast %114 : vector<1x16x96xf32> to vector<16x96xf32>
    %116 = arith.index_cast %112 : i32 to index
    %c0_64 = arith.constant 0 : index
    %c0_65 = arith.constant 0 : index
    %117 = vector.load %arg10[%116, %c0_64, %c0_65] : memref<8x16x96xf32, #tpu.memory_space<vmem>>, vector<1x16x96xf32>
    %118 = vector.shape_cast %117 : vector<1x16x96xf32> to vector<16x96xf32>
    %cst_66 = arith.constant dense<0.000000e+00> : vector<16x96xf32>
    %119 = tpu.matmul %75, %26, %cst_66 {dimension_numbers = #tpu.dot_dimension_numbers<[1], [0], [0], [1], [0, 0, 1, 1], [], []>} : vector<16x32xf32>, vector<32x96xf32>, vector<16x96xf32> -> vector<16x96xf32>
    %120 = vector.broadcast %30 : vector<1x96xf32> to vector<16x96xf32>
    %121 = arith.addf %119, %120 : vector<16x96xf32>
    %cst_67 = arith.constant dense<0.000000e+00> : vector<16x96xf32>
    %122 = tpu.matmul %101, %28, %cst_67 {dimension_numbers = #tpu.dot_dimension_numbers<[1], [0], [0], [1], [0, 0, 1, 1], [], []>} : vector<16x32xf32>, vector<32x96xf32>, vector<16x96xf32> -> vector<16x96xf32>
    %123 = vector.broadcast %32 : vector<1x96xf32> to vector<16x96xf32>
    %124 = arith.addf %122, %123 : vector<16x96xf32>
    %125 = vector.extract_strided_slice %115 {offsets = [0, 0], sizes = [16, 32], strides = [1, 1]} : vector<16x96xf32> to vector<16x32xf32>
    %126 = vector.extract_strided_slice %121 {offsets = [0, 0], sizes = [16, 32], strides = [1, 1]} : vector<16x96xf32> to vector<16x32xf32>
    %127 = arith.addf %125, %126 : vector<16x32xf32>
    %128 = arith.negf %127 : vector<16x32xf32>
    %129 = math.exp %128 : vector<16x32xf32>
    %cst_68 = arith.constant 1.000000e+00 : f32
    %130 = vector.broadcast %cst_68 : f32 to vector<16x32xf32>
    %131 = arith.addf %130, %129 : vector<16x32xf32>
    %132 = arith.divf %130, %131 : vector<16x32xf32>
    %133 = vector.extract_strided_slice %115 {offsets = [0, 32], sizes = [16, 32], strides = [1, 1]} : vector<16x96xf32> to vector<16x32xf32>
    %134 = vector.extract_strided_slice %121 {offsets = [0, 32], sizes = [16, 32], strides = [1, 1]} : vector<16x96xf32> to vector<16x32xf32>
    %135 = arith.addf %133, %134 : vector<16x32xf32>
    %136 = arith.negf %135 : vector<16x32xf32>
    %137 = math.exp %136 : vector<16x32xf32>
    %cst_69 = arith.constant 1.000000e+00 : f32
    %138 = vector.broadcast %cst_69 : f32 to vector<16x32xf32>
    %139 = arith.addf %138, %137 : vector<16x32xf32>
    %140 = arith.divf %138, %139 : vector<16x32xf32>
    %141 = vector.extract_strided_slice %115 {offsets = [0, 64], sizes = [16, 32], strides = [1, 1]} : vector<16x96xf32> to vector<16x32xf32>
    %142 = vector.extract_strided_slice %121 {offsets = [0, 64], sizes = [16, 32], strides = [1, 1]} : vector<16x96xf32> to vector<16x32xf32>
    %143 = arith.mulf %132, %142 : vector<16x32xf32>
    %144 = arith.addf %141, %143 : vector<16x32xf32>
    %145 = math.tanh %144 : vector<16x32xf32>
    %cst_70 = arith.constant 1.000000e+00 : f32
    %146 = vector.broadcast %cst_70 : f32 to vector<16x32xf32>
    %147 = arith.subf %146, %140 : vector<16x32xf32>
    %148 = arith.mulf %147, %145 : vector<16x32xf32>
    %149 = arith.mulf %140, %75 : vector<16x32xf32>
    %150 = arith.addf %148, %149 : vector<16x32xf32>
    %151 = vector.extract_strided_slice %118 {offsets = [0, 0], sizes = [16, 32], strides = [1, 1]} : vector<16x96xf32> to vector<16x32xf32>
    %152 = vector.extract_strided_slice %124 {offsets = [0, 0], sizes = [16, 32], strides = [1, 1]} : vector<16x96xf32> to vector<16x32xf32>
    %153 = arith.addf %151, %152 : vector<16x32xf32>
    %154 = arith.negf %153 : vector<16x32xf32>
    %155 = math.exp %154 : vector<16x32xf32>
    %cst_71 = arith.constant 1.000000e+00 : f32
    %156 = vector.broadcast %cst_71 : f32 to vector<16x32xf32>
    %157 = arith.addf %156, %155 : vector<16x32xf32>
    %158 = arith.divf %156, %157 : vector<16x32xf32>
    %159 = vector.extract_strided_slice %118 {offsets = [0, 32], sizes = [16, 32], strides = [1, 1]} : vector<16x96xf32> to vector<16x32xf32>
    %160 = vector.extract_strided_slice %124 {offsets = [0, 32], sizes = [16, 32], strides = [1, 1]} : vector<16x96xf32> to vector<16x32xf32>
    %161 = arith.addf %159, %160 : vector<16x32xf32>
    %162 = arith.negf %161 : vector<16x32xf32>
    %163 = math.exp %162 : vector<16x32xf32>
    %cst_72 = arith.constant 1.000000e+00 : f32
    %164 = vector.broadcast %cst_72 : f32 to vector<16x32xf32>
    %165 = arith.addf %164, %163 : vector<16x32xf32>
    %166 = arith.divf %164, %165 : vector<16x32xf32>
    %167 = vector.extract_strided_slice %118 {offsets = [0, 64], sizes = [16, 32], strides = [1, 1]} : vector<16x96xf32> to vector<16x32xf32>
    %168 = vector.extract_strided_slice %124 {offsets = [0, 64], sizes = [16, 32], strides = [1, 1]} : vector<16x96xf32> to vector<16x32xf32>
    %169 = arith.mulf %158, %168 : vector<16x32xf32>
    %170 = arith.addf %167, %169 : vector<16x32xf32>
    %171 = math.tanh %170 : vector<16x32xf32>
    %cst_73 = arith.constant 1.000000e+00 : f32
    %172 = vector.broadcast %cst_73 : f32 to vector<16x32xf32>
    %173 = arith.subf %172, %166 : vector<16x32xf32>
    %174 = arith.mulf %173, %171 : vector<16x32xf32>
    %175 = arith.mulf %166, %101 : vector<16x32xf32>
    %176 = arith.addf %174, %175 : vector<16x32xf32>
    %177 = arith.truncf %150 : vector<16x32xf32> to vector<16x32xbf16>
    %178 = arith.index_cast %c1_i32 : i32 to index
    %c0_74 = arith.constant 0 : index
    %c0_75 = arith.constant 0 : index
    %179 = vector.load %arg7[%178, %c0_74, %c0_75] : memref<8x16x32xbf16, #tpu.memory_space<vmem>>, vector<1x16x32xbf16>
    %180 = vector.shape_cast %179 : vector<1x16x32xbf16> to vector<16x32xbf16>
    %181 = vector.shape_cast %177 : vector<16x32xbf16> to vector<1x16x32xbf16>
    tpu.vector_store %arg7[%178, %c0_74, %c0_75], %181 {strides = array<i32>} : memref<8x16x32xbf16, #tpu.memory_space<vmem>>, vector<1x16x32xbf16>,
    %182 = arith.truncf %176 : vector<16x32xf32> to vector<16x32xbf16>
    %183 = arith.index_cast %112 : i32 to index
    %c0_76 = arith.constant 0 : index
    %c0_77 = arith.constant 0 : index
    %184 = vector.load %arg8[%183, %c0_76, %c0_77] : memref<8x16x32xbf16, #tpu.memory_space<vmem>>, vector<1x16x32xbf16>
    %185 = vector.shape_cast %184 : vector<1x16x32xbf16> to vector<16x32xbf16>
    %186 = vector.shape_cast %182 : vector<16x32xbf16> to vector<1x16x32xbf16>
    tpu.vector_store %arg8[%183, %c0_76, %c0_77], %186 {strides = array<i32>} : memref<8x16x32xbf16, #tpu.memory_space<vmem>>, vector<1x16x32xbf16>,
    %c2_i32 = arith.constant 2 : i32
    %c7_i32_78 = arith.constant 7 : i32
    %187 = arith.subi %c7_i32_78, %c2_i32 : i32
    %188 = arith.index_cast %c2_i32 : i32 to index
    %c0_79 = arith.constant 0 : index
    %c0_80 = arith.constant 0 : index
    %189 = vector.load %arg9[%188, %c0_79, %c0_80] : memref<8x16x96xf32, #tpu.memory_space<vmem>>, vector<1x16x96xf32>
    %190 = vector.shape_cast %189 : vector<1x16x96xf32> to vector<16x96xf32>
    %191 = arith.index_cast %187 : i32 to index
    %c0_81 = arith.constant 0 : index
    %c0_82 = arith.constant 0 : index
    %192 = vector.load %arg10[%191, %c0_81, %c0_82] : memref<8x16x96xf32, #tpu.memory_space<vmem>>, vector<1x16x96xf32>
    %193 = vector.shape_cast %192 : vector<1x16x96xf32> to vector<16x96xf32>
    %cst_83 = arith.constant dense<0.000000e+00> : vector<16x96xf32>
    %194 = tpu.matmul %150, %26, %cst_83 {dimension_numbers = #tpu.dot_dimension_numbers<[1], [0], [0], [1], [0, 0, 1, 1], [], []>} : vector<16x32xf32>, vector<32x96xf32>, vector<16x96xf32> -> vector<16x96xf32>
    %195 = vector.broadcast %30 : vector<1x96xf32> to vector<16x96xf32>
    %196 = arith.addf %194, %195 : vector<16x96xf32>
    %cst_84 = arith.constant dense<0.000000e+00> : vector<16x96xf32>
    %197 = tpu.matmul %176, %28, %cst_84 {dimension_numbers = #tpu.dot_dimension_numbers<[1], [0], [0], [1], [0, 0, 1, 1], [], []>} : vector<16x32xf32>, vector<32x96xf32>, vector<16x96xf32> -> vector<16x96xf32>
    %198 = vector.broadcast %32 : vector<1x96xf32> to vector<16x96xf32>
    %199 = arith.addf %197, %198 : vector<16x96xf32>
    %200 = vector.extract_strided_slice %190 {offsets = [0, 0], sizes = [16, 32], strides = [1, 1]} : vector<16x96xf32> to vector<16x32xf32>
    %201 = vector.extract_strided_slice %196 {offsets = [0, 0], sizes = [16, 32], strides = [1, 1]} : vector<16x96xf32> to vector<16x32xf32>
    %202 = arith.addf %200, %201 : vector<16x32xf32>
    %203 = arith.negf %202 : vector<16x32xf32>
    %204 = math.exp %203 : vector<16x32xf32>
    %cst_85 = arith.constant 1.000000e+00 : f32
    %205 = vector.broadcast %cst_85 : f32 to vector<16x32xf32>
    %206 = arith.addf %205, %204 : vector<16x32xf32>
    %207 = arith.divf %205, %206 : vector<16x32xf32>
    %208 = vector.extract_strided_slice %190 {offsets = [0, 32], sizes = [16, 32], strides = [1, 1]} : vector<16x96xf32> to vector<16x32xf32>
    %209 = vector.extract_strided_slice %196 {offsets = [0, 32], sizes = [16, 32], strides = [1, 1]} : vector<16x96xf32> to vector<16x32xf32>
    %210 = arith.addf %208, %209 : vector<16x32xf32>
    %211 = arith.negf %210 : vector<16x32xf32>
    %212 = math.exp %211 : vector<16x32xf32>
    %cst_86 = arith.constant 1.000000e+00 : f32
    %213 = vector.broadcast %cst_86 : f32 to vector<16x32xf32>
    %214 = arith.addf %213, %212 : vector<16x32xf32>
    %215 = arith.divf %213, %214 : vector<16x32xf32>
    %216 = vector.extract_strided_slice %190 {offsets = [0, 64], sizes = [16, 32], strides = [1, 1]} : vector<16x96xf32> to vector<16x32xf32>
    %217 = vector.extract_strided_slice %196 {offsets = [0, 64], sizes = [16, 32], strides = [1, 1]} : vector<16x96xf32> to vector<16x32xf32>
    %218 = arith.mulf %207, %217 : vector<16x32xf32>
    %219 = arith.addf %216, %218 : vector<16x32xf32>
    %220 = math.tanh %219 : vector<16x32xf32>
    %cst_87 = arith.constant 1.000000e+00 : f32
    %221 = vector.broadcast %cst_87 : f32 to vector<16x32xf32>
    %222 = arith.subf %221, %215 : vector<16x32xf32>
    %223 = arith.mulf %222, %220 : vector<16x32xf32>
    %224 = arith.mulf %215, %150 : vector<16x32xf32>
    %225 = arith.addf %223, %224 : vector<16x32xf32>
    %226 = vector.extract_strided_slice %193 {offsets = [0, 0], sizes = [16, 32], strides = [1, 1]} : vector<16x96xf32> to vector<16x32xf32>
    %227 = vector.extract_strided_slice %199 {offsets = [0, 0], sizes = [16, 32], strides = [1, 1]} : vector<16x96xf32> to vector<16x32xf32>
    %228 = arith.addf %226, %227 : vector<16x32xf32>
    %229 = arith.negf %228 : vector<16x32xf32>
    %230 = math.exp %229 : vector<16x32xf32>
    %cst_88 = arith.constant 1.000000e+00 : f32
    %231 = vector.broadcast %cst_88 : f32 to vector<16x32xf32>
    %232 = arith.addf %231, %230 : vector<16x32xf32>
    %233 = arith.divf %231, %232 : vector<16x32xf32>
    %234 = vector.extract_strided_slice %193 {offsets = [0, 32], sizes = [16, 32], strides = [1, 1]} : vector<16x96xf32> to vector<16x32xf32>
    %235 = vector.extract_strided_slice %199 {offsets = [0, 32], sizes = [16, 32], strides = [1, 1]} : vector<16x96xf32> to vector<16x32xf32>
    %236 = arith.addf %234, %235 : vector<16x32xf32>
    %237 = arith.negf %236 : vector<16x32xf32>
    %238 = math.exp %237 : vector<16x32xf32>
    %cst_89 = arith.constant 1.000000e+00 : f32
    %239 = vector.broadcast %cst_89 : f32 to vector<16x32xf32>
    %240 = arith.addf %239, %238 : vector<16x32xf32>
    %241 = arith.divf %239, %240 : vector<16x32xf32>
    %242 = vector.extract_strided_slice %193 {offsets = [0, 64], sizes = [16, 32], strides = [1, 1]} : vector<16x96xf32> to vector<16x32xf32>
    %243 = vector.extract_strided_slice %199 {offsets = [0, 64], sizes = [16, 32], strides = [1, 1]} : vector<16x96xf32> to vector<16x32xf32>
    %244 = arith.mulf %233, %243 : vector<16x32xf32>
    %245 = arith.addf %242, %244 : vector<16x32xf32>
    %246 = math.tanh %245 : vector<16x32xf32>
    %cst_90 = arith.constant 1.000000e+00 : f32
    %247 = vector.broadcast %cst_90 : f32 to vector<16x32xf32>
    %248 = arith.subf %247, %241 : vector<16x32xf32>
    %249 = arith.mulf %248, %246 : vector<16x32xf32>
    %250 = arith.mulf %241, %176 : vector<16x32xf32>
    %251 = arith.addf %249, %250 : vector<16x32xf32>
    %252 = arith.truncf %225 : vector<16x32xf32> to vector<16x32xbf16>
    %253 = arith.index_cast %c2_i32 : i32 to index
    %c0_91 = arith.constant 0 : index
    %c0_92 = arith.constant 0 : index
    %254 = vector.load %arg7[%253, %c0_91, %c0_92] : memref<8x16x32xbf16, #tpu.memory_space<vmem>>, vector<1x16x32xbf16>
    %255 = vector.shape_cast %254 : vector<1x16x32xbf16> to vector<16x32xbf16>
    %256 = vector.shape_cast %252 : vector<16x32xbf16> to vector<1x16x32xbf16>
    tpu.vector_store %arg7[%253, %c0_91, %c0_92], %256 {strides = array<i32>} : memref<8x16x32xbf16, #tpu.memory_space<vmem>>, vector<1x16x32xbf16>,
    %257 = arith.truncf %251 : vector<16x32xf32> to vector<16x32xbf16>
    %258 = arith.index_cast %187 : i32 to index
    %c0_93 = arith.constant 0 : index
    %c0_94 = arith.constant 0 : index
    %259 = vector.load %arg8[%258, %c0_93, %c0_94] : memref<8x16x32xbf16, #tpu.memory_space<vmem>>, vector<1x16x32xbf16>
    %260 = vector.shape_cast %259 : vector<1x16x32xbf16> to vector<16x32xbf16>
    %261 = vector.shape_cast %257 : vector<16x32xbf16> to vector<1x16x32xbf16>
    tpu.vector_store %arg8[%258, %c0_93, %c0_94], %261 {strides = array<i32>} : memref<8x16x32xbf16, #tpu.memory_space<vmem>>, vector<1x16x32xbf16>,
    %c3_i32 = arith.constant 3 : i32
    %c7_i32_95 = arith.constant 7 : i32
    %262 = arith.subi %c7_i32_95, %c3_i32 : i32
    %263 = arith.index_cast %c3_i32 : i32 to index
    %c0_96 = arith.constant 0 : index
    %c0_97 = arith.constant 0 : index
    %264 = vector.load %arg9[%263, %c0_96, %c0_97] : memref<8x16x96xf32, #tpu.memory_space<vmem>>, vector<1x16x96xf32>
    %265 = vector.shape_cast %264 : vector<1x16x96xf32> to vector<16x96xf32>
    %266 = arith.index_cast %262 : i32 to index
    %c0_98 = arith.constant 0 : index
    %c0_99 = arith.constant 0 : index
    %267 = vector.load %arg10[%266, %c0_98, %c0_99] : memref<8x16x96xf32, #tpu.memory_space<vmem>>, vector<1x16x96xf32>
    %268 = vector.shape_cast %267 : vector<1x16x96xf32> to vector<16x96xf32>
    %cst_100 = arith.constant dense<0.000000e+00> : vector<16x96xf32>
    %269 = tpu.matmul %225, %26, %cst_100 {dimension_numbers = #tpu.dot_dimension_numbers<[1], [0], [0], [1], [0, 0, 1, 1], [], []>} : vector<16x32xf32>, vector<32x96xf32>, vector<16x96xf32> -> vector<16x96xf32>
    %270 = vector.broadcast %30 : vector<1x96xf32> to vector<16x96xf32>
    %271 = arith.addf %269, %270 : vector<16x96xf32>
    %cst_101 = arith.constant dense<0.000000e+00> : vector<16x96xf32>
    %272 = tpu.matmul %251, %28, %cst_101 {dimension_numbers = #tpu.dot_dimension_numbers<[1], [0], [0], [1], [0, 0, 1, 1], [], []>} : vector<16x32xf32>, vector<32x96xf32>, vector<16x96xf32> -> vector<16x96xf32>
    %273 = vector.broadcast %32 : vector<1x96xf32> to vector<16x96xf32>
    %274 = arith.addf %272, %273 : vector<16x96xf32>
    %275 = vector.extract_strided_slice %265 {offsets = [0, 0], sizes = [16, 32], strides = [1, 1]} : vector<16x96xf32> to vector<16x32xf32>
    %276 = vector.extract_strided_slice %271 {offsets = [0, 0], sizes = [16, 32], strides = [1, 1]} : vector<16x96xf32> to vector<16x32xf32>
    %277 = arith.addf %275, %276 : vector<16x32xf32>
    %278 = arith.negf %277 : vector<16x32xf32>
    %279 = math.exp %278 : vector<16x32xf32>
    %cst_102 = arith.constant 1.000000e+00 : f32
    %280 = vector.broadcast %cst_102 : f32 to vector<16x32xf32>
    %281 = arith.addf %280, %279 : vector<16x32xf32>
    %282 = arith.divf %280, %281 : vector<16x32xf32>
    %283 = vector.extract_strided_slice %265 {offsets = [0, 32], sizes = [16, 32], strides = [1, 1]} : vector<16x96xf32> to vector<16x32xf32>
    %284 = vector.extract_strided_slice %271 {offsets = [0, 32], sizes = [16, 32], strides = [1, 1]} : vector<16x96xf32> to vector<16x32xf32>
    %285 = arith.addf %283, %284 : vector<16x32xf32>
    %286 = arith.negf %285 : vector<16x32xf32>
    %287 = math.exp %286 : vector<16x32xf32>
    %cst_103 = arith.constant 1.000000e+00 : f32
    %288 = vector.broadcast %cst_103 : f32 to vector<16x32xf32>
    %289 = arith.addf %288, %287 : vector<16x32xf32>
    %290 = arith.divf %288, %289 : vector<16x32xf32>
    %291 = vector.extract_strided_slice %265 {offsets = [0, 64], sizes = [16, 32], strides = [1, 1]} : vector<16x96xf32> to vector<16x32xf32>
    %292 = vector.extract_strided_slice %271 {offsets = [0, 64], sizes = [16, 32], strides = [1, 1]} : vector<16x96xf32> to vector<16x32xf32>
    %293 = arith.mulf %282, %292 : vector<16x32xf32>
    %294 = arith.addf %291, %293 : vector<16x32xf32>
    %295 = math.tanh %294 : vector<16x32xf32>
    %cst_104 = arith.constant 1.000000e+00 : f32
    %296 = vector.broadcast %cst_104 : f32 to vector<16x32xf32>
    %297 = arith.subf %296, %290 : vector<16x32xf32>
    %298 = arith.mulf %297, %295 : vector<16x32xf32>
    %299 = arith.mulf %290, %225 : vector<16x32xf32>
    %300 = arith.addf %298, %299 : vector<16x32xf32>
    %301 = vector.extract_strided_slice %268 {offsets = [0, 0], sizes = [16, 32], strides = [1, 1]} : vector<16x96xf32> to vector<16x32xf32>
    %302 = vector.extract_strided_slice %274 {offsets = [0, 0], sizes = [16, 32], strides = [1, 1]} : vector<16x96xf32> to vector<16x32xf32>
    %303 = arith.addf %301, %302 : vector<16x32xf32>
    %304 = arith.negf %303 : vector<16x32xf32>
    %305 = math.exp %304 : vector<16x32xf32>
    %cst_105 = arith.constant 1.000000e+00 : f32
    %306 = vector.broadcast %cst_105 : f32 to vector<16x32xf32>
    %307 = arith.addf %306, %305 : vector<16x32xf32>
    %308 = arith.divf %306, %307 : vector<16x32xf32>
    %309 = vector.extract_strided_slice %268 {offsets = [0, 32], sizes = [16, 32], strides = [1, 1]} : vector<16x96xf32> to vector<16x32xf32>
    %310 = vector.extract_strided_slice %274 {offsets = [0, 32], sizes = [16, 32], strides = [1, 1]} : vector<16x96xf32> to vector<16x32xf32>
    %311 = arith.addf %309, %310 : vector<16x32xf32>
    %312 = arith.negf %311 : vector<16x32xf32>
    %313 = math.exp %312 : vector<16x32xf32>
    %cst_106 = arith.constant 1.000000e+00 : f32
    %314 = vector.broadcast %cst_106 : f32 to vector<16x32xf32>
    %315 = arith.addf %314, %313 : vector<16x32xf32>
    %316 = arith.divf %314, %315 : vector<16x32xf32>
    %317 = vector.extract_strided_slice %268 {offsets = [0, 64], sizes = [16, 32], strides = [1, 1]} : vector<16x96xf32> to vector<16x32xf32>
    %318 = vector.extract_strided_slice %274 {offsets = [0, 64], sizes = [16, 32], strides = [1, 1]} : vector<16x96xf32> to vector<16x32xf32>
    %319 = arith.mulf %308, %318 : vector<16x32xf32>
    %320 = arith.addf %317, %319 : vector<16x32xf32>
    %321 = math.tanh %320 : vector<16x32xf32>
    %cst_107 = arith.constant 1.000000e+00 : f32
    %322 = vector.broadcast %cst_107 : f32 to vector<16x32xf32>
    %323 = arith.subf %322, %316 : vector<16x32xf32>
    %324 = arith.mulf %323, %321 : vector<16x32xf32>
    %325 = arith.mulf %316, %251 : vector<16x32xf32>
    %326 = arith.addf %324, %325 : vector<16x32xf32>
    %327 = arith.truncf %300 : vector<16x32xf32> to vector<16x32xbf16>
    %328 = arith.index_cast %c3_i32 : i32 to index
    %c0_108 = arith.constant 0 : index
    %c0_109 = arith.constant 0 : index
    %329 = vector.load %arg7[%328, %c0_108, %c0_109] : memref<8x16x32xbf16, #tpu.memory_space<vmem>>, vector<1x16x32xbf16>
    %330 = vector.shape_cast %329 : vector<1x16x32xbf16> to vector<16x32xbf16>
    %331 = vector.shape_cast %327 : vector<16x32xbf16> to vector<1x16x32xbf16>
    tpu.vector_store %arg7[%328, %c0_108, %c0_109], %331 {strides = array<i32>} : memref<8x16x32xbf16, #tpu.memory_space<vmem>>, vector<1x16x32xbf16>,
    %332 = arith.truncf %326 : vector<16x32xf32> to vector<16x32xbf16>
    %333 = arith.index_cast %262 : i32 to index
    %c0_110 = arith.constant 0 : index
    %c0_111 = arith.constant 0 : index
    %334 = vector.load %arg8[%333, %c0_110, %c0_111] : memref<8x16x32xbf16, #tpu.memory_space<vmem>>, vector<1x16x32xbf16>
    %335 = vector.shape_cast %334 : vector<1x16x32xbf16> to vector<16x32xbf16>
    %336 = vector.shape_cast %332 : vector<16x32xbf16> to vector<1x16x32xbf16>
    tpu.vector_store %arg8[%333, %c0_110, %c0_111], %336 {strides = array<i32>} : memref<8x16x32xbf16, #tpu.memory_space<vmem>>, vector<1x16x32xbf16>,
    %c4_i32 = arith.constant 4 : i32
    %c7_i32_112 = arith.constant 7 : i32
    %337 = arith.subi %c7_i32_112, %c4_i32 : i32
    %338 = arith.index_cast %c4_i32 : i32 to index
    %c0_113 = arith.constant 0 : index
    %c0_114 = arith.constant 0 : index
    %339 = vector.load %arg9[%338, %c0_113, %c0_114] : memref<8x16x96xf32, #tpu.memory_space<vmem>>, vector<1x16x96xf32>
    %340 = vector.shape_cast %339 : vector<1x16x96xf32> to vector<16x96xf32>
    %341 = arith.index_cast %337 : i32 to index
    %c0_115 = arith.constant 0 : index
    %c0_116 = arith.constant 0 : index
    %342 = vector.load %arg10[%341, %c0_115, %c0_116] : memref<8x16x96xf32, #tpu.memory_space<vmem>>, vector<1x16x96xf32>
    %343 = vector.shape_cast %342 : vector<1x16x96xf32> to vector<16x96xf32>
    %cst_117 = arith.constant dense<0.000000e+00> : vector<16x96xf32>
    %344 = tpu.matmul %300, %26, %cst_117 {dimension_numbers = #tpu.dot_dimension_numbers<[1], [0], [0], [1], [0, 0, 1, 1], [], []>} : vector<16x32xf32>, vector<32x96xf32>, vector<16x96xf32> -> vector<16x96xf32>
    %345 = vector.broadcast %30 : vector<1x96xf32> to vector<16x96xf32>
    %346 = arith.addf %344, %345 : vector<16x96xf32>
    %cst_118 = arith.constant dense<0.000000e+00> : vector<16x96xf32>
    %347 = tpu.matmul %326, %28, %cst_118 {dimension_numbers = #tpu.dot_dimension_numbers<[1], [0], [0], [1], [0, 0, 1, 1], [], []>} : vector<16x32xf32>, vector<32x96xf32>, vector<16x96xf32> -> vector<16x96xf32>
    %348 = vector.broadcast %32 : vector<1x96xf32> to vector<16x96xf32>
    %349 = arith.addf %347, %348 : vector<16x96xf32>
    %350 = vector.extract_strided_slice %340 {offsets = [0, 0], sizes = [16, 32], strides = [1, 1]} : vector<16x96xf32> to vector<16x32xf32>
    %351 = vector.extract_strided_slice %346 {offsets = [0, 0], sizes = [16, 32], strides = [1, 1]} : vector<16x96xf32> to vector<16x32xf32>
    %352 = arith.addf %350, %351 : vector<16x32xf32>
    %353 = arith.negf %352 : vector<16x32xf32>
    %354 = math.exp %353 : vector<16x32xf32>
    %cst_119 = arith.constant 1.000000e+00 : f32
    %355 = vector.broadcast %cst_119 : f32 to vector<16x32xf32>
    %356 = arith.addf %355, %354 : vector<16x32xf32>
    %357 = arith.divf %355, %356 : vector<16x32xf32>
    %358 = vector.extract_strided_slice %340 {offsets = [0, 32], sizes = [16, 32], strides = [1, 1]} : vector<16x96xf32> to vector<16x32xf32>
    %359 = vector.extract_strided_slice %346 {offsets = [0, 32], sizes = [16, 32], strides = [1, 1]} : vector<16x96xf32> to vector<16x32xf32>
    %360 = arith.addf %358, %359 : vector<16x32xf32>
    %361 = arith.negf %360 : vector<16x32xf32>
    %362 = math.exp %361 : vector<16x32xf32>
    %cst_120 = arith.constant 1.000000e+00 : f32
    %363 = vector.broadcast %cst_120 : f32 to vector<16x32xf32>
    %364 = arith.addf %363, %362 : vector<16x32xf32>
    %365 = arith.divf %363, %364 : vector<16x32xf32>
    %366 = vector.extract_strided_slice %340 {offsets = [0, 64], sizes = [16, 32], strides = [1, 1]} : vector<16x96xf32> to vector<16x32xf32>
    %367 = vector.extract_strided_slice %346 {offsets = [0, 64], sizes = [16, 32], strides = [1, 1]} : vector<16x96xf32> to vector<16x32xf32>
    %368 = arith.mulf %357, %367 : vector<16x32xf32>
    %369 = arith.addf %366, %368 : vector<16x32xf32>
    %370 = math.tanh %369 : vector<16x32xf32>
    %cst_121 = arith.constant 1.000000e+00 : f32
    %371 = vector.broadcast %cst_121 : f32 to vector<16x32xf32>
    %372 = arith.subf %371, %365 : vector<16x32xf32>
    %373 = arith.mulf %372, %370 : vector<16x32xf32>
    %374 = arith.mulf %365, %300 : vector<16x32xf32>
    %375 = arith.addf %373, %374 : vector<16x32xf32>
    %376 = vector.extract_strided_slice %343 {offsets = [0, 0], sizes = [16, 32], strides = [1, 1]} : vector<16x96xf32> to vector<16x32xf32>
    %377 = vector.extract_strided_slice %349 {offsets = [0, 0], sizes = [16, 32], strides = [1, 1]} : vector<16x96xf32> to vector<16x32xf32>
    %378 = arith.addf %376, %377 : vector<16x32xf32>
    %379 = arith.negf %378 : vector<16x32xf32>
    %380 = math.exp %379 : vector<16x32xf32>
    %cst_122 = arith.constant 1.000000e+00 : f32
    %381 = vector.broadcast %cst_122 : f32 to vector<16x32xf32>
    %382 = arith.addf %381, %380 : vector<16x32xf32>
    %383 = arith.divf %381, %382 : vector<16x32xf32>
    %384 = vector.extract_strided_slice %343 {offsets = [0, 32], sizes = [16, 32], strides = [1, 1]} : vector<16x96xf32> to vector<16x32xf32>
    %385 = vector.extract_strided_slice %349 {offsets = [0, 32], sizes = [16, 32], strides = [1, 1]} : vector<16x96xf32> to vector<16x32xf32>
    %386 = arith.addf %384, %385 : vector<16x32xf32>
    %387 = arith.negf %386 : vector<16x32xf32>
    %388 = math.exp %387 : vector<16x32xf32>
    %cst_123 = arith.constant 1.000000e+00 : f32
    %389 = vector.broadcast %cst_123 : f32 to vector<16x32xf32>
    %390 = arith.addf %389, %388 : vector<16x32xf32>
    %391 = arith.divf %389, %390 : vector<16x32xf32>
    %392 = vector.extract_strided_slice %343 {offsets = [0, 64], sizes = [16, 32], strides = [1, 1]} : vector<16x96xf32> to vector<16x32xf32>
    %393 = vector.extract_strided_slice %349 {offsets = [0, 64], sizes = [16, 32], strides = [1, 1]} : vector<16x96xf32> to vector<16x32xf32>
    %394 = arith.mulf %383, %393 : vector<16x32xf32>
    %395 = arith.addf %392, %394 : vector<16x32xf32>
    %396 = math.tanh %395 : vector<16x32xf32>
    %cst_124 = arith.constant 1.000000e+00 : f32
    %397 = vector.broadcast %cst_124 : f32 to vector<16x32xf32>
    %398 = arith.subf %397, %391 : vector<16x32xf32>
    %399 = arith.mulf %398, %396 : vector<16x32xf32>
    %400 = arith.mulf %391, %326 : vector<16x32xf32>
    %401 = arith.addf %399, %400 : vector<16x32xf32>
    %402 = arith.truncf %375 : vector<16x32xf32> to vector<16x32xbf16>
    %403 = arith.index_cast %c4_i32 : i32 to index
    %c0_125 = arith.constant 0 : index
    %c0_126 = arith.constant 0 : index
    %404 = vector.load %arg7[%403, %c0_125, %c0_126] : memref<8x16x32xbf16, #tpu.memory_space<vmem>>, vector<1x16x32xbf16>
    %405 = vector.shape_cast %404 : vector<1x16x32xbf16> to vector<16x32xbf16>
    %406 = vector.shape_cast %402 : vector<16x32xbf16> to vector<1x16x32xbf16>
    tpu.vector_store %arg7[%403, %c0_125, %c0_126], %406 {strides = array<i32>} : memref<8x16x32xbf16, #tpu.memory_space<vmem>>, vector<1x16x32xbf16>,
    %407 = arith.truncf %401 : vector<16x32xf32> to vector<16x32xbf16>
    %408 = arith.index_cast %337 : i32 to index
    %c0_127 = arith.constant 0 : index
    %c0_128 = arith.constant 0 : index
    %409 = vector.load %arg8[%408, %c0_127, %c0_128] : memref<8x16x32xbf16, #tpu.memory_space<vmem>>, vector<1x16x32xbf16>
    %410 = vector.shape_cast %409 : vector<1x16x32xbf16> to vector<16x32xbf16>
    %411 = vector.shape_cast %407 : vector<16x32xbf16> to vector<1x16x32xbf16>
    tpu.vector_store %arg8[%408, %c0_127, %c0_128], %411 {strides = array<i32>} : memref<8x16x32xbf16, #tpu.memory_space<vmem>>, vector<1x16x32xbf16>,
    %c5_i32 = arith.constant 5 : i32
    %c7_i32_129 = arith.constant 7 : i32
    %412 = arith.subi %c7_i32_129, %c5_i32 : i32
    %413 = arith.index_cast %c5_i32 : i32 to index
    %c0_130 = arith.constant 0 : index
    %c0_131 = arith.constant 0 : index
    %414 = vector.load %arg9[%413, %c0_130, %c0_131] : memref<8x16x96xf32, #tpu.memory_space<vmem>>, vector<1x16x96xf32>
    %415 = vector.shape_cast %414 : vector<1x16x96xf32> to vector<16x96xf32>
    %416 = arith.index_cast %412 : i32 to index
    %c0_132 = arith.constant 0 : index
    %c0_133 = arith.constant 0 : index
    %417 = vector.load %arg10[%416, %c0_132, %c0_133] : memref<8x16x96xf32, #tpu.memory_space<vmem>>, vector<1x16x96xf32>
    %418 = vector.shape_cast %417 : vector<1x16x96xf32> to vector<16x96xf32>
    %cst_134 = arith.constant dense<0.000000e+00> : vector<16x96xf32>
    %419 = tpu.matmul %375, %26, %cst_134 {dimension_numbers = #tpu.dot_dimension_numbers<[1], [0], [0], [1], [0, 0, 1, 1], [], []>} : vector<16x32xf32>, vector<32x96xf32>, vector<16x96xf32> -> vector<16x96xf32>
    %420 = vector.broadcast %30 : vector<1x96xf32> to vector<16x96xf32>
    %421 = arith.addf %419, %420 : vector<16x96xf32>
    %cst_135 = arith.constant dense<0.000000e+00> : vector<16x96xf32>
    %422 = tpu.matmul %401, %28, %cst_135 {dimension_numbers = #tpu.dot_dimension_numbers<[1], [0], [0], [1], [0, 0, 1, 1], [], []>} : vector<16x32xf32>, vector<32x96xf32>, vector<16x96xf32> -> vector<16x96xf32>
    %423 = vector.broadcast %32 : vector<1x96xf32> to vector<16x96xf32>
    %424 = arith.addf %422, %423 : vector<16x96xf32>
    %425 = vector.extract_strided_slice %415 {offsets = [0, 0], sizes = [16, 32], strides = [1, 1]} : vector<16x96xf32> to vector<16x32xf32>
    %426 = vector.extract_strided_slice %421 {offsets = [0, 0], sizes = [16, 32], strides = [1, 1]} : vector<16x96xf32> to vector<16x32xf32>
    %427 = arith.addf %425, %426 : vector<16x32xf32>
    %428 = arith.negf %427 : vector<16x32xf32>
    %429 = math.exp %428 : vector<16x32xf32>
    %cst_136 = arith.constant 1.000000e+00 : f32
    %430 = vector.broadcast %cst_136 : f32 to vector<16x32xf32>
    %431 = arith.addf %430, %429 : vector<16x32xf32>
    %432 = arith.divf %430, %431 : vector<16x32xf32>
    %433 = vector.extract_strided_slice %415 {offsets = [0, 32], sizes = [16, 32], strides = [1, 1]} : vector<16x96xf32> to vector<16x32xf32>
    %434 = vector.extract_strided_slice %421 {offsets = [0, 32], sizes = [16, 32], strides = [1, 1]} : vector<16x96xf32> to vector<16x32xf32>
    %435 = arith.addf %433, %434 : vector<16x32xf32>
    %436 = arith.negf %435 : vector<16x32xf32>
    %437 = math.exp %436 : vector<16x32xf32>
    %cst_137 = arith.constant 1.000000e+00 : f32
    %438 = vector.broadcast %cst_137 : f32 to vector<16x32xf32>
    %439 = arith.addf %438, %437 : vector<16x32xf32>
    %440 = arith.divf %438, %439 : vector<16x32xf32>
    %441 = vector.extract_strided_slice %415 {offsets = [0, 64], sizes = [16, 32], strides = [1, 1]} : vector<16x96xf32> to vector<16x32xf32>
    %442 = vector.extract_strided_slice %421 {offsets = [0, 64], sizes = [16, 32], strides = [1, 1]} : vector<16x96xf32> to vector<16x32xf32>
    %443 = arith.mulf %432, %442 : vector<16x32xf32>
    %444 = arith.addf %441, %443 : vector<16x32xf32>
    %445 = math.tanh %444 : vector<16x32xf32>
    %cst_138 = arith.constant 1.000000e+00 : f32
    %446 = vector.broadcast %cst_138 : f32 to vector<16x32xf32>
    %447 = arith.subf %446, %440 : vector<16x32xf32>
    %448 = arith.mulf %447, %445 : vector<16x32xf32>
    %449 = arith.mulf %440, %375 : vector<16x32xf32>
    %450 = arith.addf %448, %449 : vector<16x32xf32>
    %451 = vector.extract_strided_slice %418 {offsets = [0, 0], sizes = [16, 32], strides = [1, 1]} : vector<16x96xf32> to vector<16x32xf32>
    %452 = vector.extract_strided_slice %424 {offsets = [0, 0], sizes = [16, 32], strides = [1, 1]} : vector<16x96xf32> to vector<16x32xf32>
    %453 = arith.addf %451, %452 : vector<16x32xf32>
    %454 = arith.negf %453 : vector<16x32xf32>
    %455 = math.exp %454 : vector<16x32xf32>
    %cst_139 = arith.constant 1.000000e+00 : f32
    %456 = vector.broadcast %cst_139 : f32 to vector<16x32xf32>
    %457 = arith.addf %456, %455 : vector<16x32xf32>
    %458 = arith.divf %456, %457 : vector<16x32xf32>
    %459 = vector.extract_strided_slice %418 {offsets = [0, 32], sizes = [16, 32], strides = [1, 1]} : vector<16x96xf32> to vector<16x32xf32>
    %460 = vector.extract_strided_slice %424 {offsets = [0, 32], sizes = [16, 32], strides = [1, 1]} : vector<16x96xf32> to vector<16x32xf32>
    %461 = arith.addf %459, %460 : vector<16x32xf32>
    %462 = arith.negf %461 : vector<16x32xf32>
    %463 = math.exp %462 : vector<16x32xf32>
    %cst_140 = arith.constant 1.000000e+00 : f32
    %464 = vector.broadcast %cst_140 : f32 to vector<16x32xf32>
    %465 = arith.addf %464, %463 : vector<16x32xf32>
    %466 = arith.divf %464, %465 : vector<16x32xf32>
    %467 = vector.extract_strided_slice %418 {offsets = [0, 64], sizes = [16, 32], strides = [1, 1]} : vector<16x96xf32> to vector<16x32xf32>
    %468 = vector.extract_strided_slice %424 {offsets = [0, 64], sizes = [16, 32], strides = [1, 1]} : vector<16x96xf32> to vector<16x32xf32>
    %469 = arith.mulf %458, %468 : vector<16x32xf32>
    %470 = arith.addf %467, %469 : vector<16x32xf32>
    %471 = math.tanh %470 : vector<16x32xf32>
    %cst_141 = arith.constant 1.000000e+00 : f32
    %472 = vector.broadcast %cst_141 : f32 to vector<16x32xf32>
    %473 = arith.subf %472, %466 : vector<16x32xf32>
    %474 = arith.mulf %473, %471 : vector<16x32xf32>
    %475 = arith.mulf %466, %401 : vector<16x32xf32>
    %476 = arith.addf %474, %475 : vector<16x32xf32>
    %477 = arith.truncf %450 : vector<16x32xf32> to vector<16x32xbf16>
    %478 = arith.index_cast %c5_i32 : i32 to index
    %c0_142 = arith.constant 0 : index
    %c0_143 = arith.constant 0 : index
    %479 = vector.load %arg7[%478, %c0_142, %c0_143] : memref<8x16x32xbf16, #tpu.memory_space<vmem>>, vector<1x16x32xbf16>
    %480 = vector.shape_cast %479 : vector<1x16x32xbf16> to vector<16x32xbf16>
    %481 = vector.shape_cast %477 : vector<16x32xbf16> to vector<1x16x32xbf16>
    tpu.vector_store %arg7[%478, %c0_142, %c0_143], %481 {strides = array<i32>} : memref<8x16x32xbf16, #tpu.memory_space<vmem>>, vector<1x16x32xbf16>,
    %482 = arith.truncf %476 : vector<16x32xf32> to vector<16x32xbf16>
    %483 = arith.index_cast %412 : i32 to index
    %c0_144 = arith.constant 0 : index
    %c0_145 = arith.constant 0 : index
    %484 = vector.load %arg8[%483, %c0_144, %c0_145] : memref<8x16x32xbf16, #tpu.memory_space<vmem>>, vector<1x16x32xbf16>
    %485 = vector.shape_cast %484 : vector<1x16x32xbf16> to vector<16x32xbf16>
    %486 = vector.shape_cast %482 : vector<16x32xbf16> to vector<1x16x32xbf16>
    tpu.vector_store %arg8[%483, %c0_144, %c0_145], %486 {strides = array<i32>} : memref<8x16x32xbf16, #tpu.memory_space<vmem>>, vector<1x16x32xbf16>,
    %c6_i32 = arith.constant 6 : i32
    %c7_i32_146 = arith.constant 7 : i32
    %487 = arith.subi %c7_i32_146, %c6_i32 : i32
    %488 = arith.index_cast %c6_i32 : i32 to index
    %c0_147 = arith.constant 0 : index
    %c0_148 = arith.constant 0 : index
    %489 = vector.load %arg9[%488, %c0_147, %c0_148] : memref<8x16x96xf32, #tpu.memory_space<vmem>>, vector<1x16x96xf32>
    %490 = vector.shape_cast %489 : vector<1x16x96xf32> to vector<16x96xf32>
    %491 = arith.index_cast %487 : i32 to index
    %c0_149 = arith.constant 0 : index
    %c0_150 = arith.constant 0 : index
    %492 = vector.load %arg10[%491, %c0_149, %c0_150] : memref<8x16x96xf32, #tpu.memory_space<vmem>>, vector<1x16x96xf32>
    %493 = vector.shape_cast %492 : vector<1x16x96xf32> to vector<16x96xf32>
    %cst_151 = arith.constant dense<0.000000e+00> : vector<16x96xf32>
    %494 = tpu.matmul %450, %26, %cst_151 {dimension_numbers = #tpu.dot_dimension_numbers<[1], [0], [0], [1], [0, 0, 1, 1], [], []>} : vector<16x32xf32>, vector<32x96xf32>, vector<16x96xf32> -> vector<16x96xf32>
    %495 = vector.broadcast %30 : vector<1x96xf32> to vector<16x96xf32>
    %496 = arith.addf %494, %495 : vector<16x96xf32>
    %cst_152 = arith.constant dense<0.000000e+00> : vector<16x96xf32>
    %497 = tpu.matmul %476, %28, %cst_152 {dimension_numbers = #tpu.dot_dimension_numbers<[1], [0], [0], [1], [0, 0, 1, 1], [], []>} : vector<16x32xf32>, vector<32x96xf32>, vector<16x96xf32> -> vector<16x96xf32>
    %498 = vector.broadcast %32 : vector<1x96xf32> to vector<16x96xf32>
    %499 = arith.addf %497, %498 : vector<16x96xf32>
    %500 = vector.extract_strided_slice %490 {offsets = [0, 0], sizes = [16, 32], strides = [1, 1]} : vector<16x96xf32> to vector<16x32xf32>
    %501 = vector.extract_strided_slice %496 {offsets = [0, 0], sizes = [16, 32], strides = [1, 1]} : vector<16x96xf32> to vector<16x32xf32>
    %502 = arith.addf %500, %501 : vector<16x32xf32>
    %503 = arith.negf %502 : vector<16x32xf32>
    %504 = math.exp %503 : vector<16x32xf32>
    %cst_153 = arith.constant 1.000000e+00 : f32
    %505 = vector.broadcast %cst_153 : f32 to vector<16x32xf32>
    %506 = arith.addf %505, %504 : vector<16x32xf32>
    %507 = arith.divf %505, %506 : vector<16x32xf32>
    %508 = vector.extract_strided_slice %490 {offsets = [0, 32], sizes = [16, 32], strides = [1, 1]} : vector<16x96xf32> to vector<16x32xf32>
    %509 = vector.extract_strided_slice %496 {offsets = [0, 32], sizes = [16, 32], strides = [1, 1]} : vector<16x96xf32> to vector<16x32xf32>
    %510 = arith.addf %508, %509 : vector<16x32xf32>
    %511 = arith.negf %510 : vector<16x32xf32>
    %512 = math.exp %511 : vector<16x32xf32>
    %cst_154 = arith.constant 1.000000e+00 : f32
    %513 = vector.broadcast %cst_154 : f32 to vector<16x32xf32>
    %514 = arith.addf %513, %512 : vector<16x32xf32>
    %515 = arith.divf %513, %514 : vector<16x32xf32>
    %516 = vector.extract_strided_slice %490 {offsets = [0, 64], sizes = [16, 32], strides = [1, 1]} : vector<16x96xf32> to vector<16x32xf32>
    %517 = vector.extract_strided_slice %496 {offsets = [0, 64], sizes = [16, 32], strides = [1, 1]} : vector<16x96xf32> to vector<16x32xf32>
    %518 = arith.mulf %507, %517 : vector<16x32xf32>
    %519 = arith.addf %516, %518 : vector<16x32xf32>
    %520 = math.tanh %519 : vector<16x32xf32>
    %cst_155 = arith.constant 1.000000e+00 : f32
    %521 = vector.broadcast %cst_155 : f32 to vector<16x32xf32>
    %522 = arith.subf %521, %515 : vector<16x32xf32>
    %523 = arith.mulf %522, %520 : vector<16x32xf32>
    %524 = arith.mulf %515, %450 : vector<16x32xf32>
    %525 = arith.addf %523, %524 : vector<16x32xf32>
    %526 = vector.extract_strided_slice %493 {offsets = [0, 0], sizes = [16, 32], strides = [1, 1]} : vector<16x96xf32> to vector<16x32xf32>
    %527 = vector.extract_strided_slice %499 {offsets = [0, 0], sizes = [16, 32], strides = [1, 1]} : vector<16x96xf32> to vector<16x32xf32>
    %528 = arith.addf %526, %527 : vector<16x32xf32>
    %529 = arith.negf %528 : vector<16x32xf32>
    %530 = math.exp %529 : vector<16x32xf32>
    %cst_156 = arith.constant 1.000000e+00 : f32
    %531 = vector.broadcast %cst_156 : f32 to vector<16x32xf32>
    %532 = arith.addf %531, %530 : vector<16x32xf32>
    %533 = arith.divf %531, %532 : vector<16x32xf32>
    %534 = vector.extract_strided_slice %493 {offsets = [0, 32], sizes = [16, 32], strides = [1, 1]} : vector<16x96xf32> to vector<16x32xf32>
    %535 = vector.extract_strided_slice %499 {offsets = [0, 32], sizes = [16, 32], strides = [1, 1]} : vector<16x96xf32> to vector<16x32xf32>
    %536 = arith.addf %534, %535 : vector<16x32xf32>
    %537 = arith.negf %536 : vector<16x32xf32>
    %538 = math.exp %537 : vector<16x32xf32>
    %cst_157 = arith.constant 1.000000e+00 : f32
    %539 = vector.broadcast %cst_157 : f32 to vector<16x32xf32>
    %540 = arith.addf %539, %538 : vector<16x32xf32>
    %541 = arith.divf %539, %540 : vector<16x32xf32>
    %542 = vector.extract_strided_slice %493 {offsets = [0, 64], sizes = [16, 32], strides = [1, 1]} : vector<16x96xf32> to vector<16x32xf32>
    %543 = vector.extract_strided_slice %499 {offsets = [0, 64], sizes = [16, 32], strides = [1, 1]} : vector<16x96xf32> to vector<16x32xf32>
    %544 = arith.mulf %533, %543 : vector<16x32xf32>
    %545 = arith.addf %542, %544 : vector<16x32xf32>
    %546 = math.tanh %545 : vector<16x32xf32>
    %cst_158 = arith.constant 1.000000e+00 : f32
    %547 = vector.broadcast %cst_158 : f32 to vector<16x32xf32>
    %548 = arith.subf %547, %541 : vector<16x32xf32>
    %549 = arith.mulf %548, %546 : vector<16x32xf32>
    %550 = arith.mulf %541, %476 : vector<16x32xf32>
    %551 = arith.addf %549, %550 : vector<16x32xf32>
    %552 = arith.truncf %525 : vector<16x32xf32> to vector<16x32xbf16>
    %553 = arith.index_cast %c6_i32 : i32 to index
    %c0_159 = arith.constant 0 : index
    %c0_160 = arith.constant 0 : index
    %554 = vector.load %arg7[%553, %c0_159, %c0_160] : memref<8x16x32xbf16, #tpu.memory_space<vmem>>, vector<1x16x32xbf16>
    %555 = vector.shape_cast %554 : vector<1x16x32xbf16> to vector<16x32xbf16>
    %556 = vector.shape_cast %552 : vector<16x32xbf16> to vector<1x16x32xbf16>
    tpu.vector_store %arg7[%553, %c0_159, %c0_160], %556 {strides = array<i32>} : memref<8x16x32xbf16, #tpu.memory_space<vmem>>, vector<1x16x32xbf16>,
    %557 = arith.truncf %551 : vector<16x32xf32> to vector<16x32xbf16>
    %558 = arith.index_cast %487 : i32 to index
    %c0_161 = arith.constant 0 : index
    %c0_162 = arith.constant 0 : index
    %559 = vector.load %arg8[%558, %c0_161, %c0_162] : memref<8x16x32xbf16, #tpu.memory_space<vmem>>, vector<1x16x32xbf16>
    %560 = vector.shape_cast %559 : vector<1x16x32xbf16> to vector<16x32xbf16>
    %561 = vector.shape_cast %557 : vector<16x32xbf16> to vector<1x16x32xbf16>
    tpu.vector_store %arg8[%558, %c0_161, %c0_162], %561 {strides = array<i32>} : memref<8x16x32xbf16, #tpu.memory_space<vmem>>, vector<1x16x32xbf16>,
    %c7_i32_163 = arith.constant 7 : i32
    %c7_i32_164 = arith.constant 7 : i32
    %562 = arith.subi %c7_i32_164, %c7_i32_163 : i32
    %563 = arith.index_cast %c7_i32_163 : i32 to index
    %c0_165 = arith.constant 0 : index
    %c0_166 = arith.constant 0 : index
    %564 = vector.load %arg9[%563, %c0_165, %c0_166] : memref<8x16x96xf32, #tpu.memory_space<vmem>>, vector<1x16x96xf32>
    %565 = vector.shape_cast %564 : vector<1x16x96xf32> to vector<16x96xf32>
    %566 = arith.index_cast %562 : i32 to index
    %c0_167 = arith.constant 0 : index
    %c0_168 = arith.constant 0 : index
    %567 = vector.load %arg10[%566, %c0_167, %c0_168] : memref<8x16x96xf32, #tpu.memory_space<vmem>>, vector<1x16x96xf32>
    %568 = vector.shape_cast %567 : vector<1x16x96xf32> to vector<16x96xf32>
    %cst_169 = arith.constant dense<0.000000e+00> : vector<16x96xf32>
    %569 = tpu.matmul %525, %26, %cst_169 {dimension_numbers = #tpu.dot_dimension_numbers<[1], [0], [0], [1], [0, 0, 1, 1], [], []>} : vector<16x32xf32>, vector<32x96xf32>, vector<16x96xf32> -> vector<16x96xf32>
    %570 = vector.broadcast %30 : vector<1x96xf32> to vector<16x96xf32>
    %571 = arith.addf %569, %570 : vector<16x96xf32>
    %cst_170 = arith.constant dense<0.000000e+00> : vector<16x96xf32>
    %572 = tpu.matmul %551, %28, %cst_170 {dimension_numbers = #tpu.dot_dimension_numbers<[1], [0], [0], [1], [0, 0, 1, 1], [], []>} : vector<16x32xf32>, vector<32x96xf32>, vector<16x96xf32> -> vector<16x96xf32>
    %573 = vector.broadcast %32 : vector<1x96xf32> to vector<16x96xf32>
    %574 = arith.addf %572, %573 : vector<16x96xf32>
    %575 = vector.extract_strided_slice %565 {offsets = [0, 0], sizes = [16, 32], strides = [1, 1]} : vector<16x96xf32> to vector<16x32xf32>
    %576 = vector.extract_strided_slice %571 {offsets = [0, 0], sizes = [16, 32], strides = [1, 1]} : vector<16x96xf32> to vector<16x32xf32>
    %577 = arith.addf %575, %576 : vector<16x32xf32>
    %578 = arith.negf %577 : vector<16x32xf32>
    %579 = math.exp %578 : vector<16x32xf32>
    %cst_171 = arith.constant 1.000000e+00 : f32
    %580 = vector.broadcast %cst_171 : f32 to vector<16x32xf32>
    %581 = arith.addf %580, %579 : vector<16x32xf32>
    %582 = arith.divf %580, %581 : vector<16x32xf32>
    %583 = vector.extract_strided_slice %565 {offsets = [0, 32], sizes = [16, 32], strides = [1, 1]} : vector<16x96xf32> to vector<16x32xf32>
    %584 = vector.extract_strided_slice %571 {offsets = [0, 32], sizes = [16, 32], strides = [1, 1]} : vector<16x96xf32> to vector<16x32xf32>
    %585 = arith.addf %583, %584 : vector<16x32xf32>
    %586 = arith.negf %585 : vector<16x32xf32>
    %587 = math.exp %586 : vector<16x32xf32>
    %cst_172 = arith.constant 1.000000e+00 : f32
    %588 = vector.broadcast %cst_172 : f32 to vector<16x32xf32>
    %589 = arith.addf %588, %587 : vector<16x32xf32>
    %590 = arith.divf %588, %589 : vector<16x32xf32>
    %591 = vector.extract_strided_slice %565 {offsets = [0, 64], sizes = [16, 32], strides = [1, 1]} : vector<16x96xf32> to vector<16x32xf32>
    %592 = vector.extract_strided_slice %571 {offsets = [0, 64], sizes = [16, 32], strides = [1, 1]} : vector<16x96xf32> to vector<16x32xf32>
    %593 = arith.mulf %582, %592 : vector<16x32xf32>
    %594 = arith.addf %591, %593 : vector<16x32xf32>
    %595 = math.tanh %594 : vector<16x32xf32>
    %cst_173 = arith.constant 1.000000e+00 : f32
    %596 = vector.broadcast %cst_173 : f32 to vector<16x32xf32>
    %597 = arith.subf %596, %590 : vector<16x32xf32>
    %598 = arith.mulf %597, %595 : vector<16x32xf32>
    %599 = arith.mulf %590, %525 : vector<16x32xf32>
    %600 = arith.addf %598, %599 : vector<16x32xf32>
    %601 = vector.extract_strided_slice %568 {offsets = [0, 0], sizes = [16, 32], strides = [1, 1]} : vector<16x96xf32> to vector<16x32xf32>
    %602 = vector.extract_strided_slice %574 {offsets = [0, 0], sizes = [16, 32], strides = [1, 1]} : vector<16x96xf32> to vector<16x32xf32>
    %603 = arith.addf %601, %602 : vector<16x32xf32>
    %604 = arith.negf %603 : vector<16x32xf32>
    %605 = math.exp %604 : vector<16x32xf32>
    %cst_174 = arith.constant 1.000000e+00 : f32
    %606 = vector.broadcast %cst_174 : f32 to vector<16x32xf32>
    %607 = arith.addf %606, %605 : vector<16x32xf32>
    %608 = arith.divf %606, %607 : vector<16x32xf32>
    %609 = vector.extract_strided_slice %568 {offsets = [0, 32], sizes = [16, 32], strides = [1, 1]} : vector<16x96xf32> to vector<16x32xf32>
    %610 = vector.extract_strided_slice %574 {offsets = [0, 32], sizes = [16, 32], strides = [1, 1]} : vector<16x96xf32> to vector<16x32xf32>
    %611 = arith.addf %609, %610 : vector<16x32xf32>
    %612 = arith.negf %611 : vector<16x32xf32>
    %613 = math.exp %612 : vector<16x32xf32>
    %cst_175 = arith.constant 1.000000e+00 : f32
    %614 = vector.broadcast %cst_175 : f32 to vector<16x32xf32>
    %615 = arith.addf %614, %613 : vector<16x32xf32>
    %616 = arith.divf %614, %615 : vector<16x32xf32>
    %617 = vector.extract_strided_slice %568 {offsets = [0, 64], sizes = [16, 32], strides = [1, 1]} : vector<16x96xf32> to vector<16x32xf32>
    %618 = vector.extract_strided_slice %574 {offsets = [0, 64], sizes = [16, 32], strides = [1, 1]} : vector<16x96xf32> to vector<16x32xf32>
    %619 = arith.mulf %608, %618 : vector<16x32xf32>
    %620 = arith.addf %617, %619 : vector<16x32xf32>
    %621 = math.tanh %620 : vector<16x32xf32>
    %cst_176 = arith.constant 1.000000e+00 : f32
    %622 = vector.broadcast %cst_176 : f32 to vector<16x32xf32>
    %623 = arith.subf %622, %616 : vector<16x32xf32>
    %624 = arith.mulf %623, %621 : vector<16x32xf32>
    %625 = arith.mulf %616, %551 : vector<16x32xf32>
    %626 = arith.addf %624, %625 : vector<16x32xf32>
    %627 = arith.truncf %600 : vector<16x32xf32> to vector<16x32xbf16>
    %628 = arith.index_cast %c7_i32_163 : i32 to index
    %c0_177 = arith.constant 0 : index
    %c0_178 = arith.constant 0 : index
    %629 = vector.load %arg7[%628, %c0_177, %c0_178] : memref<8x16x32xbf16, #tpu.memory_space<vmem>>, vector<1x16x32xbf16>
    %630 = vector.shape_cast %629 : vector<1x16x32xbf16> to vector<16x32xbf16>
    %631 = vector.shape_cast %627 : vector<16x32xbf16> to vector<1x16x32xbf16>
    tpu.vector_store %arg7[%628, %c0_177, %c0_178], %631 {strides = array<i32>} : memref<8x16x32xbf16, #tpu.memory_space<vmem>>, vector<1x16x32xbf16>,
    %632 = arith.truncf %626 : vector<16x32xf32> to vector<16x32xbf16>
    %633 = arith.index_cast %562 : i32 to index
    %c0_179 = arith.constant 0 : index
    %c0_180 = arith.constant 0 : index
    %634 = vector.load %arg8[%633, %c0_179, %c0_180] : memref<8x16x32xbf16, #tpu.memory_space<vmem>>, vector<1x16x32xbf16>
    %635 = vector.shape_cast %634 : vector<1x16x32xbf16> to vector<16x32xbf16>
    %636 = vector.shape_cast %632 : vector<16x32xbf16> to vector<1x16x32xbf16>
    tpu.vector_store %arg8[%633, %c0_179, %c0_180], %636 {strides = array<i32>} : memref<8x16x32xbf16, #tpu.memory_space<vmem>>, vector<1x16x32xbf16>,
    %c8_i32 = arith.constant 8 : i32
    %c0_181 = arith.constant 0 : index
    %c0_182 = arith.constant 0 : index
    %c0_183 = arith.constant 0 : index
    %637 = vector.load %arg11[%c0_181, %c0_182, %c0_183] : memref<2x16x32xf32, #tpu.memory_space<vmem>>, vector<1x16x32xf32>
    %638 = vector.shape_cast %637 : vector<1x16x32xf32> to vector<16x32xf32>
    %639 = vector.shape_cast %600 : vector<16x32xf32> to vector<1x16x32xf32>
    tpu.vector_store %arg11[%c0_181, %c0_182, %c0_183], %639 {strides = array<i32>} : memref<2x16x32xf32, #tpu.memory_space<vmem>>, vector<1x16x32xf32>,
    %c1_184 = arith.constant 1 : index
    %c0_185 = arith.constant 0 : index
    %c0_186 = arith.constant 0 : index
    %640 = vector.load %arg11[%c1_184, %c0_185, %c0_186] : memref<2x16x32xf32, #tpu.memory_space<vmem>>, vector<1x16x32xf32>
    %641 = vector.shape_cast %640 : vector<1x16x32xf32> to vector<16x32xf32>
    %642 = vector.shape_cast %626 : vector<16x32xf32> to vector<1x16x32xf32>
    tpu.vector_store %arg11[%c1_184, %c0_185, %c0_186], %642 {strides = array<i32>} : memref<2x16x32xf32, #tpu.memory_space<vmem>>, vector<1x16x32xf32>,
    return
  }
  func.func @transform_0(%arg0: i32) -> (i32, i32, i32) {
    %c0_i32 = arith.constant 0 : i32
    %c0_i32_0 = arith.constant 0 : i32
    %c0_i32_1 = arith.constant 0 : i32
    return %arg0, %c0_i32, %c0_i32_0 : i32, i32, i32
  }
  func.func @transform_1(%arg0: i32) -> (i32, i32, i32) {
    %c0_i32 = arith.constant 0 : i32
    %0 = arith.subi %c0_i32, %arg0 : i32
    %c0_i32_0 = arith.constant 0 : i32
    %c0_i32_1 = arith.constant 0 : i32
    %c0_i32_2 = arith.constant 0 : i32
    return %0, %c0_i32_0, %c0_i32_1 : i32, i32, i32
  }
  func.func @transform_2(%arg0: i32) -> (i32, i32, i32, i32) {
    %c0_i32 = arith.constant 0 : i32
    %c0_i32_0 = arith.constant 0 : i32
    %c0_i32_1 = arith.constant 0 : i32
    %c0_i32_2 = arith.constant 0 : i32
    %c0_i32_3 = arith.constant 0 : i32
    return %c0_i32, %c0_i32_0, %c0_i32_1, %c0_i32_2 : i32, i32, i32, i32
  }
  func.func @transform_3(%arg0: i32) -> (i32, i32, i32) {
    %c0_i32 = arith.constant 0 : i32
    %c0_i32_0 = arith.constant 0 : i32
    %c0_i32_1 = arith.constant 0 : i32
    %c0_i32_2 = arith.constant 0 : i32
    return %c0_i32, %c0_i32_0, %c0_i32_1 : i32, i32, i32
  }
  func.func @transform_4(%arg0: i32) -> (i32, i32, i32) {
    %c0_i32 = arith.constant 0 : i32
    %c0_i32_0 = arith.constant 0 : i32
    %c0_i32_1 = arith.constant 0 : i32
    %c0_i32_2 = arith.constant 0 : i32
    return %c0_i32, %c0_i32_0, %c0_i32_1 : i32, i32, i32
  }
  func.func @transform_5(%arg0: i32) -> (i32, i32, i32) {
    %c0_i32 = arith.constant 0 : i32
    %c0_i32_0 = arith.constant 0 : i32
    %c0_i32_1 = arith.constant 0 : i32
    %c0_i32_2 = arith.constant 0 : i32
    return %c0_i32, %c0_i32_0, %c0_i32_1 : i32, i32, i32
  }
  func.func @transform_6(%arg0: i32) -> (i32, i32, i32) {
    %c0_i32 = arith.constant 0 : i32
    %c0_i32_0 = arith.constant 0 : i32
    %c0_i32_1 = arith.constant 0 : i32
    return %arg0, %c0_i32, %c0_i32_0 : i32, i32, i32
  }
  func.func @transform_7(%arg0: i32) -> (i32, i32, i32) {
    %c0_i32 = arith.constant 0 : i32
    %0 = arith.subi %c0_i32, %arg0 : i32
    %c0_i32_0 = arith.constant 0 : i32
    %c0_i32_1 = arith.constant 0 : i32
    %c0_i32_2 = arith.constant 0 : i32
    return %0, %c0_i32_0, %c0_i32_1 : i32, i32, i32
  }
}

</mosaic_0001>

<bundles_post_ra>
// kernel: tpu_custom_call.1
= control target key start
LH: loop header
LB: loop body
LE: loop exit
PB: predicated region body
PF: predicated region fallthrough
CT: control target
= control target key end

     0   :  { %13 = vsyncpa [#allocation6], 0  ;;  %s4914_s0 = inlined_call_operand.hbm [shape: bf16[8,16,32], index: 0, kind: input, shape index: {}]   ;;  %s4915_s1 = inlined_call_operand.hbm [shape: bf16[8,16,32], index: 1, kind: input, shape index: {}]   ;;  %s4916_s2 = inlined_call_operand.hbm [shape: bf16[2,1,32,96], index: 2, kind: input, shape index: {}]   ;;  %s4917_s3 = inlined_call_operand.vmem [shape: f32[2,1,96], index: 3, kind: input, shape index: {}]   ;;  %s4918_s4 = inlined_call_operand.hbm [shape: f32[2,32,96], index: 4, kind: input, shape index: {}]   ;;  %s4919_s5 = inlined_call_operand.vmem [shape: f32[2,1,96], index: 5, kind: input, shape index: {}]   ;;  %s4920_s6 = inlined_call_operand.hbm [shape: bf16[8,16,32], index: 6, kind: output, shape index: {0}]   ;;  %s4921_s7 = inlined_call_operand.hbm [shape: bf16[8,16,32], index: 7, kind: output, shape index: {1}]  }
   0x1   :  { %14 = vsyncpa [#allocation9], 0 }
   0x2   :  { %15 = vsyncpa [#allocation12], 0 }
   0x3   :  { %16 = vsyncpa [#allocation7], 0 }
   0x4   :  { %17 = vsyncpa [#allocation15], 0  ;;  %s4110_s24 = smov [#allocation8]   ;;  %s4111_s26 = smov [#allocation5]  }
   0x5   :  { %s40_s25 = sshll.u32 %s4110_s24, 4  ;;  %s23_s27 = sshll.u32 %s4111_s26, 4  ;;  %s41_s25 = int_to_ptr.vmem [resolvable:$true] %s40_s25  ;;  %s4163_s27 = int_to_ptr.vmem [resolvable:$true] %s23_s27 }
   0x6   :  { %s3968_s30 = scalar_lea.hbm %s4915_s1, 1024 }
   0x7   :  { %p3969_p0 = scmp.ne.s32.totalorder %s4915_s1, %s3968_s30  ;;  %p3972_p1 = scmp.lt.u32.totalorder %s3968_s30, %s4915_s1 }
   0x9   :  { %p3974_p2 = pnand %p3972_p1, %p3969_p0 }
   0xb   :  { %3977 = shalt.err (!%p3974_p2)
}
   0xc   :  { %s3978_s12 = scalar_lea.vmem %s41_s25, 1024  ;;  %p3983_p4 = scmp.lt.s32.totalorder %s41_s25, %s41_s25 }
   0xd   :  { %p3979_p3 = scmp.ne.s32.totalorder %s41_s25, %s3978_s12  ;;  %p3984_p5 = scmp.lt.s32.totalorder %s3978_s12, %s3978_s12 }
   0xf   :  { %p3985_p6 = por %p3984_p5, %p3983_p4 }
  0x11   :  { %p3986_p7 = pnand %p3985_p6, %p3979_p3 }
  0x13   :  { %3989 = shalt.err (!%p3986_p7)
}
  0x14   :  { %s4112_s13 = smov 64   ;;  %s4113_s14 = smov 4  }
  0x15   :  { %46 = dma.hbm_to_vmem [thread:$0]  %s4915_s1, 1024, %s41_s25, [#allocation9], %s4112_s13, %s4112_s13, %s4113_s14  }
  0x16   :  { %s3990_s19 = scalar_lea.hbm %s4914_s0, 1024 }
  0x17   :  { %p3991_p8 = scmp.ne.s32.totalorder %s4914_s0, %s3990_s19  ;;  %p3994_p9 = scmp.lt.u32.totalorder %s3990_s19, %s4914_s0 }
  0x19   :  { %p3996_p10 = pnand %p3994_p9, %p3991_p8 }
  0x1b   :  { %3999 = shalt.err (!%p3996_p10)
}
  0x1c   :  { %s4000_s24 = scalar_lea.vmem %s4163_s27, 1024  ;;  %p4005_p12 = scmp.lt.s32.totalorder %s4163_s27, %s4163_s27 }
  0x1d   :  { %p4001_p11 = scmp.ne.s32.totalorder %s4163_s27, %s4000_s24  ;;  %p4006_p13 = scmp.lt.s32.totalorder %s4000_s24, %s4000_s24 }
  0x1f   :  { %p4007_p0 = por %p4006_p13, %p4005_p12 }
  0x21   :  { %p4008_p1 = pnand %p4007_p0, %p4001_p11 }
  0x23   :  { %4011 = shalt.err (!%p4008_p1)
}
  0x24   :  { %29 = dma.hbm_to_vmem [thread:$0]  %s4914_s0, 1024, %s4163_s27, [#allocation6], %s4112_s13, %s4112_s13, %s4113_s14  }
  0x25   :  { %s4114_s26 = smov [#allocation10]   ;;  %s4115_s29 = smov [#allocation11]  }
  0x26   :  { %s52_s28 = sshll.u32 %s4114_s26, 4  ;;  %s66_s30 = sshll.u32 %s4115_s29, 4  ;;  %s53_s28 = int_to_ptr.vmem [resolvable:$true] %s52_s28  ;;  %s4200_s30 = int_to_ptr.vmem [resolvable:$true] %s66_s30 }
  0x27   :  { %s4012_s10 = scalar_lea.hbm %s4916_s2, 512 }
  0x28   :  { %p4013_p2 = scmp.ne.s32.totalorder %s4916_s2, %s4012_s10  ;;  %p4016_p3 = scmp.lt.u32.totalorder %s4012_s10, %s4916_s2 }
  0x2a   :  { %p4018_p4 = pnand %p4016_p3, %p4013_p2 }
  0x2c   :  { %4021 = shalt.err (!%p4018_p4)
}
  0x2d   :  { %s4022_s0 = scalar_lea.vmem %s53_s28, 512  ;;  %p4027_p6 = scmp.lt.s32.totalorder %s53_s28, %s53_s28 }
  0x2e   :  { %p4023_p5 = scmp.ne.s32.totalorder %s53_s28, %s4022_s0  ;;  %p4028_p7 = scmp.lt.s32.totalorder %s4022_s0, %s4022_s0 }
  0x30   :  { %p4029_p8 = por %p4028_p7, %p4027_p6 }
  0x32   :  { %p4030_p9 = pnand %p4029_p8, %p4023_p5 }
  0x34   :  { %4033 = shalt.err (!%p4030_p9)
}
  0x35   :  { %58 = dma.hbm_to_vmem [thread:$0]  %s4916_s2, 512, %s53_s28, [#allocation9], %s4112_s13, %s4112_s13, %s4113_s14  }
  0x36   :  { %s4034_s20 = scalar_lea.hbm %s4918_s4, 1024 }
  0x37   :  { %p4035_p10 = scmp.ne.s32.totalorder %s4918_s4, %s4034_s20  ;;  %p4038_p11 = scmp.lt.u32.totalorder %s4034_s20, %s4918_s4 }
  0x39   :  { %p4040_p12 = pnand %p4038_p11, %p4035_p10 }
  0x3b   :  { %4043 = shalt.err (!%p4040_p12)
}
  0x3c   :  { %s4044_s1 = scalar_lea.vmem %s4200_s30, 1024  ;;  %p4049_p0 = scmp.lt.s32.totalorder %s4200_s30, %s4200_s30 }
  0x3d   :  { %p4045_p13 = scmp.ne.s32.totalorder %s4200_s30, %s4044_s1  ;;  %p4050_p1 = scmp.lt.s32.totalorder %s4044_s1, %s4044_s1 }
  0x3f   :  { %p4051_p2 = por %p4050_p1, %p4049_p0 }
  0x41   :  { %p4052_p3 = pnand %p4051_p2, %p4045_p13 }
  0x43   :  { %4055 = shalt.err (!%p4052_p3)
}
  0x44   :  { %s4116_s2 = smov 128   ;;  %s4117_s25 = smov 8  }
  0x45   :  { %72 = dma.hbm_to_vmem [thread:$0]  %s4918_s4, 1024, %s4200_s30, [#allocation12], %s4116_s2, %s4116_s2, %s4117_s25  }
  0x46   :  { %4100 = dma.done.wait [#allocation6], 1024  }
  0x47   :  { %4101 = vsyncadd [#allocation6], 4294966272 }
  0x48   :  { %4102 = dma.done.wait [#allocation9], 1536  }
  0x49   :  { %4103 = vsyncadd [#allocation9], 4294965760 }
  0x4a   :  { %4104 = dma.done.wait [#allocation12], 1024  }
  0x4b   :  { %4105 = vsyncadd [#allocation12], 4294966272  ;;  %vm96_vm0 = vcmask 261120   ;;  %v4118_v0 = vmov 0.0   ;;  %v3754_v1 = vld [vmem:[#allocation10] sm:$0xff]   ;;  %v3755_v2 = vld [vmem:[#allocation10 + $0x8] sm:$0xff]  }
  0x4c   :  { %97 = vst.msk [vmem:[#allocation4] sm:$0xff] %vm96_vm0, %v4118_v0  ;;  %98 = vst.msk [vmem:[#allocation4 + $0x8] sm:$0xff] %vm96_vm0, %v4118_v0  ;;  %3397 = vmatprep.subr.bf16.mxu0 %v3754_v1  ;;  %v3756_v3 = vld [vmem:[#allocation10 + $0x10] sm:$0xff]   ;;  %v3757_v4 = vld [vmem:[#allocation5] sm:$0xff]   ;;  %vm302_vm1 = vcmask 785408   ;;  %s4119_s12 = smov 32  }
  0x4d   :  { %99 = vst.msk [vmem:[#allocation4 + $0x10] sm:$0xff] %vm96_vm0, %v4118_v0  ;;  %100 = vst.msk [vmem:[#allocation4 + $0x18] sm:$0xff] %vm96_vm0, %v4118_v0  ;;  %3398 = vmatpush3.bf16.msra.mxu0 %v3754_v1  ;;  %3417 = vmatprep.subr.bf16.mxu1 %v3756_v3  ;;  %v3758_v5 = vld [vmem:[#allocation5 + $0x8] sm:$0xff]   ;;  %v3759_v6 = vld [vmem:[#allocation10 + $0x18] sm:$0xff]   ;;  %s4120_s15 = smov 96   ;;  %vm861_vm2 = vcmask 257024  }
  0x4e   :  { %3399 = vmatprep.subr.bf16.mxu0 %v3755_v2  ;;  %3418 = vmatpush3.bf16.msra.mxu1 %v3756_v3  ;;  %v537_v7 = vld [vmem:[#allocation11] sm:$0xff]  ;;  %v538_v8 = vld [vmem:[#allocation11 + $0x8] sm:$0xff]  ;;  %v3762_v12 = vld [vmem:[#allocation5 + $0x10] sm:$0xff]   ;;  %s4122_s19 = smov [#allocation14]  }
  0x4f   :  { %3401 = vmatprep.mubr.msk.bf16.mxu0 %vm96_vm0, %v3757_v4  ;;  %3419 = vmatprep.subr.bf16.mxu1 %v3759_v6  ;;  %v4239_v9 = vpack.c.bf16 %v538_v8, %v537_v7  ;;  %v3760_v10 = vld [vmem:[#allocation8] sm:$0xff]   ;;  %v3761_v11 = vld [vmem:[#allocation8 + $0x8] sm:$0xff]   ;;  %v3764_v13 = vld [vmem:[#allocation8 + $0x10] sm:$0xff]   ;;  %s3089_s20 = sshll.u32 %s4122_s19, 4  ;;  %s3090_s20 = int_to_ptr.vmem [resolvable:$true] %s3089_s20 }
  0x50   :  { %3421 = vmatprep.mubr.msk.bf16.mxu1 %vm96_vm0, %v3760_v10  ;;  %v542_v14 = vld [vmem:[#allocation11 + $0x20] sm:$0xff]  ;;  %v543_v15 = vld [vmem:[#allocation11 + $0x28] sm:$0xff]  ;;  %v3763_v16 = vld [vmem:[#allocation5 + $0x18] sm:$0xff]  }
  0x51   :  { %3400 = vmatpush3.bf16.msra.mxu0 %v3755_v2  ;;  %v4248_v17 = vpack.c.bf16 %v543_v15, %v542_v14  ;;  %v3766_v18 = vld [vmem:[#allocation5 + $0x20] sm:$0xff]   ;;  %v539_v19 = vld [vmem:[#allocation11 + $0x10] sm:$0xff]  ;;  %v540_v20 = vld [vmem:[#allocation11 + $0x18] sm:$0xff] }
  0x52   :  { %3614 = vmatprep.subr.bf16.mxu0 %v4239_v9  ;;  %3420 = vmatpush3.bf16.msra.mxu1 %v3759_v6  ;;  %v3765_v21 = vld [vmem:[#allocation8 + $0x18] sm:$0xff]   ;;  %v4251_v22 = vpack.c.bf16 %v540_v20, %v539_v19  ;;  %v3768_v23 = vld [vmem:[#allocation8 + $0x20] sm:$0xff]   ;;  %v3767_v24 = vld [vmem:[#allocation5 + $0x28] sm:$0xff]  }
  0x53   :  { %3622 = vmatprep.subr.bf16.mxu1 %v4248_v17  ;;  %v544_v25 = vld [vmem:[#allocation11 + $0x30] sm:$0xff]  ;;  %v545_v26 = vld [vmem:[#allocation11 + $0x38] sm:$0xff]  ;;  %v3769_v29 = vld [vmem:[#allocation8 + $0x28] sm:$0xff]  }
  0x54   :  { %3402 = vmatmul.mubr.msk.bf16.vlgmr.msra.gmra.mrb[0].mxu0 %vm96_vm0, %v3758_v5  ;;  %v3770_v27 = vld [vmem:[#allocation5 + $0x30] sm:$0xff]   ;;  %v4261_v28 = vpack.c.bf16 %v545_v26, %v544_v25  ;;  %v3771_v31 = vld [vmem:[#allocation5 + $0x38] sm:$0xff]   ;;  %v4270_v33 = vld [vmem:[#allocation4] sm:$0xff] }
  0x55   :  { %3616 = vmatpush3.bf16.msra.mxu0 %v4239_v9  ;;  %3405 = vmatprep.mubr.msk.bf16.mxu0 %vm96_vm0, %v3762_v12  ;;  %v3772_v30 = vld [vmem:[#allocation8 + $0x30] sm:$0xff]   ;;  %v3773_v32 = vld [vmem:[#allocation8 + $0x38] sm:$0xff]   ;;  %v4280_v35 = vld [vmem:[#allocation4 + $0x8] sm:$0xff] }
  0x56   :  { %3422 = vmatmul.mubr.msk.bf16.vlgmr.msra.gmra.mrb[0].mxu1 %vm96_vm0, %v3761_v11  ;;  %3618 = vmatprep.subr.bf16.mxu0 %v4251_v22  ;;  %v4273_v34 = vld [vmem:[#allocation4 + $0x10] sm:$0xff]  ;;  %v4282_v36 = vld [vmem:[#allocation4 + $0x18] sm:$0xff]  ;;  %v4299_v37 = vld [vmem:[%s4917_s3] ss:$0 sm:$0xff] }
  0x57   :  { %3425 = vmatprep.mubr.msk.bf16.mxu1 %vm96_vm0, %v3764_v13  ;;  %3624 = vmatpush3.bf16.msra.mxu1 %v4248_v17  ;;  %v4304_v39 = vld [vmem:[%s4917_s3 + $0x1] ss:$0 sm:$0xff] }
  0x58   :  { %3626 = vmatprep.subr.bf16.mxu1 %v4261_v28 }
  0x59   :  { %3620 = vmatpush3.bf16.msra.mxu0 %v4251_v22 }
  0x5a   :  { %3630 = vmatprep.subr.bf16.mxu0 %v4239_v9 }
  0x5b   :  { %3628 = vmatpush3.bf16.msra.mxu1 %v4261_v28 }
  0x5c   :  { %3406 = vmatmul.mubr.msk.bf16.gmra.mrb[4].mxu0 %vm96_vm0, %v3763_v16  ;;  %3638 = vmatprep.subr.bf16.mxu1 %v4248_v17 }
  0x5d   :  { %3409 = vmatprep.mubr.msk.bf16.mxu0 %vm96_vm0, %v3766_v18 }
  0x5e   :  { %3426 = vmatmul.mubr.msk.bf16.gmra.mrb[4].mxu1 %vm96_vm0, %v3765_v21 }
  0x5f   :  { %3429 = vmatprep.mubr.msk.bf16.mxu1 %vm96_vm0, %v3768_v23 }
  0x64   :  { %3410 = vmatmul.mubr.msk.bf16.gmra.mrb[8].mxu0 %vm96_vm0, %v3767_v24 }
  0x65   :  { %3413 = vmatprep.mubr.msk.bf16.mxu0 %vm96_vm0, %v3770_v27 }
  0x66   :  { %3430 = vmatmul.mubr.msk.bf16.gmra.mrb[8].mxu1 %vm96_vm0, %v3769_v29 }
  0x67   :  { %3433 = vmatprep.mubr.msk.bf16.mxu1 %vm96_vm0, %v3772_v30 }
  0x6c   :  { %3414 = vmatmul.mubr.msk.bf16.gmra.mrb[12].mxu0 %vm96_vm0, %v3771_v31 }
  0x6d   :  { %3445 = vmatprep.mubr.msk.f32.mxu0 %vm96_vm0, %v4270_v33 }
  0x6e   :  { %3434 = vmatmul.mubr.msk.bf16.gmra.mrb[12].mxu1 %vm96_vm0, %v3773_v32 }
  0x6f   :  { %3456 = vmatprep.mubr.msk.f32.mxu1 %vm96_vm0, %v4273_v34 }
  0x74   :  { %3446 = vmatmul.mubr.msk.f32.vlgmr.msra.gmra.mrb[16].mxu0 %vm96_vm0, %v4280_v35 }
  0x75   :  { %3632 = vmatpush3.bf16.msra.mxu0 %v4239_v9 }
  0x76   :  { %3457 = vmatmul.mubr.msk.f32.vlgmr.msra.gmra.mrb[16].mxu1 %vm96_vm0, %v4282_v36  ;;  %3634 = vmatprep.subr.bf16.mxu0 %v4251_v22 }
  0x77   :  { %3640 = vmatpush3.bf16.msra.mxu1 %v4248_v17 }
  0x78   :  { %3642 = vmatprep.subr.bf16.mxu1 %v4261_v28 }
  0x79   :  { %3636 = vmatpush3.bf16.msra.mxu0 %v4251_v22 }
  0x7a   :  { %3646 = vmatprep.subr.bf16.mxu0 %v4239_v9 }
  0x7b   :  { %3644 = vmatpush3.bf16.msra.mxu1 %v4261_v28 }
  0x7c   :  { %3654 = vmatprep.subr.bf16.mxu1 %v4248_v17 }
 0x127   :  { %v3403_v38 = vpop.f32.mrb[0].mxu0 }
 0x128   :  { %v248_v40 = vadd.f32 %v3403_v38, %v4299_v37  ;;  %v239_v41 = vpop.f32.mrb[1].mxu0 }
 0x129   :  { %v240_v42 = vadd.f32 %v4299_v37, %v239_v41  ;;  %v3404_v43 = vpop.f32.mrb[2].mxu0  ;;  %v3423_v44 = vpop.f32.mrb[0].mxu1 }
 0x12a   :  { %305 = vst.msk [vmem:[#allocation2 + $0x10] sm:$0xff] %vm302_vm1, %v248_v40  ;;  %v251_v45 = vadd.f32 %v3404_v43, %v4299_v37  ;;  %v242_v46 = vpop.f32.mrb[3].mxu0  ;;  %v467_v47 = vadd.f32 %v3423_v44, %v4304_v39  ;;  %v458_v48 = vpop.f32.mrb[1].mxu1 }
 0x12b   :  { %303 = vst.msk [vmem:[#allocation2] sm:$0xff] %vm302_vm1, %v240_v42  ;;  %v243_v49 = vadd.f32 %v4299_v37, %v242_v46  ;;  %v459_v50 = vadd.f32 %v4304_v39, %v458_v48  ;;  %v3424_v51 = vpop.f32.mrb[2].mxu1  ;;  %v4369_v48 = vld [vmem:[%s4919_s5] ss:$0 sm:$0xff] }
 0x12c   :  { %306 = vst.msk [vmem:[#allocation2 + $0x18] sm:$0xff] %vm302_vm1, %v251_v45  ;;  %523 = vst.msk [vmem:[#allocation3 + $0x10] sm:$0xff] %vm302_vm1, %v467_v47  ;;  %v470_v52 = vadd.f32 %v3424_v51, %v4304_v39  ;;  %v461_v53 = vpop.f32.mrb[3].mxu1 }
 0x12d   :  { %304 = vst.msk [vmem:[#allocation2 + $0x8] sm:$0xff] %vm302_vm1, %v243_v49  ;;  %521 = vst.msk [vmem:[#allocation3] sm:$0xff] %vm302_vm1, %v459_v50  ;;  %v462_v54 = vadd.f32 %v4304_v39, %v461_v53  ;;  %v4378_v50 = vld [vmem:[%s4919_s5 + $0x1] ss:$0 sm:$0xff] }
 0x12e   :  { %524 = vst.msk [vmem:[#allocation3 + $0x18] sm:$0xff] %vm302_vm1, %v470_v52 }
 0x12f   :  { %v3407_v55 = vpop.f32.mrb[4].mxu0  ;;  %522 = vst.msk [vmem:[#allocation3 + $0x8] sm:$0xff] %vm302_vm1, %v462_v54 }
 0x130   :  { %v264_v56 = vadd.f32 %v3407_v55, %v4299_v37  ;;  %v255_v57 = vpop.f32.mrb[5].mxu0 }
 0x131   :  { %v256_v58 = vadd.f32 %v4299_v37, %v255_v57  ;;  %v3408_v59 = vpop.f32.mrb[6].mxu0  ;;  %v3427_v60 = vpop.f32.mrb[4].mxu1 }
 0x132   :  { %309 = vst.msk [vmem:[#allocation2 + $0x30] sm:$0xff] %vm302_vm1, %v264_v56  ;;  %v267_v61 = vadd.f32 %v3408_v59, %v4299_v37  ;;  %v258_v62 = vpop.f32.mrb[7].mxu0  ;;  %v483_v63 = vadd.f32 %v3427_v60, %v4304_v39  ;;  %v474_v0 = vpop.f32.mrb[5].mxu1  ;;  %v554_v57 = vld [vmem:[#allocation2] sm:$0xff] }
 0x133   :  { %307 = vst.msk [vmem:[#allocation2 + $0x20] sm:$0xff] %vm302_vm1, %v256_v58  ;;  %v259_v1 = vadd.f32 %v4299_v37, %v258_v62  ;;  %v475_v2 = vadd.f32 %v4304_v39, %v474_v0  ;;  %v3428_v3 = vpop.f32.mrb[6].mxu1 }
 0x134   :  { %310 = vst.msk [vmem:[#allocation2 + $0x38] sm:$0xff] %vm302_vm1, %v267_v61  ;;  %527 = vst.msk [vmem:[#allocation3 + $0x30] sm:$0xff] %vm302_vm1, %v483_v63  ;;  %v486_v4 = vadd.f32 %v3428_v3, %v4304_v39  ;;  %v477_v5 = vpop.f32.mrb[7].mxu1  ;;  %v555_v60 = vld [vmem:[#allocation2 + $0x8] sm:$0xff] }
 0x135   :  { %308 = vst.msk [vmem:[#allocation2 + $0x28] sm:$0xff] %vm302_vm1, %v259_v1  ;;  %525 = vst.msk [vmem:[#allocation3 + $0x20] sm:$0xff] %vm302_vm1, %v475_v2  ;;  %v478_v6 = vadd.f32 %v4304_v39, %v477_v5 }
 0x136   :  { %528 = vst.msk [vmem:[#allocation3 + $0x38] sm:$0xff] %vm302_vm1, %v486_v4 }
 0x137   :  { %v3411_v7 = vpop.f32.mrb[8].mxu0  ;;  %526 = vst.msk [vmem:[#allocation3 + $0x28] sm:$0xff] %vm302_vm1, %v478_v6 }
 0x138   :  { %v280_v8 = vadd.f32 %v3411_v7, %v4299_v37  ;;  %v271_v10 = vpop.f32.mrb[9].mxu0 }
 0x139   :  { %v272_v11 = vadd.f32 %v4299_v37, %v271_v10  ;;  %v3412_v12 = vpop.f32.mrb[10].mxu0  ;;  %v3431_v13 = vpop.f32.mrb[8].mxu1 }
 0x13a   :  { %313 = vst.msk [vmem:[#allocation2 + $0x50] sm:$0xff] %vm302_vm1, %v280_v8  ;;  %v283_v14 = vadd.f32 %v3412_v12, %v4299_v37  ;;  %v274_v15 = vpop.f32.mrb[11].mxu0  ;;  %v499_v16 = vadd.f32 %v3431_v13, %v4304_v39  ;;  %v490_v18 = vpop.f32.mrb[9].mxu1 }
 0x13b   :  { %311 = vst.msk [vmem:[#allocation2 + $0x40] sm:$0xff] %vm302_vm1, %v272_v11  ;;  %v275_v19 = vadd.f32 %v4299_v37, %v274_v15  ;;  %v491_v20 = vadd.f32 %v4304_v39, %v490_v18  ;;  %v3432_v21 = vpop.f32.mrb[10].mxu1 }
 0x13c   :  { %314 = vst.msk [vmem:[#allocation2 + $0x58] sm:$0xff] %vm302_vm1, %v283_v14  ;;  %531 = vst.msk [vmem:[#allocation3 + $0x50] sm:$0xff] %vm302_vm1, %v499_v16  ;;  %v502_v23 = vadd.f32 %v3432_v21, %v4304_v39  ;;  %v493_v24 = vpop.f32.mrb[11].mxu1 }
 0x13d   :  { %312 = vst.msk [vmem:[#allocation2 + $0x48] sm:$0xff] %vm302_vm1, %v275_v19  ;;  %529 = vst.msk [vmem:[#allocation3 + $0x40] sm:$0xff] %vm302_vm1, %v491_v20  ;;  %v494_v25 = vadd.f32 %v4304_v39, %v493_v24 }
 0x13e   :  { %532 = vst.msk [vmem:[#allocation3 + $0x58] sm:$0xff] %vm302_vm1, %v502_v23 }
 0x13f   :  { %v3415_v26 = vpop.f32.mrb[12].mxu0  ;;  %530 = vst.msk [vmem:[#allocation3 + $0x48] sm:$0xff] %vm302_vm1, %v494_v25 }
 0x140   :  { %v296_v27 = vadd.f32 %v3415_v26, %v4299_v37  ;;  %v287_v29 = vpop.f32.mrb[13].mxu0 }
 0x141   :  { %v288_v30 = vadd.f32 %v4299_v37, %v287_v29  ;;  %v3416_v31 = vpop.f32.mrb[14].mxu0  ;;  %v3435_v32 = vpop.f32.mrb[12].mxu1 }
 0x142   :  { %317 = vst.msk [vmem:[#allocation2 + $0x70] sm:$0xff] %vm302_vm1, %v296_v27  ;;  %v299_v38 = vadd.f32 %v3416_v31, %v4299_v37  ;;  %v290_v40 = vpop.f32.mrb[15].mxu0  ;;  %v515_v41 = vadd.f32 %v3435_v32, %v4304_v39  ;;  %v506_v42 = vpop.f32.mrb[13].mxu1 }
 0x143   :  { %315 = vst.msk [vmem:[#allocation2 + $0x60] sm:$0xff] %vm302_vm1, %v288_v30  ;;  %v291_v43 = vadd.f32 %v4299_v37, %v290_v40  ;;  %v507_v44 = vadd.f32 %v4304_v39, %v506_v42  ;;  %v3436_v45 = vpop.f32.mrb[14].mxu1 }
 0x144   :  { %318 = vst.msk [vmem:[#allocation2 + $0x78] sm:$0xff] %vm302_vm1, %v299_v38  ;;  %535 = vst.msk [vmem:[#allocation3 + $0x70] sm:$0xff] %vm302_vm1, %v515_v41  ;;  %v518_v46 = vadd.f32 %v3436_v45, %v4304_v39  ;;  %v509_v47 = vpop.f32.mrb[15].mxu1 }
 0x145   :  { %316 = vst.msk [vmem:[#allocation2 + $0x68] sm:$0xff] %vm302_vm1, %v291_v43  ;;  %533 = vst.msk [vmem:[#allocation3 + $0x60] sm:$0xff] %vm302_vm1, %v507_v44  ;;  %v510_v37 = vadd.f32 %v4304_v39, %v509_v47 }
 0x146   :  { %536 = vst.msk [vmem:[#allocation3 + $0x78] sm:$0xff] %vm302_vm1, %v518_v46 }
 0x147   :  { %v3447_v49 = vpop.f32.mrb[16].mxu0  ;;  %534 = vst.msk [vmem:[#allocation3 + $0x68] sm:$0xff] %vm302_vm1, %v510_v37 }
 0x148   :  { %v643_v51 = vadd.f32 %v3447_v49, %v4369_v48  ;;  %v637_v52 = vpop.f32.mrb[17].mxu0 }
 0x149   :  { %v638_v53 = vadd.f32 %v4369_v48, %v637_v52  ;;  %v3458_v54 = vpop.f32.mrb[16].mxu1 }
 0x14a   :  { %751 = vrot.lane.b32.xlu1 %v643_v51, %s4112_s13  ;;  %v730_v39 = vadd.f32 %v3458_v54, %v4378_v50  ;;  %v724_v55 = vpop.f32.mrb[17].mxu1  ;;  %v734_v61 = vadd.f32 %v643_v51, %v555_v60 }
 0x14b   :  { %749 = vrot.lane.b32.xlu0 %v638_v53, %s4112_s13  ;;  %v725_v56 = vadd.f32 %v4378_v50, %v724_v55  ;;  %v733_v58 = vadd.f32 %v638_v53, %v554_v57  ;;  %v557_v59 = vld [vmem:[#allocation3 + $0x70] sm:$0xff] }
 0x14c   :  { %v3158_v1 = vmul.f32 -1.442695, %v734_v61 }
 0x14d   :  { %v3157_v62 = vmul.f32 -1.442695, %v733_v58  ;;  %v791_v63 = vadd.f32 %v725_v56, %v557_v59  ;;  %v558_v0 = vld [vmem:[#allocation3 + $0x78] sm:$0xff] }
 0x14e   :  { %809 = vrot.lane.b32.xlu1 %v730_v39, %s4112_s13  ;;  %v792_v2 = vadd.f32 %v730_v39, %v558_v0 }
 0x14f   :  { %807 = vrot.lane.b32.xlu0 %v725_v56, %s4112_s13  ;;  %3774 = vpow2.f32 %v3157_v62  ;;  %v3159_v3 = vmul.f32 -1.442695, %v791_v63 }
 0x150   :  { %3776 = vpow2.f32 %v3158_v1  ;;  %v3160_v4 = vmul.f32 -1.442695, %v792_v2 }
 0x151   :  { %3778 = vpow2.f32 %v3159_v3 }
 0x152   :  { %3780 = vpow2.f32 %v3160_v4 }
 0x159   :  { %v3775_v5 = vpop.eup %3774 }
 0x15a   :  { %v3777_v6 = vpop.eup %3776  ;;  %v741_v7 = vadd.f32 1.0, %v3775_v5 }
 0x15b   :  { %v3779_v8 = vpop.eup %3778  ;;  %v742_v10 = vadd.f32 1.0, %v3777_v6 }
 0x15c   :  { %3782 = vrcp.f32 %v741_v7  ;;  %v799_v11 = vadd.f32 1.0, %v3779_v8  ;;  %v3781_v12 = vpop.eup %3780 }
 0x15d   :  { %3784 = vrcp.f32 %v742_v10  ;;  %v800_v13 = vadd.f32 1.0, %v3781_v12 }
 0x15e   :  { %3786 = vrcp.f32 %v799_v11 }
 0x15f   :  { %3788 = vrcp.f32 %v800_v13 }
 0x166   :  { %v3783_v14 = vpop.eup %3782 }
 0x167   :  { %v3785_v19 = vpop.eup %3784  ;;  %v769_v46 = vsub.f32 1.0, %v3783_v14 }
 0x168   :  { %v3787_v20 = vpop.eup %3786  ;;  %v770_v51 = vsub.f32 1.0, %v3785_v19 }
 0x169   :  { %v3789_v26 = vpop.eup %3788  ;;  %v827_v39 = vsub.f32 1.0, %v3787_v20 }
 0x16a   :  { %v828_v62 = vsub.f32 1.0, %v3789_v26 }
 0x1bc   :  { %v752_v15 = vpop.permute.xlu1 %751 }
 0x1bd   :  { %v750_v16 = vpop.permute.xlu0 %749  ;;  %v756_v24 = vmul.f32 %v3785_v19, %v752_v15 }
 0x1be   :  { %v755_v18 = vmul.f32 %v3783_v14, %v750_v16  ;;  %v880_v16 = vld [vmem:[#allocation2 + $0x10] sm:$0xff] }
 0x1c0   :  { %759 = vrot.lane.b32.xlu0 %v755_v18, %s4112_s13  ;;  %v810_v25 = vpop.permute.xlu1 %809 }
 0x1c1   :  { %v808_v21 = vpop.permute.xlu0 %807  ;;  %v814_v27 = vmul.f32 %v3789_v26, %v810_v25 }
 0x1c2   :  { %v813_v23 = vmul.f32 %v3787_v20, %v808_v21  ;;  %v883_v21 = vld [vmem:[#allocation3 + $0x60] sm:$0xff] }
 0x1c4   :  { %817 = vrot.lane.b32.xlu1 %v813_v23, %s4112_s13  ;;  %761 = vrot.lane.b32.xlu0 %v756_v24, %s4112_s13 }
 0x1c8   :  { %819 = vrot.lane.b32.xlu1 %v814_v27, %s4112_s13 }
 0x1cc   :  { %781 = vrot.lane.b32.xlu1 %v4270_v33, %s4119_s12 }
 0x1d0   :  { %839 = vrot.lane.b32.xlu1 %v4273_v34, %s4119_s12 }
 0x1d4   :  { %783 = vrot.lane.b32.xlu1 %v4280_v35, %s4119_s12 }
 0x1d8   :  { %841 = vrot.lane.b32.xlu1 %v4282_v36, %s4119_s12 }
 0x232   :  { %v760_v29 = vpop.permute.xlu0 %759 }
 0x233   :  { %v765_v38 = vadd.f32 %v760_v29, %v554_v57 }
 0x236   :  { %v762_v30 = vpop.permute.xlu0 %761  ;;  %v818_v32 = vpop.permute.xlu1 %817 }
 0x237   :  { %v766_v31 = vadd.f32 %v762_v30, %v555_v60  ;;  %v823_v40 = vadd.f32 %v818_v32, %v557_v59 }
 0x239   :  { %3790 = vtanh.f32 %v766_v31 }
 0x23a   :  { %3792 = vtanh.f32 %v765_v38  ;;  %v820_v41 = vpop.permute.xlu1 %819 }
 0x23b   :  { %3794 = vtanh.f32 %v823_v40  ;;  %v824_v42 = vadd.f32 %v820_v41, %v558_v0 }
 0x23d   :  { %3796 = vtanh.f32 %v824_v42 }
 0x23e   :  { %v782_v36 = vpop.permute.xlu1 %781 }
 0x23f   :  { %v787_v49 = vmul.f32 %v3783_v14, %v782_v36 }
 0x242   :  { %v840_v44 = vpop.permute.xlu1 %839 }
 0x243   :  { %v3791_v43 = vpop.eup %3790  ;;  %v845_v56 = vmul.f32 %v3787_v20, %v840_v44 }
 0x244   :  { %775 = vrot.lane.b32.xlu0 %v3791_v43, %s4120_s15  ;;  %v3793_v33 = vpop.eup %3792 }
 0x245   :  { %v3795_v34 = vpop.eup %3794 }
 0x246   :  { %v784_v47 = vpop.permute.xlu1 %783 }
 0x247   :  { %v3797_v35 = vpop.eup %3796  ;;  %v788_v57 = vmul.f32 %v3785_v19, %v784_v47  ;;  %v881_v19 = vld [vmem:[#allocation2 + $0x18] sm:$0xff] }
 0x248   :  { %773 = vrot.lane.b32.xlu0 %v3793_v33, %s4120_s15 }
 0x24a   :  { %v842_v59 = vpop.permute.xlu1 %841 }
 0x24b   :  { %v846_v0 = vmul.f32 %v3789_v26, %v842_v59  ;;  %v884_v26 = vld [vmem:[#allocation3 + $0x68] sm:$0xff] }
 0x24c   :  { %831 = vrot.lane.b32.xlu0 %v3795_v34, %s4120_s15 }
 0x250   :  { %833 = vrot.lane.b32.xlu0 %v3797_v35, %s4120_s15 }
 0x2b6   :  { %v776_v45 = vpop.permute.xlu0 %775 }
 0x2b7   :  { %v780_v53 = vmul.f32 %v776_v45, %v770_v51 }
 0x2b9   :  { %v4404_v60 = vadd.f32 %v788_v57, %v780_v53 }
 0x2ba   :  { %v774_v37 = vpop.permute.xlu0 %773 }
 0x2bb   :  { %v779_v52 = vmul.f32 %v774_v37, %v769_v46 }
 0x2bd   :  { %v4400_v54 = vadd.f32 %v787_v49, %v779_v52 }
 0x2be   :  { %v832_v55 = vpop.permute.xlu0 %831 }
 0x2bf   :  { %v837_v58 = vmul.f32 %v832_v55, %v827_v39  ;;  %887 = vrot.lane.b32.xlu0 %v4400_v54, %s4120_s15 }
 0x2c1   :  { %v4406_v61 = vadd.f32 %v845_v56, %v837_v58 }
 0x2c2   :  { %v834_v63 = vpop.permute.xlu0 %833 }
 0x2c3   :  { %v838_v1 = vmul.f32 %v834_v63, %v828_v62  ;;  %889 = vrot.lane.b32.xlu0 %v4404_v60, %s4120_s15  ;;  %972 = vrot.lane.b32.xlu1 %v4406_v61, %s4120_s15 }
 0x2c5   :  { %v4412_v2 = vadd.f32 %v846_v0, %v838_v1 }
 0x2c7   :  { %974 = vrot.lane.b32.xlu1 %v4412_v2, %s4120_s15 }
 0x331   :  { %v888_v3 = vpop.permute.xlu0 %887 }
 0x332   :  { %3467 = vmatprep.mubr.msk.f32.mxu0 %vm96_vm0, %v888_v3 }
 0x335   :  { %v973_v4 = vpop.permute.xlu1 %972  ;;  %v890_v5 = vpop.permute.xlu0 %889 }
 0x336   :  { %3468 = vmatmul.mubr.msk.f32.vlgmr.msra.gmra.mrb[18].mxu0 %vm96_vm0, %v890_v5  ;;  %3478 = vmatprep.mubr.msk.f32.mxu1 %vm96_vm0, %v973_v4 }
 0x337   :  { %3648 = vmatpush3.bf16.msra.mxu0 %v4239_v9 }
 0x338   :  { %3650 = vmatprep.subr.bf16.mxu0 %v4251_v22 }
 0x339   :  { %v975_v6 = vpop.permute.xlu1 %974 }
 0x33a   :  { %3479 = vmatmul.mubr.msk.f32.vlgmr.msra.gmra.mrb[18].mxu1 %vm96_vm0, %v975_v6 }
 0x33b   :  { %3652 = vmatpush3.bf16.msra.mxu0 %v4251_v22  ;;  %3656 = vmatpush3.bf16.msra.mxu1 %v4248_v17 }
 0x33c   :  { %3658 = vmatprep.subr.bf16.mxu1 %v4261_v28  ;;  %3662 = vmatprep.subr.bf16.mxu0 %v4239_v9 }
 0x33f   :  { %3660 = vmatpush3.bf16.msra.mxu1 %v4261_v28 }
 0x340   :  { %3670 = vmatprep.subr.bf16.mxu1 %v4248_v17 }
 0x409   :  { %v3469_v7 = vpop.f32.mrb[18].mxu0 }
 0x40a   :  { %v961_v8 = vpop.f32.mrb[19].mxu0  ;;  %v967_v13 = vadd.f32 %v3469_v7, %v4369_v48 }
 0x40b   :  { %v962_v10 = vadd.f32 %v4369_v48, %v961_v8 }
 0x40c   :  { %v1056_v20 = vadd.f32 %v967_v13, %v881_v19 }
 0x40d   :  { %v3480_v11 = vpop.f32.mrb[18].mxu1  ;;  %1071 = vrot.lane.b32.xlu0 %v962_v10, %s4112_s13  ;;  %v1055_v18 = vadd.f32 %v962_v10, %v880_v16 }
 0x40e   :  { %v1046_v12 = vpop.f32.mrb[19].mxu1  ;;  %v1052_v15 = vadd.f32 %v3480_v11, %v4378_v50  ;;  %v3170_v25 = vmul.f32 -1.442695, %v1056_v20 }
 0x40f   :  { %v1047_v14 = vadd.f32 %v4378_v50, %v1046_v12  ;;  %v3169_v23 = vmul.f32 -1.442695, %v1055_v18 }
 0x410   :  { %v1108_v27 = vadd.f32 %v1052_v15, %v884_v26 }
 0x411   :  { %1123 = vrot.lane.b32.xlu1 %v1047_v14, %s4112_s13  ;;  %1073 = vrot.lane.b32.xlu0 %v967_v13, %s4112_s13  ;;  %v1107_v24 = vadd.f32 %v1047_v14, %v883_v21  ;;  %3798 = vpow2.f32 %v3169_v23 }
 0x412   :  { %3800 = vpow2.f32 %v3170_v25  ;;  %v3172_v30 = vmul.f32 -1.442695, %v1108_v27 }
 0x413   :  { %v3171_v29 = vmul.f32 -1.442695, %v1107_v24 }
 0x415   :  { %1125 = vrot.lane.b32.xlu1 %v1052_v15, %s4112_s13  ;;  %3802 = vpow2.f32 %v3171_v29 }
 0x416   :  { %3804 = vpow2.f32 %v3172_v30 }
 0x41b   :  { %v3799_v31 = vpop.eup %3798 }
 0x41c   :  { %v3801_v32 = vpop.eup %3800  ;;  %v1063_v38 = vadd.f32 1.0, %v3799_v31 }
 0x41d   :  { %v1064_v41 = vadd.f32 1.0, %v3801_v32 }
 0x41e   :  { %3806 = vrcp.f32 %v1063_v38 }
 0x41f   :  { %v3803_v40 = vpop.eup %3802  ;;  %3808 = vrcp.f32 %v1064_v41 }
 0x420   :  { %v1115_v42 = vadd.f32 1.0, %v3803_v40  ;;  %v3805_v43 = vpop.eup %3804 }
 0x421   :  { %v1116_v33 = vadd.f32 1.0, %v3805_v43 }
 0x422   :  { %3810 = vrcp.f32 %v1115_v42 }
 0x423   :  { %3812 = vrcp.f32 %v1116_v33 }
 0x428   :  { %v3807_v34 = vpop.eup %3806 }
 0x429   :  { %v3809_v44 = vpop.eup %3808  ;;  %v1091_v5 = vsub.f32 1.0, %v3807_v34  ;;  %v1103_v7 = vmul.f32 %v3807_v34, %v4400_v54 }
 0x42a   :  { %v1092_v13 = vsub.f32 1.0, %v3809_v44  ;;  %v1104_v18 = vmul.f32 %v3809_v44, %v4404_v60 }
 0x42c   :  { %v3811_v45 = vpop.eup %3810 }
 0x42d   :  { %v3813_v51 = vpop.eup %3812  ;;  %v1143_v11 = vsub.f32 1.0, %v3811_v45  ;;  %v1155_v14 = vmul.f32 %v3811_v45, %v4406_v61 }
 0x42e   :  { %v1156_v25 = vmul.f32 %v3813_v51, %v4412_v2 }
 0x47f   :  { %v1072_v35 = vpop.permute.xlu0 %1071 }
 0x480   :  { %v1077_v36 = vmul.f32 %v3807_v34, %v1072_v35 }
 0x482   :  { %1081 = vrot.lane.b32.xlu0 %v1077_v36, %s4112_s13  ;;  %v1190_v36 = vld [vmem:[#allocation2 + $0x20] sm:$0xff] }
 0x483   :  { %v1124_v46 = vpop.permute.xlu1 %1123  ;;  %v1074_v47 = vpop.permute.xlu0 %1073 }
 0x484   :  { %v1129_v37 = vmul.f32 %v3811_v45, %v1124_v46  ;;  %v1078_v49 = vmul.f32 %v3809_v44, %v1074_v47  ;;  %v1193_v45 = vld [vmem:[#allocation3 + $0x50] sm:$0xff]  ;;  %v1191_v46 = vld [vmem:[#allocation2 + $0x28] sm:$0xff] }
 0x486   :  { %1133 = vrot.lane.b32.xlu1 %v1129_v37, %s4112_s13  ;;  %1083 = vrot.lane.b32.xlu0 %v1078_v49, %s4112_s13 }
 0x487   :  { %v1126_v52 = vpop.permute.xlu1 %1125 }
 0x488   :  { %v1130_v53 = vmul.f32 %v3813_v51, %v1126_v52 }
 0x48a   :  { %1135 = vrot.lane.b32.xlu1 %v1130_v53, %s4112_s13 }
 0x4f4   :  { %v1082_v39 = vpop.permute.xlu0 %1081 }
 0x4f5   :  { %v1087_v55 = vadd.f32 %v1082_v39, %v880_v16 }
 0x4f7   :  { %3814 = vtanh.f32 %v1087_v55 }
 0x4f8   :  { %v1134_v56 = vpop.permute.xlu1 %1133  ;;  %v1084_v57 = vpop.permute.xlu0 %1083 }
 0x4f9   :  { %v1139_v58 = vadd.f32 %v1134_v56, %v883_v21  ;;  %v1088_v59 = vadd.f32 %v1084_v57, %v881_v19  ;;  %v1144_v21 = vsub.f32 1.0, %v3813_v51  ;;  %v1194_v51 = vld [vmem:[#allocation3 + $0x58] sm:$0xff] }
 0x4fb   :  { %3816 = vtanh.f32 %v1139_v58 }
 0x4fc   :  { %3818 = vtanh.f32 %v1088_v59  ;;  %v1136_v62 = vpop.permute.xlu1 %1135 }
 0x4fd   :  { %v1140_v63 = vadd.f32 %v1136_v62, %v884_v26 }
 0x4ff   :  { %3820 = vtanh.f32 %v1140_v63 }
 0x501   :  { %v3815_v0 = vpop.eup %3814 }
 0x502   :  { %1095 = vrot.lane.b32.xlu0 %v3815_v0, %s4120_s15 }
 0x505   :  { %v3817_v1 = vpop.eup %3816 }
 0x506   :  { %v3819_v3 = vpop.eup %3818  ;;  %1147 = vrot.lane.b32.xlu1 %v3817_v1, %s4120_s15 }
 0x507   :  { %1097 = vrot.lane.b32.xlu0 %v3819_v3, %s4120_s15 }
 0x509   :  { %v3821_v4 = vpop.eup %3820 }
 0x50a   :  { %1149 = vrot.lane.b32.xlu1 %v3821_v4, %s4120_s15 }
 0x574   :  { %v1096_v6 = vpop.permute.xlu0 %1095 }
 0x575   :  { %v1101_v8 = vmul.f32 %v1096_v6, %v1091_v5 }
 0x577   :  { %v4445_v10 = vadd.f32 %v1103_v7, %v1101_v8 }
 0x578   :  { %v1148_v12 = vpop.permute.xlu1 %1147 }
 0x579   :  { %v1153_v15 = vmul.f32 %v1148_v12, %v1143_v11  ;;  %v1098_v16 = vpop.permute.xlu0 %1097  ;;  %1197 = vrot.lane.b32.xlu0 %v4445_v10, %s4120_s15 }
 0x57a   :  { %v1102_v19 = vmul.f32 %v1098_v16, %v1092_v13 }
 0x57b   :  { %v4451_v20 = vadd.f32 %v1155_v14, %v1153_v15 }
 0x57c   :  { %v4453_v23 = vadd.f32 %v1104_v18, %v1102_v19  ;;  %v1150_v24 = vpop.permute.xlu1 %1149 }
 0x57d   :  { %v1154_v26 = vmul.f32 %v1150_v24, %v1144_v21  ;;  %1282 = vrot.lane.b32.xlu1 %v4451_v20, %s4120_s15 }
 0x57e   :  { %1199 = vrot.lane.b32.xlu0 %v4453_v23, %s4120_s15 }
 0x57f   :  { %v4460_v27 = vadd.f32 %v1156_v25, %v1154_v26 }
 0x581   :  { %1284 = vrot.lane.b32.xlu1 %v4460_v27, %s4120_s15 }
 0x5eb   :  { %v1198_v29 = vpop.permute.xlu0 %1197 }
 0x5ec   :  { %3489 = vmatprep.mubr.msk.f32.mxu0 %vm96_vm0, %v1198_v29 }
 0x5ef   :  { %v1283_v30 = vpop.permute.xlu1 %1282 }
 0x5f0   :  { %v1200_v31 = vpop.permute.xlu0 %1199  ;;  %3500 = vmatprep.mubr.msk.f32.mxu1 %vm96_vm0, %v1283_v30 }
 0x5f1   :  { %3490 = vmatmul.mubr.msk.f32.vlgmr.msra.gmra.mrb[20].mxu0 %vm96_vm0, %v1200_v31 }
 0x5f2   :  { %3664 = vmatpush3.bf16.msra.mxu0 %v4239_v9 }
 0x5f3   :  { %v1285_v32 = vpop.permute.xlu1 %1284  ;;  %3666 = vmatprep.subr.bf16.mxu0 %v4251_v22 }
 0x5f4   :  { %3501 = vmatmul.mubr.msk.f32.vlgmr.msra.gmra.mrb[20].mxu1 %vm96_vm0, %v1285_v32 }
 0x5f5   :  { %3672 = vmatpush3.bf16.msra.mxu1 %v4248_v17 }
 0x5f6   :  { %3668 = vmatpush3.bf16.msra.mxu0 %v4251_v22  ;;  %3674 = vmatprep.subr.bf16.mxu1 %v4261_v28 }
 0x5f7   :  { %3678 = vmatprep.subr.bf16.mxu0 %v4239_v9 }
 0x5f9   :  { %3676 = vmatpush3.bf16.msra.mxu1 %v4261_v28 }
 0x5fa   :  { %3686 = vmatprep.subr.bf16.mxu1 %v4248_v17 }
 0x6c4   :  { %v3491_v38 = vpop.f32.mrb[20].mxu0 }
 0x6c5   :  { %v1271_v40 = vpop.f32.mrb[21].mxu0  ;;  %v1277_v34 = vadd.f32 %v3491_v38, %v4369_v48 }
 0x6c6   :  { %v1272_v41 = vadd.f32 %v4369_v48, %v1271_v40 }
 0x6c7   :  { %v3502_v42 = vpop.f32.mrb[20].mxu1  ;;  %v1366_v37 = vadd.f32 %v1277_v34, %v1191_v46 }
 0x6c8   :  { %1381 = vrot.lane.b32.xlu0 %v1272_v41, %s4112_s13  ;;  %v1356_v43 = vpop.f32.mrb[21].mxu1  ;;  %v1362_v35 = vadd.f32 %v3502_v42, %v4378_v50  ;;  %v1365_v44 = vadd.f32 %v1272_v41, %v1190_v36 }
 0x6c9   :  { %v1357_v33 = vadd.f32 %v4378_v50, %v1356_v43  ;;  %v3182_v39 = vmul.f32 -1.442695, %v1366_v37 }
 0x6ca   :  { %v3181_v49 = vmul.f32 -1.442695, %v1365_v44  ;;  %v1418_v52 = vadd.f32 %v1362_v35, %v1194_v51 }
 0x6cb   :  { %1433 = vrot.lane.b32.xlu1 %v1357_v33, %s4112_s13  ;;  %v1417_v47 = vadd.f32 %v1357_v33, %v1193_v45 }
 0x6cc   :  { %1383 = vrot.lane.b32.xlu0 %v1277_v34, %s4112_s13  ;;  %3822 = vpow2.f32 %v3181_v49  ;;  %v3184_v55 = vmul.f32 -1.442695, %v1418_v52 }
 0x6cd   :  { %v3183_v53 = vmul.f32 -1.442695, %v1417_v47 }
 0x6cf   :  { %1435 = vrot.lane.b32.xlu1 %v1362_v35, %s4112_s13  ;;  %3824 = vpow2.f32 %v3183_v53 }
 0x6d0   :  { %3826 = vpow2.f32 %v3182_v39 }
 0x6d1   :  { %3828 = vpow2.f32 %v3184_v55 }
 0x6d6   :  { %v3823_v56 = vpop.eup %3822 }
 0x6d7   :  { %v1373_v58 = vadd.f32 1.0, %v3823_v56 }
 0x6d9   :  { %v3825_v57 = vpop.eup %3824  ;;  %3830 = vrcp.f32 %v1373_v58 }
 0x6da   :  { %v3827_v59 = vpop.eup %3826  ;;  %v1425_v62 = vadd.f32 1.0, %v3825_v57 }
 0x6db   :  { %v3829_v63 = vpop.eup %3828  ;;  %v1374_v0 = vadd.f32 1.0, %v3827_v59 }
 0x6dc   :  { %v1426_v1 = vadd.f32 1.0, %v3829_v63  ;;  %3832 = vrcp.f32 %v1425_v62 }
 0x6dd   :  { %3834 = vrcp.f32 %v1374_v0 }
 0x6de   :  { %3836 = vrcp.f32 %v1426_v1 }
 0x6e3   :  { %v3831_v3 = vpop.eup %3830 }
 0x6e4   :  { %v1401_v41 = vsub.f32 1.0, %v3831_v3  ;;  %v1413_v43 = vmul.f32 %v3831_v3, %v4445_v10 }
 0x6e6   :  { %v3833_v6 = vpop.eup %3832 }
 0x6e7   :  { %v3835_v8 = vpop.eup %3834  ;;  %v1453_v34 = vsub.f32 1.0, %v3833_v6 }
 0x6e8   :  { %v3837_v14 = vpop.eup %3836  ;;  %v1402_v44 = vsub.f32 1.0, %v3835_v8  ;;  %v1414_v37 = vmul.f32 %v3835_v8, %v4453_v23 }
 0x6e9   :  { %v1454_v52 = vsub.f32 1.0, %v3837_v14  ;;  %v1466_v55 = vmul.f32 %v3837_v14, %v4460_v27 }
 0x73a   :  { %v1382_v4 = vpop.permute.xlu0 %1381 }
 0x73b   :  { %v1387_v5 = vmul.f32 %v3831_v3, %v1382_v4 }
 0x73d   :  { %1391 = vrot.lane.b32.xlu0 %v1387_v5, %s4112_s13  ;;  %v1434_v7 = vpop.permute.xlu1 %1433 }
 0x73e   :  { %v1384_v11 = vpop.permute.xlu0 %1383  ;;  %v1439_v12 = vmul.f32 %v3833_v6, %v1434_v7 }
 0x73f   :  { %v1388_v13 = vmul.f32 %v3835_v8, %v1384_v11  ;;  %v1500_v11 = vld [vmem:[#allocation2 + $0x30] sm:$0xff] }
 0x740   :  { %1443 = vrot.lane.b32.xlu1 %v1439_v12, %s4112_s13 }
 0x741   :  { %1393 = vrot.lane.b32.xlu0 %v1388_v13, %s4112_s13  ;;  %v1436_v15 = vpop.permute.xlu1 %1435  ;;  %v1503_v13 = vld [vmem:[#allocation3 + $0x40] sm:$0xff] }
 0x742   :  { %v1440_v16 = vmul.f32 %v3837_v14, %v1436_v15  ;;  %v1501_v14 = vld [vmem:[#allocation2 + $0x38] sm:$0xff] }
 0x744   :  { %1445 = vrot.lane.b32.xlu1 %v1440_v16, %s4112_s13 }
 0x7af   :  { %v1392_v18 = vpop.permute.xlu0 %1391 }
 0x7b0   :  { %v1397_v19 = vadd.f32 %v1392_v18, %v1190_v36 }
 0x7b2   :  { %3838 = vtanh.f32 %v1397_v19  ;;  %v1444_v21 = vpop.permute.xlu1 %1443  ;;  %v1504_v19 = vld [vmem:[#allocation3 + $0x48] sm:$0xff] }
 0x7b3   :  { %v1449_v24 = vadd.f32 %v1444_v21, %v1193_v45  ;;  %v1394_v25 = vpop.permute.xlu0 %1393  ;;  %v1465_v45 = vmul.f32 %v3833_v6, %v4451_v20 }
 0x7b4   :  { %v1398_v26 = vadd.f32 %v1394_v25, %v1191_v46 }
 0x7b5   :  { %3840 = vtanh.f32 %v1449_v24 }
 0x7b6   :  { %3842 = vtanh.f32 %v1398_v26  ;;  %v1446_v29 = vpop.permute.xlu1 %1445 }
 0x7b7   :  { %v1450_v30 = vadd.f32 %v1446_v29, %v1194_v51 }
 0x7b9   :  { %3844 = vtanh.f32 %v1450_v30 }
 0x7bc   :  { %v3839_v31 = vpop.eup %3838 }
 0x7bd   :  { %1405 = vrot.lane.b32.xlu0 %v3839_v31, %s4120_s15 }
 0x7bf   :  { %v3841_v32 = vpop.eup %3840 }
 0x7c0   :  { %v3843_v38 = vpop.eup %3842  ;;  %1457 = vrot.lane.b32.xlu1 %v3841_v32, %s4120_s15 }
 0x7c1   :  { %1407 = vrot.lane.b32.xlu0 %v3843_v38, %s4120_s15 }
 0x7c3   :  { %v3845_v40 = vpop.eup %3844 }
 0x7c4   :  { %1459 = vrot.lane.b32.xlu1 %v3845_v40, %s4120_s15 }
 0x82f   :  { %v1406_v42 = vpop.permute.xlu0 %1405 }
 0x830   :  { %v1411_v33 = vmul.f32 %v1406_v42, %v1401_v41 }
 0x832   :  { %v4493_v35 = vadd.f32 %v1413_v43, %v1411_v33  ;;  %v1458_v36 = vpop.permute.xlu1 %1457 }
 0x833   :  { %v1463_v46 = vmul.f32 %v1458_v36, %v1453_v34  ;;  %v1408_v47 = vpop.permute.xlu0 %1407 }
 0x834   :  { %v1412_v49 = vmul.f32 %v1408_v47, %v1402_v44  ;;  %1507 = vrot.lane.b32.xlu0 %v4493_v35, %s4120_s15 }
 0x835   :  { %v4499_v51 = vadd.f32 %v1465_v45, %v1463_v46 }
 0x836   :  { %v4501_v53 = vadd.f32 %v1414_v37, %v1412_v49  ;;  %v1460_v39 = vpop.permute.xlu1 %1459 }
 0x837   :  { %v1464_v56 = vmul.f32 %v1460_v39, %v1454_v52  ;;  %1592 = vrot.lane.b32.xlu1 %v4499_v51, %s4120_s15 }
 0x838   :  { %1509 = vrot.lane.b32.xlu0 %v4501_v53, %s4120_s15 }
 0x839   :  { %v4508_v57 = vadd.f32 %v1466_v55, %v1464_v56 }
 0x83b   :  { %1594 = vrot.lane.b32.xlu1 %v4508_v57, %s4120_s15 }
 0x8a6   :  { %v1508_v58 = vpop.permute.xlu0 %1507 }
 0x8a7   :  { %3511 = vmatprep.mubr.msk.f32.mxu0 %vm96_vm0, %v1508_v58 }
 0x8a9   :  { %v1593_v59 = vpop.permute.xlu1 %1592 }
 0x8aa   :  { %v1510_v62 = vpop.permute.xlu0 %1509  ;;  %3522 = vmatprep.mubr.msk.f32.mxu1 %vm96_vm0, %v1593_v59 }
 0x8ab   :  { %3512 = vmatmul.mubr.msk.f32.vlgmr.msra.gmra.mrb[22].mxu0 %vm96_vm0, %v1510_v62 }
 0x8ac   :  { %3680 = vmatpush3.bf16.msra.mxu0 %v4239_v9 }
 0x8ad   :  { %v1595_v63 = vpop.permute.xlu1 %1594  ;;  %3682 = vmatprep.subr.bf16.mxu0 %v4251_v22 }
 0x8ae   :  { %3523 = vmatmul.mubr.msk.f32.vlgmr.msra.gmra.mrb[22].mxu1 %vm96_vm0, %v1595_v63 }
 0x8af   :  { %3688 = vmatpush3.bf16.msra.mxu1 %v4248_v17 }
 0x8b0   :  { %3684 = vmatpush3.bf16.msra.mxu0 %v4251_v22  ;;  %3690 = vmatprep.subr.bf16.mxu1 %v4261_v28 }
 0x8b1   :  { %3694 = vmatprep.subr.bf16.mxu0 %v4239_v9 }
 0x8b3   :  { %3692 = vmatpush3.bf16.msra.mxu1 %v4261_v28 }
 0x8b4   :  { %3702 = vmatprep.subr.bf16.mxu1 %v4248_v17 }
 0x97e   :  { %v3513_v0 = vpop.f32.mrb[22].mxu0 }
 0x97f   :  { %v1581_v1 = vpop.f32.mrb[23].mxu0  ;;  %v1587_v7 = vadd.f32 %v3513_v0, %v4369_v48 }
 0x980   :  { %v1582_v3 = vadd.f32 %v4369_v48, %v1581_v1 }
 0x981   :  { %v3524_v4 = vpop.f32.mrb[22].mxu1  ;;  %v1676_v16 = vadd.f32 %v1587_v7, %v1501_v14 }
 0x982   :  { %1691 = vrot.lane.b32.xlu0 %v1582_v3, %s4112_s13  ;;  %v1666_v5 = vpop.f32.mrb[23].mxu1  ;;  %v1672_v8 = vadd.f32 %v3524_v4, %v4378_v50  ;;  %v1675_v12 = vadd.f32 %v1582_v3, %v1500_v11 }
 0x983   :  { %v1667_v6 = vadd.f32 %v4378_v50, %v1666_v5  ;;  %v3194_v25 = vmul.f32 -1.442695, %v1676_v16 }
 0x984   :  { %v3193_v18 = vmul.f32 -1.442695, %v1675_v12  ;;  %v1728_v21 = vadd.f32 %v1672_v8, %v1504_v19 }
 0x985   :  { %1743 = vrot.lane.b32.xlu1 %v1667_v6, %s4112_s13  ;;  %v1727_v15 = vadd.f32 %v1667_v6, %v1503_v13 }
 0x986   :  { %1693 = vrot.lane.b32.xlu0 %v1587_v7, %s4112_s13  ;;  %3846 = vpow2.f32 %v3193_v18  ;;  %v3196_v26 = vmul.f32 -1.442695, %v1728_v21 }
 0x987   :  { %v3195_v24 = vmul.f32 -1.442695, %v1727_v15 }
 0x989   :  { %1745 = vrot.lane.b32.xlu1 %v1672_v8, %s4112_s13  ;;  %3848 = vpow2.f32 %v3195_v24 }
 0x98a   :  { %3850 = vpow2.f32 %v3194_v25 }
 0x98b   :  { %3852 = vpow2.f32 %v3196_v26 }
 0x990   :  { %v3847_v29 = vpop.eup %3846 }
 0x991   :  { %v1683_v31 = vadd.f32 1.0, %v3847_v29 }
 0x993   :  { %v3849_v30 = vpop.eup %3848  ;;  %3854 = vrcp.f32 %v1683_v31 }
 0x994   :  { %v3851_v32 = vpop.eup %3850  ;;  %v1735_v38 = vadd.f32 1.0, %v3849_v30 }
 0x995   :  { %v3853_v40 = vpop.eup %3852  ;;  %v1684_v41 = vadd.f32 1.0, %v3851_v32 }
 0x996   :  { %v1736_v42 = vadd.f32 1.0, %v3853_v40  ;;  %3856 = vrcp.f32 %v1735_v38 }
 0x997   :  { %3858 = vrcp.f32 %v1684_v41 }
 0x998   :  { %3860 = vrcp.f32 %v1736_v42 }
 0x99d   :  { %v3855_v43 = vpop.eup %3854 }
 0x99e   :  { %v1711_v7 = vsub.f32 1.0, %v3855_v43 }
 0x9a0   :  { %v3857_v36 = vpop.eup %3856 }
 0x9a1   :  { %v3859_v45 = vpop.eup %3858  ;;  %v1775_v18 = vmul.f32 %v3857_v36, %v4499_v51 }
 0x9a2   :  { %v3861_v49 = vpop.eup %3860  ;;  %v1712_v16 = vsub.f32 1.0, %v3859_v45  ;;  %v1724_v24 = vmul.f32 %v3859_v45, %v4501_v53 }
 0x9a3   :  { %v1764_v29 = vsub.f32 1.0, %v3861_v49  ;;  %v1776_v32 = vmul.f32 %v3861_v49, %v4508_v57 }
 0x9f4   :  { %v1692_v33 = vpop.permute.xlu0 %1691 }
 0x9f5   :  { %v1697_v34 = vmul.f32 %v3855_v43, %v1692_v33 }
 0x9f7   :  { %1701 = vrot.lane.b32.xlu0 %v1697_v34, %s4112_s13  ;;  %v1744_v44 = vpop.permute.xlu1 %1743 }
 0x9f8   :  { %v1694_v46 = vpop.permute.xlu0 %1693  ;;  %v1749_v47 = vmul.f32 %v3857_v36, %v1744_v44 }
 0x9f9   :  { %v1698_v37 = vmul.f32 %v3859_v45, %v1694_v46 }
 0x9fa   :  { %1753 = vrot.lane.b32.xlu1 %v1749_v47, %s4112_s13 }
 0x9fb   :  { %1703 = vrot.lane.b32.xlu0 %v1698_v37, %s4112_s13  ;;  %v1746_v52 = vpop.permute.xlu1 %1745 }
 0x9fc   :  { %v1750_v39 = vmul.f32 %v3861_v49, %v1746_v52  ;;  %v1810_v52 = vld [vmem:[#allocation2 + $0x40] sm:$0xff] }
 0x9fe   :  { %1755 = vrot.lane.b32.xlu1 %v1750_v39, %s4112_s13 }
 0xa69   :  { %v1702_v55 = vpop.permute.xlu0 %1701 }
 0xa6a   :  { %v1707_v56 = vadd.f32 %v1702_v55, %v1500_v11  ;;  %v1723_v11 = vmul.f32 %v3855_v43, %v4493_v35  ;;  %v1813_v55 = vld [vmem:[#allocation3 + $0x30] sm:$0xff] }
 0xa6c   :  { %3862 = vtanh.f32 %v1707_v56  ;;  %v1754_v58 = vpop.permute.xlu1 %1753  ;;  %v1811_v56 = vld [vmem:[#allocation2 + $0x48] sm:$0xff] }
 0xa6d   :  { %v1759_v59 = vadd.f32 %v1754_v58, %v1503_v13  ;;  %v1704_v62 = vpop.permute.xlu0 %1703  ;;  %v1763_v13 = vsub.f32 1.0, %v3857_v36 }
 0xa6e   :  { %v1708_v63 = vadd.f32 %v1704_v62, %v1501_v14 }
 0xa6f   :  { %3864 = vtanh.f32 %v1759_v59 }
 0xa70   :  { %3866 = vtanh.f32 %v1708_v63  ;;  %v1756_v0 = vpop.permute.xlu1 %1755  ;;  %v1814_v63 = vld [vmem:[#allocation3 + $0x38] sm:$0xff] }
 0xa71   :  { %v1760_v1 = vadd.f32 %v1756_v0, %v1504_v19 }
 0xa73   :  { %3868 = vtanh.f32 %v1760_v1 }
 0xa76   :  { %v3863_v3 = vpop.eup %3862 }
 0xa77   :  { %1715 = vrot.lane.b32.xlu0 %v3863_v3, %s4120_s15 }
 0xa79   :  { %v3865_v4 = vpop.eup %3864 }
 0xa7a   :  { %v3867_v5 = vpop.eup %3866  ;;  %1767 = vrot.lane.b32.xlu1 %v3865_v4, %s4120_s15 }
 0xa7b   :  { %1717 = vrot.lane.b32.xlu0 %v3867_v5, %s4120_s15 }
 0xa7d   :  { %v3869_v6 = vpop.eup %3868 }
 0xa7e   :  { %1769 = vrot.lane.b32.xlu1 %v3869_v6, %s4120_s15 }
 0xae9   :  { %v1716_v8 = vpop.permute.xlu0 %1715 }
 0xaea   :  { %v1721_v12 = vmul.f32 %v1716_v8, %v1711_v7 }
 0xaec   :  { %v4541_v14 = vadd.f32 %v1723_v11, %v1721_v12  ;;  %v1768_v15 = vpop.permute.xlu1 %1767 }
 0xaed   :  { %v1773_v19 = vmul.f32 %v1768_v15, %v1763_v13  ;;  %v1718_v21 = vpop.permute.xlu0 %1717 }
 0xaee   :  { %v1722_v25 = vmul.f32 %v1718_v21, %v1712_v16  ;;  %1817 = vrot.lane.b32.xlu0 %v4541_v14, %s4120_s15 }
 0xaef   :  { %v4547_v26 = vadd.f32 %v1775_v18, %v1773_v19 }
 0xaf0   :  { %v4549_v30 = vadd.f32 %v1724_v24, %v1722_v25  ;;  %v1770_v31 = vpop.permute.xlu1 %1769 }
 0xaf1   :  { %v1774_v38 = vmul.f32 %v1770_v31, %v1764_v29  ;;  %1902 = vrot.lane.b32.xlu1 %v4547_v26, %s4120_s15 }
 0xaf2   :  { %1819 = vrot.lane.b32.xlu0 %v4549_v30, %s4120_s15 }
 0xaf3   :  { %v4556_v40 = vadd.f32 %v1776_v32, %v1774_v38 }
 0xaf5   :  { %1904 = vrot.lane.b32.xlu1 %v4556_v40, %s4120_s15 }
 0xb60   :  { %v1818_v41 = vpop.permute.xlu0 %1817 }
 0xb61   :  { %3533 = vmatprep.mubr.msk.f32.mxu0 %vm96_vm0, %v1818_v41 }
 0xb63   :  { %v1903_v42 = vpop.permute.xlu1 %1902 }
 0xb64   :  { %v1820_v43 = vpop.permute.xlu0 %1819  ;;  %3544 = vmatprep.mubr.msk.f32.mxu1 %vm96_vm0, %v1903_v42 }
 0xb65   :  { %3534 = vmatmul.mubr.msk.f32.vlgmr.msra.gmra.mrb[24].mxu0 %vm96_vm0, %v1820_v43 }
 0xb66   :  { %3696 = vmatpush3.bf16.msra.mxu0 %v4239_v9 }
 0xb67   :  { %v1905_v33 = vpop.permute.xlu1 %1904  ;;  %3698 = vmatprep.subr.bf16.mxu0 %v4251_v22 }
 0xb68   :  { %3545 = vmatmul.mubr.msk.f32.vlgmr.msra.gmra.mrb[24].mxu1 %vm96_vm0, %v1905_v33 }
 0xb69   :  { %3704 = vmatpush3.bf16.msra.mxu1 %v4248_v17 }
 0xb6a   :  { %3700 = vmatpush3.bf16.msra.mxu0 %v4251_v22  ;;  %3706 = vmatprep.subr.bf16.mxu1 %v4261_v28 }
 0xb6b   :  { %3710 = vmatprep.subr.bf16.mxu0 %v4239_v9 }
 0xb6d   :  { %3708 = vmatpush3.bf16.msra.mxu1 %v4261_v28 }
 0xb6e   :  { %3718 = vmatprep.subr.bf16.mxu1 %v4248_v17 }
 0xc38   :  { %v3535_v34 = vpop.f32.mrb[24].mxu0 }
 0xc39   :  { %v1891_v36 = vpop.f32.mrb[25].mxu0  ;;  %v1897_v37 = vadd.f32 %v3535_v34, %v4369_v48 }
 0xc3a   :  { %v1892_v44 = vadd.f32 %v4369_v48, %v1891_v36 }
 0xc3b   :  { %v3546_v45 = vpop.f32.mrb[24].mxu1  ;;  %v1986_v59 = vadd.f32 %v1897_v37, %v1811_v56 }
 0xc3c   :  { %2001 = vrot.lane.b32.xlu0 %v1892_v44, %s4112_s13  ;;  %v1976_v46 = vpop.f32.mrb[25].mxu1  ;;  %v1982_v49 = vadd.f32 %v3546_v45, %v4378_v50  ;;  %v1985_v39 = vadd.f32 %v1892_v44, %v1810_v52 }
 0xc3d   :  { %v1977_v47 = vadd.f32 %v4378_v50, %v1976_v46  ;;  %v3206_v3 = vmul.f32 -1.442695, %v1986_v59 }
 0xc3e   :  { %v3205_v62 = vmul.f32 -1.442695, %v1985_v39  ;;  %v2038_v0 = vadd.f32 %v1982_v49, %v1814_v63 }
 0xc3f   :  { %2053 = vrot.lane.b32.xlu1 %v1977_v47, %s4112_s13  ;;  %v2037_v58 = vadd.f32 %v1977_v47, %v1813_v55 }
 0xc40   :  { %2003 = vrot.lane.b32.xlu0 %v1897_v37, %s4112_s13  ;;  %3870 = vpow2.f32 %v3205_v62  ;;  %v3208_v48 = vmul.f32 -1.442695, %v2038_v0 }
 0xc41   :  { %v3207_v1 = vmul.f32 -1.442695, %v2037_v58 }
 0xc43   :  { %2055 = vrot.lane.b32.xlu1 %v1982_v49, %s4112_s13  ;;  %3872 = vpow2.f32 %v3207_v1 }
 0xc44   :  { %3874 = vpow2.f32 %v3206_v3 }
 0xc45   :  { %3876 = vpow2.f32 %v3208_v48 }
 0xc4a   :  { %v3871_v4 = vpop.eup %3870 }
 0xc4b   :  { %v1993_v5 = vadd.f32 1.0, %v3871_v4 }
 0xc4d   :  { %v3873_v50 = vpop.eup %3872  ;;  %3878 = vrcp.f32 %v1993_v5 }
 0xc4e   :  { %v3875_v6 = vpop.eup %3874  ;;  %v2045_v7 = vadd.f32 1.0, %v3873_v50 }
 0xc4f   :  { %v3877_v8 = vpop.eup %3876  ;;  %v1994_v11 = vadd.f32 1.0, %v3875_v6 }
 0xc50   :  { %v2046_v12 = vadd.f32 1.0, %v3877_v8  ;;  %3880 = vrcp.f32 %v2045_v7 }
 0xc51   :  { %3882 = vrcp.f32 %v1994_v11 }
 0xc52   :  { %3884 = vrcp.f32 %v2046_v12 }
 0xc57   :  { %v3879_v13 = vpop.eup %3878 }
 0xc5a   :  { %v3881_v18 = vpop.eup %3880 }
 0xc5b   :  { %v3883_v21 = vpop.eup %3882  ;;  %v2073_v58 = vsub.f32 1.0, %v3881_v18  ;;  %v2085_v0 = vmul.f32 %v3881_v18, %v4547_v26 }
 0xc5c   :  { %v3885_v31 = vpop.eup %3884  ;;  %v2034_v48 = vmul.f32 %v3883_v21, %v4549_v30 }
 0xc5d   :  { %v2074_v5 = vsub.f32 1.0, %v3885_v31  ;;  %v2086_v8 = vmul.f32 %v3885_v31, %v4556_v40 }
 0xcae   :  { %v2002_v15 = vpop.permute.xlu0 %2001 }
 0xcaf   :  { %v2007_v16 = vmul.f32 %v3879_v13, %v2002_v15 }
 0xcb1   :  { %2011 = vrot.lane.b32.xlu0 %v2007_v16, %s4112_s13  ;;  %v2054_v19 = vpop.permute.xlu1 %2053 }
 0xcb2   :  { %v2059_v24 = vmul.f32 %v3881_v18, %v2054_v19  ;;  %v2004_v25 = vpop.permute.xlu0 %2003 }
 0xcb3   :  { %v2008_v29 = vmul.f32 %v3883_v21, %v2004_v25 }
 0xcb4   :  { %2063 = vrot.lane.b32.xlu1 %v2059_v24, %s4112_s13  ;;  %v4623_v24 = vld [vmem:[%s4919_s5] ss:$0 sm:$0xff] }
 0xcb5   :  { %2013 = vrot.lane.b32.xlu0 %v2008_v29, %s4112_s13  ;;  %v2056_v32 = vpop.permute.xlu1 %2055 }
 0xcb6   :  { %v2060_v38 = vmul.f32 %v3885_v31, %v2056_v32  ;;  %v4630_v32 = vld [vmem:[%s4919_s5 + $0x1] ss:$0 sm:$0xff]  ;;  %s4121_s5 = smov [#allocation13]  }
 0xcb7   :  { %s3072_s18 = sshll.u32 %s4121_s5, 4  ;;  %s3073_s18 = int_to_ptr.vmem [resolvable:$true] %s3072_s18 }
 0xcb8   :  { %2065 = vrot.lane.b32.xlu1 %v2060_v38, %s4112_s13  ;;  %s4056_s21 = scalar_lea.vmem %s3073_s18, 1024  ;;  %p4061_p5 = scmp.lt.s32.totalorder %s3073_s18, %s3073_s18 }
 0xcb9   :  { %p4057_p4 = scmp.ne.s32.totalorder %s3073_s18, %s4056_s21  ;;  %p4062_p6 = scmp.lt.s32.totalorder %s4056_s21, %s4056_s21 }
 0xcbb   :  { %p4063_p7 = por %p4062_p6, %p4061_p5 }
 0xcbd   :  { %p4064_p8 = pnand %p4063_p7, %p4057_p4 }
 0xd23   :  { %v2012_v41 = vpop.permute.xlu0 %2011 }
 0xd24   :  { %v2017_v42 = vadd.f32 %v2012_v41, %v1810_v52  ;;  %v2021_v52 = vsub.f32 1.0, %v3879_v13 }
 0xd26   :  { %3886 = vtanh.f32 %v2017_v42  ;;  %v2064_v43 = vpop.permute.xlu1 %2063 }
 0xd27   :  { %v2069_v33 = vadd.f32 %v2064_v43, %v1813_v55  ;;  %v2014_v34 = vpop.permute.xlu0 %2013  ;;  %v2033_v55 = vmul.f32 %v3879_v13, %v4541_v14  ;;  %v2120_v43 = vld [vmem:[#allocation2 + $0x50] sm:$0xff] }
 0xd28   :  { %v2018_v36 = vadd.f32 %v2014_v34, %v1811_v56  ;;  %v2123_v34 = vld [vmem:[#allocation3 + $0x20] sm:$0xff] }
 0xd29   :  { %3888 = vtanh.f32 %v2069_v33 }
 0xd2a   :  { %3890 = vtanh.f32 %v2018_v36  ;;  %v2066_v44 = vpop.permute.xlu1 %2065  ;;  %v2121_v36 = vld [vmem:[#allocation2 + $0x58] sm:$0xff] }
 0xd2b   :  { %v2070_v45 = vadd.f32 %v2066_v44, %v1814_v63  ;;  %v2022_v63 = vsub.f32 1.0, %v3883_v21 }
 0xd2d   :  { %3892 = vtanh.f32 %v2070_v45 }
 0xd30   :  { %v3887_v46 = vpop.eup %3886 }
 0xd31   :  { %2025 = vrot.lane.b32.xlu0 %v3887_v46, %s4120_s15 }
 0xd33   :  { %v3889_v47 = vpop.eup %3888 }
 0xd34   :  { %v3891_v37 = vpop.eup %3890  ;;  %2077 = vrot.lane.b32.xlu1 %v3889_v47, %s4120_s15  ;;  %v2124_v47 = vld [vmem:[#allocation3 + $0x28] sm:$0xff] }
 0xd35   :  { %2027 = vrot.lane.b32.xlu0 %v3891_v37, %s4120_s15 }
 0xd37   :  { %v3893_v49 = vpop.eup %3892 }
 0xd38   :  { %2079 = vrot.lane.b32.xlu1 %v3893_v49, %s4120_s15 }
 0xda3   :  { %v2026_v39 = vpop.permute.xlu0 %2025 }
 0xda4   :  { %v2031_v56 = vmul.f32 %v2026_v39, %v2021_v52 }
 0xda6   :  { %v4589_v59 = vadd.f32 %v2033_v55, %v2031_v56  ;;  %v2078_v62 = vpop.permute.xlu1 %2077 }
 0xda7   :  { %v2083_v1 = vmul.f32 %v2078_v62, %v2073_v58  ;;  %v2028_v3 = vpop.permute.xlu0 %2027 }
 0xda8   :  { %v2032_v4 = vmul.f32 %v2028_v3, %v2022_v63  ;;  %2127 = vrot.lane.b32.xlu0 %v4589_v59, %s4120_s15 }
 0xda9   :  { %v4595_v50 = vadd.f32 %v2085_v0, %v2083_v1 }
 0xdaa   :  { %v4597_v6 = vadd.f32 %v2034_v48, %v2032_v4  ;;  %v2080_v7 = vpop.permute.xlu1 %2079 }
 0xdab   :  { %v2084_v11 = vmul.f32 %v2080_v7, %v2074_v5  ;;  %2212 = vrot.lane.b32.xlu1 %v4595_v50, %s4120_s15 }
 0xdac   :  { %2129 = vrot.lane.b32.xlu0 %v4597_v6, %s4120_s15 }
 0xdad   :  { %v4604_v12 = vadd.f32 %v2086_v8, %v2084_v11 }
 0xdaf   :  { %2214 = vrot.lane.b32.xlu1 %v4604_v12, %s4120_s15 }
 0xe1a   :  { %v2128_v13 = vpop.permute.xlu0 %2127 }
 0xe1b   :  { %3555 = vmatprep.mubr.msk.f32.mxu0 %vm96_vm0, %v2128_v13 }
 0xe1d   :  { %v2213_v15 = vpop.permute.xlu1 %2212 }
 0xe1e   :  { %v2130_v16 = vpop.permute.xlu0 %2129  ;;  %3566 = vmatprep.mubr.msk.f32.mxu1 %vm96_vm0, %v2213_v15 }
 0xe1f   :  { %3556 = vmatmul.mubr.msk.f32.vlgmr.msra.gmra.mrb[26].mxu0 %vm96_vm0, %v2130_v16 }
 0xe20   :  { %3712 = vmatpush3.bf16.msra.mxu0 %v4239_v9 }
 0xe21   :  { %v2215_v18 = vpop.permute.xlu1 %2214  ;;  %3714 = vmatprep.subr.bf16.mxu0 %v4251_v22 }
 0xe22   :  { %3567 = vmatmul.mubr.msk.f32.vlgmr.msra.gmra.mrb[26].mxu1 %vm96_vm0, %v2215_v18 }
 0xe23   :  { %3720 = vmatpush3.bf16.msra.mxu1 %v4248_v17 }
 0xe24   :  { %3716 = vmatpush3.bf16.msra.mxu0 %v4251_v22  ;;  %3722 = vmatprep.subr.bf16.mxu1 %v4261_v28 }
 0xe25   :  { %3726 = vmatprep.subr.bf16.mxu0 %v4239_v9 }
 0xe27   :  { %3724 = vmatpush3.bf16.msra.mxu1 %v4261_v28 }
 0xe28   :  { %3734 = vmatprep.subr.bf16.mxu1 %v4248_v17 }
 0xef2   :  { %v3557_v19 = vpop.f32.mrb[26].mxu0 }
 0xef3   :  { %v2201_v21 = vpop.f32.mrb[27].mxu0  ;;  %v2207_v41 = vadd.f32 %v4623_v24, %v3557_v19 }
 0xef4   :  { %v2202_v25 = vadd.f32 %v4623_v24, %v2201_v21 }
 0xef5   :  { %v3568_v29 = vpop.f32.mrb[26].mxu1  ;;  %v2296_v45 = vadd.f32 %v2207_v41, %v2121_v36 }
 0xef6   :  { %2311 = vrot.lane.b32.xlu0 %v2202_v25, %s4112_s13  ;;  %v2286_v31 = vpop.f32.mrb[27].mxu1  ;;  %v2292_v42 = vadd.f32 %v4630_v32, %v3568_v29  ;;  %v2295_v33 = vadd.f32 %v2202_v25, %v2120_v43 }
 0xef7   :  { %v2287_v38 = vadd.f32 %v4630_v32, %v2286_v31  ;;  %v3218_v52 = vmul.f32 -1.442695, %v2296_v45 }
 0xef8   :  { %v3217_v46 = vmul.f32 -1.442695, %v2295_v33  ;;  %v2348_v37 = vadd.f32 %v2292_v42, %v2124_v47 }
 0xef9   :  { %2363 = vrot.lane.b32.xlu1 %v2287_v38, %s4112_s13  ;;  %v2347_v44 = vadd.f32 %v2287_v38, %v2123_v34 }
 0xefa   :  { %2313 = vrot.lane.b32.xlu0 %v2207_v41, %s4112_s13  ;;  %3894 = vpow2.f32 %v3217_v46  ;;  %v3220_v39 = vmul.f32 -1.442695, %v2348_v37 }
 0xefb   :  { %v3219_v49 = vmul.f32 -1.442695, %v2347_v44 }
 0xefd   :  { %2365 = vrot.lane.b32.xlu1 %v2292_v42, %s4112_s13  ;;  %3896 = vpow2.f32 %v3219_v49 }
 0xefe   :  { %3898 = vpow2.f32 %v3218_v52 }
 0xeff   :  { %3900 = vpow2.f32 %v3220_v39 }
 0xf04   :  { %v3895_v55 = vpop.eup %3894 }
 0xf05   :  { %v2303_v58 = vadd.f32 1.0, %v3895_v55 }
 0xf07   :  { %v3897_v56 = vpop.eup %3896  ;;  %3902 = vrcp.f32 %v2303_v58 }
 0xf08   :  { %v3899_v62 = vpop.eup %3898  ;;  %v2355_v63 = vadd.f32 1.0, %v3897_v56 }
 0xf09   :  { %v3901_v0 = vpop.eup %3900  ;;  %v2304_v1 = vadd.f32 1.0, %v3899_v62 }
 0xf0a   :  { %v2356_v3 = vadd.f32 1.0, %v3901_v0  ;;  %3904 = vrcp.f32 %v2355_v63 }
 0xf0b   :  { %3906 = vrcp.f32 %v2304_v1 }
 0xf0c   :  { %3908 = vrcp.f32 %v2356_v3 }
 0xf11   :  { %v3903_v48 = vpop.eup %3902 }
 0xf14   :  { %v3905_v7 = vpop.eup %3904 }
 0xf15   :  { %v3907_v11 = vpop.eup %3906  ;;  %v2383_v39 = vsub.f32 1.0, %v3905_v7  ;;  %v2395_v58 = vmul.f32 %v3905_v7, %v4595_v50 }
 0xf16   :  { %v3909_v18 = vpop.eup %3908  ;;  %v2332_v56 = vsub.f32 1.0, %v3907_v11  ;;  %v2344_v0 = vmul.f32 %v3907_v11, %v4597_v6 }
 0xf68   :  { %v2312_v4 = vpop.permute.xlu0 %2311 }
 0xf69   :  { %v2317_v5 = vmul.f32 %v3903_v48, %v2312_v4  ;;  %v2384_v4 = vsub.f32 1.0, %v3909_v18 }
 0xf6b   :  { %2321 = vrot.lane.b32.xlu0 %v2317_v5, %s4112_s13  ;;  %v2364_v8 = vpop.permute.xlu1 %2363 }
 0xf6c   :  { %v2369_v13 = vmul.f32 %v3905_v7, %v2364_v8  ;;  %v2314_v15 = vpop.permute.xlu0 %2313  ;;  %v2396_v8 = vmul.f32 %v3909_v18, %v4604_v12 }
 0xf6d   :  { %v2318_v16 = vmul.f32 %v3907_v11, %v2314_v15 }
 0xf6e   :  { %2373 = vrot.lane.b32.xlu1 %v2369_v13, %s4112_s13 }
 0xf6f   :  { %2323 = vrot.lane.b32.xlu0 %v2318_v16, %s4112_s13  ;;  %v2366_v19 = vpop.permute.xlu1 %2365 }
 0xf70   :  { %v2370_v21 = vmul.f32 %v3909_v18, %v2366_v19 }
 0xf72   :  { %2375 = vrot.lane.b32.xlu1 %v2370_v21, %s4112_s13 }
 0xfdd   :  { %v2322_v25 = vpop.permute.xlu0 %2321 }
 0xfde   :  { %v2327_v29 = vadd.f32 %v2322_v25, %v2120_v43 }
 0xfe0   :  { %3910 = vtanh.f32 %v2327_v29  ;;  %v2374_v31 = vpop.permute.xlu1 %2373 }
 0xfe1   :  { %v2379_v38 = vadd.f32 %v2374_v31, %v2123_v34  ;;  %v2324_v41 = vpop.permute.xlu0 %2323  ;;  %v2331_v34 = vsub.f32 1.0, %v3903_v48 }
 0xfe2   :  { %v2328_v42 = vadd.f32 %v2324_v41, %v2121_v36  ;;  %v2343_v36 = vmul.f32 %v3903_v48, %v4589_v59  ;;  %v2433_v41 = vld [vmem:[#allocation3 + $0x10] sm:$0xff] }
 0xfe3   :  { %3912 = vtanh.f32 %v2379_v38 }
 0xfe4   :  { %3914 = vtanh.f32 %v2328_v42  ;;  %v2376_v33 = vpop.permute.xlu1 %2375  ;;  %v2431_v42 = vld [vmem:[#allocation2 + $0x68] sm:$0xff] }
 0xfe5   :  { %v2380_v44 = vadd.f32 %v2376_v33, %v2124_v47 }
 0xfe7   :  { %3916 = vtanh.f32 %v2380_v44 }
 0xfea   :  { %v3911_v45 = vpop.eup %3910 }
 0xfeb   :  { %2335 = vrot.lane.b32.xlu0 %v3911_v45, %s4120_s15 }
 0xfed   :  { %v3913_v46 = vpop.eup %3912 }
 0xfee   :  { %v3915_v37 = vpop.eup %3914  ;;  %2387 = vrot.lane.b32.xlu1 %v3913_v46, %s4120_s15  ;;  %v2434_v46 = vld [vmem:[#allocation3 + $0x18] sm:$0xff] }
 0xfef   :  { %2337 = vrot.lane.b32.xlu0 %v3915_v37, %s4120_s15 }
 0xff1   :  { %v3917_v43 = vpop.eup %3916 }
 0xff2   :  { %2389 = vrot.lane.b32.xlu1 %v3917_v43, %s4120_s15 }
0x105d   :  { %v2336_v49 = vpop.permute.xlu0 %2335 }
0x105e   :  { %v2341_v52 = vmul.f32 %v2336_v49, %v2331_v34 }
0x1060   :  { %v4647_v47 = vadd.f32 %v2343_v36, %v2341_v52  ;;  %v2388_v55 = vpop.permute.xlu1 %2387 }
0x1061   :  { %v2393_v62 = vmul.f32 %v2388_v55, %v2383_v39  ;;  %v2338_v63 = vpop.permute.xlu0 %2337 }
0x1062   :  { %v2342_v1 = vmul.f32 %v2338_v63, %v2332_v56  ;;  %2437 = vrot.lane.b32.xlu0 %v4647_v47, %s4120_s15 }
0x1063   :  { %v4653_v3 = vadd.f32 %v2395_v58, %v2393_v62 }
0x1064   :  { %v4655_v48 = vadd.f32 %v2344_v0, %v2342_v1  ;;  %v2390_v5 = vpop.permute.xlu1 %2389 }
0x1065   :  { %v2394_v13 = vmul.f32 %v2390_v5, %v2384_v4  ;;  %2522 = vrot.lane.b32.xlu1 %v4653_v3, %s4120_s15 }
0x1066   :  { %2439 = vrot.lane.b32.xlu0 %v4655_v48, %s4120_s15 }
0x1067   :  { %v4662_v7 = vadd.f32 %v2396_v8, %v2394_v13 }
0x1069   :  { %2524 = vrot.lane.b32.xlu1 %v4662_v7, %s4120_s15 }
0x10d4   :  { %v2438_v11 = vpop.permute.xlu0 %2437 }
0x10d5   :  { %3577 = vmatprep.mubr.msk.f32.mxu0 %vm96_vm0, %v2438_v11 }
0x10d7   :  { %v2523_v15 = vpop.permute.xlu1 %2522 }
0x10d8   :  { %v2440_v16 = vpop.permute.xlu0 %2439  ;;  %3588 = vmatprep.mubr.msk.f32.mxu1 %vm96_vm0, %v2523_v15 }
0x10d9   :  { %3578 = vmatmul.mubr.msk.f32.vlgmr.msra.gmra.mrb[28].mxu0 %vm96_vm0, %v2440_v16 }
0x10da   :  { %3728 = vmatpush3.bf16.msra.mxu0 %v4239_v9 }
0x10db   :  { %v2525_v18 = vpop.permute.xlu1 %2524  ;;  %3730 = vmatprep.subr.bf16.mxu0 %v4251_v22 }
0x10dc   :  { %3589 = vmatmul.mubr.msk.f32.vlgmr.msra.gmra.mrb[28].mxu1 %vm96_vm0, %v2525_v18 }
0x10dd   :  { %3736 = vmatpush3.bf16.msra.mxu1 %v4248_v17 }
0x10de   :  { %3732 = vmatpush3.bf16.msra.mxu0 %v4251_v22  ;;  %3738 = vmatprep.subr.bf16.mxu1 %v4261_v28  ;;  %v2430_v22 = vld [vmem:[#allocation2 + $0x60] sm:$0xff] }
0x10e1   :  { %3740 = vmatpush3.bf16.msra.mxu1 %v4261_v28 }
0x11ac   :  { %v3579_v19 = vpop.f32.mrb[28].mxu0 }
0x11ad   :  { %v2511_v21 = vpop.f32.mrb[29].mxu0  ;;  %v2517_v38 = vadd.f32 %v4623_v24, %v3579_v19 }
0x11ae   :  { %v2512_v25 = vadd.f32 %v4623_v24, %v2511_v21 }
0x11af   :  { %v3590_v29 = vpop.f32.mrb[28].mxu1  ;;  %v2606_v44 = vadd.f32 %v2517_v38, %v2431_v42 }
0x11b0   :  { %2621 = vrot.lane.b32.xlu0 %v2512_v25, %s4112_s13  ;;  %v2596_v9 = vpop.f32.mrb[29].mxu1  ;;  %v2602_v17 = vadd.f32 %v4630_v32, %v3590_v29  ;;  %v2605_v28 = vadd.f32 %v2512_v25, %v2430_v22 }
0x11b1   :  { %v2597_v31 = vadd.f32 %v4630_v32, %v2596_v9  ;;  %v3230_v34 = vmul.f32 -1.442695, %v2606_v44 }
0x11b2   :  { %v3229_v45 = vmul.f32 -1.442695, %v2605_v28  ;;  %v2658_v37 = vadd.f32 %v2602_v17, %v2434_v46 }
0x11b3   :  { %2673 = vrot.lane.b32.xlu1 %v2597_v31, %s4112_s13  ;;  %v2657_v33 = vadd.f32 %v2597_v31, %v2433_v41 }
0x11b4   :  { %2623 = vrot.lane.b32.xlu0 %v2517_v38, %s4112_s13  ;;  %3918 = vpow2.f32 %v3229_v45  ;;  %v3232_v49 = vmul.f32 -1.442695, %v2658_v37 }
0x11b5   :  { %v3231_v43 = vmul.f32 -1.442695, %v2657_v33 }
0x11b7   :  { %2675 = vrot.lane.b32.xlu1 %v2602_v17, %s4112_s13  ;;  %3920 = vpow2.f32 %v3231_v43 }
0x11b8   :  { %3922 = vpow2.f32 %v3230_v34 }
0x11b9   :  { %3924 = vpow2.f32 %v3232_v49 }
0x11be   :  { %v3919_v36 = vpop.eup %3918 }
0x11bf   :  { %v2613_v39 = vadd.f32 1.0, %v3919_v36 }
0x11c1   :  { %v3921_v52 = vpop.eup %3920  ;;  %3926 = vrcp.f32 %v2613_v39 }
0x11c2   :  { %v3923_v55 = vpop.eup %3922  ;;  %v2665_v56 = vadd.f32 1.0, %v3921_v52 }
0x11c3   :  { %v3925_v58 = vpop.eup %3924  ;;  %v2614_v62 = vadd.f32 1.0, %v3923_v55 }
0x11c4   :  { %v2666_v63 = vadd.f32 1.0, %v3925_v58  ;;  %3928 = vrcp.f32 %v2665_v56 }
0x11c5   :  { %3930 = vrcp.f32 %v2614_v62 }
0x11c6   :  { %3932 = vrcp.f32 %v2666_v63 }
0x11cb   :  { %v3927_v0 = vpop.eup %3926 }
0x11ce   :  { %v3929_v5 = vpop.eup %3928 }
0x11cf   :  { %v3931_v13 = vpop.eup %3930  ;;  %v2693_v49 = vsub.f32 1.0, %v3929_v5  ;;  %v2705_v39 = vmul.f32 %v3929_v5, %v4653_v3 }
0x11d0   :  { %v3933_v18 = vpop.eup %3932  ;;  %v2642_v52 = vsub.f32 1.0, %v3931_v13  ;;  %v2654_v58 = vmul.f32 %v3931_v13, %v4655_v48 }
0x1222   :  { %v2622_v1 = vpop.permute.xlu0 %2621 }
0x1223   :  { %v2627_v4 = vmul.f32 %v3927_v0, %v2622_v1  ;;  %v2694_v1 = vsub.f32 1.0, %v3933_v18 }
0x1225   :  { %2631 = vrot.lane.b32.xlu0 %v2627_v4, %s4112_s13  ;;  %v2674_v8 = vpop.permute.xlu1 %2673 }
0x1226   :  { %v2679_v11 = vmul.f32 %v3929_v5, %v2674_v8  ;;  %v2624_v15 = vpop.permute.xlu0 %2623  ;;  %v2706_v8 = vmul.f32 %v3933_v18, %v4662_v7 }
0x1227   :  { %v2628_v16 = vmul.f32 %v3931_v13, %v2624_v15 }
0x1228   :  { %2683 = vrot.lane.b32.xlu1 %v2679_v11, %s4112_s13 }
0x1229   :  { %2633 = vrot.lane.b32.xlu0 %v2628_v16, %s4112_s13  ;;  %v2676_v19 = vpop.permute.xlu1 %2675 }
0x122a   :  { %v2680_v21 = vmul.f32 %v3933_v18, %v2676_v19 }
0x122c   :  { %2685 = vrot.lane.b32.xlu1 %v2680_v21, %s4112_s13 }
0x1297   :  { %v2632_v25 = vpop.permute.xlu0 %2631 }
0x1298   :  { %v2637_v29 = vadd.f32 %v2632_v25, %v2430_v22 }
0x129a   :  { %3934 = vtanh.f32 %v2637_v29  ;;  %v2684_v9 = vpop.permute.xlu1 %2683 }
0x129b   :  { %v2689_v31 = vadd.f32 %v2684_v9, %v2433_v41  ;;  %v2634_v38 = vpop.permute.xlu0 %2633  ;;  %v2641_v41 = vsub.f32 1.0, %v3927_v0 }
0x129c   :  { %v2638_v17 = vadd.f32 %v2634_v38, %v2431_v42  ;;  %v2653_v42 = vmul.f32 %v3927_v0, %v4647_v47 }
0x129d   :  { %3936 = vtanh.f32 %v2689_v31 }
0x129e   :  { %3938 = vtanh.f32 %v2638_v17  ;;  %v2686_v28 = vpop.permute.xlu1 %2685 }
0x129f   :  { %v2690_v33 = vadd.f32 %v2686_v28, %v2434_v46  ;;  %v2741_v28 = vld [vmem:[#allocation2 + $0x78] sm:$0xff] }
0x12a1   :  { %3940 = vtanh.f32 %v2690_v33 }
0x12a4   :  { %v3935_v44 = vpop.eup %3934 }
0x12a5   :  { %2645 = vrot.lane.b32.xlu0 %v3935_v44, %s4120_s15  ;;  %v2740_v44 = vld [vmem:[#allocation2 + $0x70] sm:$0xff] }
0x12a7   :  { %v3937_v45 = vpop.eup %3936 }
0x12a8   :  { %v3939_v37 = vpop.eup %3938  ;;  %2697 = vrot.lane.b32.xlu1 %v3937_v45, %s4120_s15 }
0x12a9   :  { %2647 = vrot.lane.b32.xlu0 %v3939_v37, %s4120_s15  ;;  %v2743_v37 = vld [vmem:[#allocation3 + $0x8] sm:$0xff] }
0x12ab   :  { %v3941_v22 = vpop.eup %3940 }
0x12ac   :  { %2699 = vrot.lane.b32.xlu1 %v3941_v22, %s4120_s15 }
0x1317   :  { %v2646_v43 = vpop.permute.xlu0 %2645 }
0x1318   :  { %v2651_v34 = vmul.f32 %v2646_v43, %v2641_v41  ;;  %v2742_v41 = vld [vmem:[#allocation3] sm:$0xff] }
0x131a   :  { %v4693_v46 = vadd.f32 %v2653_v42, %v2651_v34  ;;  %v2698_v36 = vpop.permute.xlu1 %2697 }
0x131b   :  { %v2703_v55 = vmul.f32 %v2698_v36, %v2693_v49  ;;  %v2648_v56 = vpop.permute.xlu0 %2647 }
0x131c   :  { %v2652_v62 = vmul.f32 %v2648_v56, %v2642_v52  ;;  %2746 = vrot.lane.b32.xlu0 %v4693_v46, %s4120_s15 }
0x131d   :  { %v4699_v63 = vadd.f32 %v2705_v39, %v2703_v55 }
0x131e   :  { %v4701_v0 = vadd.f32 %v2654_v58, %v2652_v62  ;;  %v2700_v4 = vpop.permute.xlu1 %2699 }
0x131f   :  { %v2704_v11 = vmul.f32 %v2700_v4, %v2694_v1  ;;  %2831 = vrot.lane.b32.xlu1 %v4699_v63, %s4120_s15 }
0x1320   :  { %2748 = vrot.lane.b32.xlu0 %v4701_v0, %s4120_s15 }
0x1321   :  { %v4708_v5 = vadd.f32 %v2706_v8, %v2704_v11 }
0x1323   :  { %2833 = vrot.lane.b32.xlu1 %v4708_v5, %s4120_s15 }
0x138e   :  { %v2747_v13 = vpop.permute.xlu0 %2746 }
0x138f   :  { %3599 = vmatprep.mubr.msk.f32.mxu0 %vm96_vm0, %v2747_v13 }
0x1391   :  { %v2832_v15 = vpop.permute.xlu1 %2831 }
0x1392   :  { %v2749_v16 = vpop.permute.xlu0 %2748  ;;  %3610 = vmatprep.mubr.msk.f32.mxu1 %vm96_vm0, %v2832_v15 }
0x1393   :  { %3600 = vmatmul.mubr.msk.f32.vlgmr.msra.gmra.mrb[30].mxu0 %vm96_vm0, %v2749_v16 }
0x1395   :  { %v2834_v18 = vpop.permute.xlu1 %2833 }
0x1396   :  { %3611 = vmatmul.mubr.msk.f32.vlgmr.msra.gmra.mrb[30].mxu1 %vm96_vm0, %v2834_v18 }
0x1466   :  { %v3601_v19 = vpop.f32.mrb[30].mxu0 }
0x1467   :  { %v2826_v21 = vadd.f32 %v4623_v24, %v3601_v19  ;;  %v2820_v25 = vpop.f32.mrb[31].mxu0 }
0x1468   :  { %v2821_v29 = vadd.f32 %v4623_v24, %v2820_v25 }
0x1469   :  { %2932 = vrot.lane.b32.xlu1 %v2826_v21, %s4112_s13  ;;  %v3612_v9 = vpop.f32.mrb[30].mxu1  ;;  %v2915_v33 = vadd.f32 %v2826_v21, %v2741_v28 }
0x146a   :  { %v2911_v31 = vadd.f32 %v4630_v32, %v3612_v9  ;;  %2930 = vrot.lane.b32.xlu0 %v2821_v29, %s4112_s13  ;;  %v2905_v38 = vpop.f32.mrb[31].mxu1  ;;  %v2914_v45 = vadd.f32 %v2821_v29, %v2740_v44  ;;  %v3250_v9 = vpack.c.bf16 %v4404_v60, %v4404_v60 }
0x146b   :  { %v2906_v17 = vadd.f32 %v4630_v32, %v2905_v38  ;;  %v3242_v24 = vmul.f32 -1.442695, %v2915_v33 }
0x146c   :  { %v2967_v22 = vadd.f32 %v2911_v31, %v2743_v37  ;;  %v3241_v43 = vmul.f32 -1.442695, %v2914_v45 }
0x146d   :  { %2984 = vrot.lane.b32.xlu1 %v2911_v31, %s4112_s13  ;;  %v2966_v42 = vadd.f32 %v2906_v17, %v2742_v41  ;;  %3942 = vpow2.f32 %v3242_v24  ;;  %v3249_v31 = vpack.c.bf16 %v4400_v54, %v4400_v54 }
0x146e   :  { %2982 = vrot.lane.b32.xlu0 %v2906_v17, %s4112_s13  ;;  %v3244_v34 = vmul.f32 -1.442695, %v2967_v22  ;;  %3944 = vpow2.f32 %v3241_v43 }
0x146f   :  { %v3243_v49 = vmul.f32 -1.442695, %v2966_v42 }
0x1470   :  { %3946 = vpow2.f32 %v3244_v34 }
0x1471   :  { %3948 = vpow2.f32 %v3243_v49 }
0x1477   :  { %v3943_v32 = vpop.eup %3942 }
0x1478   :  { %v3945_v36 = vpop.eup %3944  ;;  %v2923_v52 = vadd.f32 1.0, %v3943_v32  ;;  %v3254_v32 = vpack.c.bf16 %v4453_v23, %v4453_v23  ;;  %v3258_v23 = vpack.c.bf16 %v4501_v53, %v4501_v53  ;;  %v3262_v53 = vpack.c.bf16 %v4549_v30, %v4549_v30 }
0x1479   :  { %v2922_v55 = vadd.f32 1.0, %v3945_v36  ;;  %v3253_v36 = vpack.c.bf16 %v4445_v10, %v4445_v10  ;;  %v3257_v10 = vpack.c.bf16 %v4493_v35, %v4493_v35  ;;  %v3261_v35 = vpack.c.bf16 %v4541_v14, %v4541_v14 }
0x147a   :  { %v3947_v39 = vpop.eup %3946  ;;  %3950 = vrcp.f32 %v2923_v52  ;;  %v3266_v30 = vpack.c.bf16 %v4597_v6, %v4597_v6  ;;  %v3265_v14 = vpack.c.bf16 %v4589_v59, %v4589_v59  ;;  %v3270_v6 = vpack.c.bf16 %v4655_v48, %v4655_v48 }
0x147b   :  { %v3949_v56 = vpop.eup %3948  ;;  %v2975_v58 = vadd.f32 1.0, %v3947_v39  ;;  %3952 = vrcp.f32 %v2922_v55  ;;  %v3269_v59 = vpack.c.bf16 %v4647_v47, %v4647_v47  ;;  %v3274_v48 = vpack.c.bf16 %v4701_v0, %v4701_v0 }
0x147c   :  { %v2974_v62 = vadd.f32 1.0, %v3949_v56  ;;  %v3273_v47 = vpack.c.bf16 %v4693_v46, %v4693_v46 }
0x147d   :  { %3954 = vrcp.f32 %v2975_v58 }
0x147e   :  { %3956 = vrcp.f32 %v2974_v62 }
0x1484   :  { %v4724_v1 = vpop.eup %3950 }
0x1485   :  { %v4726_v8 = vpop.eup %3952  ;;  %v2951_v52 = vsub.f32 1.0, %v4724_v1  ;;  %v2963_v56 = vmul.f32 %v4724_v1, %v4701_v0 }
0x1486   :  { %v2950_v55 = vsub.f32 1.0, %v4726_v8 }
0x1487   :  { %v4731_v16 = vpop.eup %3954 }
0x1488   :  { %v4734_v19 = vpop.eup %3956 }
0x14db   :  { %v2933_v4 = vpop.permute.xlu1 %2932 }
0x14dc   :  { %v2937_v11 = vmul.f32 %v4724_v1, %v2933_v4  ;;  %v2931_v13 = vpop.permute.xlu0 %2930  ;;  %v2962_v4 = vmul.f32 %v4726_v8, %v4693_v46  ;;  %v3014_v1 = vmul.f32 %v4734_v19, %v4699_v63 }
0x14dd   :  { %v2936_v15 = vmul.f32 %v4726_v8, %v2931_v13 }
0x14de   :  { %2942 = vrot.lane.b32.xlu1 %v2937_v11, %s4112_s13 }
0x14df   :  { %v2985_v18 = vpop.permute.xlu1 %2984  ;;  %2940 = vrot.lane.b32.xlu0 %v2936_v15, %s4112_s13  ;;  %v3003_v15 = vsub.f32 1.0, %v4731_v16 }
0x14e0   :  { %v2989_v21 = vmul.f32 %v4731_v16, %v2985_v18  ;;  %v2983_v25 = vpop.permute.xlu0 %2982 }
0x14e1   :  { %v2988_v29 = vmul.f32 %v4734_v19, %v2983_v25  ;;  %v3002_v25 = vsub.f32 1.0, %v4734_v19 }
0x14e2   :  { %2994 = vrot.lane.b32.xlu1 %v2989_v21, %s4112_s13 }
0x14e3   :  { %2992 = vrot.lane.b32.xlu0 %v2988_v29, %s4112_s13  ;;  %v3015_v29 = vmul.f32 %v4731_v16, %v4708_v5 }
0x14e6   :  { %857 = vrot.lane.b32.xlu1 %v3250_v9, %s4120_s15 }
0x14e7   :  { %855 = vrot.lane.b32.xlu0 %v3249_v31, %s4120_s15 }
0x1550   :  { %v2943_v38 = vpop.permute.xlu1 %2942 }
0x1551   :  { %v2947_v17 = vadd.f32 %v2943_v38, %v2741_v28  ;;  %v2941_v33 = vpop.permute.xlu0 %2940 }
0x1552   :  { %v2946_v45 = vadd.f32 %v2941_v33, %v2740_v44 }
0x1553   :  { %3958 = vtanh.f32 %v2947_v17 }
0x1554   :  { %3960 = vtanh.f32 %v2946_v45  ;;  %v2995_v24 = vpop.permute.xlu1 %2994 }
0x1555   :  { %v2999_v22 = vadd.f32 %v2995_v24, %v2743_v37  ;;  %v2993_v43 = vpop.permute.xlu0 %2992  ;;  %v3252_v37 = vpack.c.bf16 %v4412_v2, %v4412_v2  ;;  %v3256_v2 = vpack.c.bf16 %v4460_v27, %v4460_v27  ;;  %v3260_v27 = vpack.c.bf16 %v4508_v57, %v4508_v57 }
0x1556   :  { %v2998_v42 = vadd.f32 %v2993_v43, %v2742_v41  ;;  %v3251_v41 = vpack.c.bf16 %v4406_v61, %v4406_v61  ;;  %v3255_v61 = vpack.c.bf16 %v4451_v20, %v4451_v20  ;;  %v3259_v20 = vpack.c.bf16 %v4499_v51, %v4499_v51 }
0x1557   :  { %3962 = vtanh.f32 %v2999_v22  ;;  %v3264_v57 = vpack.c.bf16 %v4556_v40, %v4556_v40  ;;  %v3263_v51 = vpack.c.bf16 %v4547_v26, %v4547_v26  ;;  %v3268_v40 = vpack.c.bf16 %v4604_v12, %v4604_v12 }
0x1558   :  { %3964 = vtanh.f32 %v2998_v42  ;;  %v858_v60 = vpop.permute.xlu1 %857  ;;  %v3267_v26 = vpack.c.bf16 %v4595_v50, %v4595_v50  ;;  %v3272_v12 = vpack.c.bf16 %v4662_v7, %v4662_v7  ;;  %v3271_v50 = vpack.c.bf16 %v4653_v3, %v4653_v3 }
0x1559   :  { %863 = vst.msk [vmem:[#allocation13 + $0x4] sm:$0xf] %vm861_vm2, %v858_v60  ;;  %v856_v54 = vpop.permute.xlu0 %855  ;;  %v3276_v7 = vpack.c.bf16 %v4708_v5, %v4708_v5  ;;  %v3275_v3 = vpack.c.bf16 %v4699_v63, %v4699_v63 }
0x155a   :  { %862 = vst.msk [vmem:[#allocation13] sm:$0xf] %vm861_vm2, %v856_v54 }
0x155d   :  { %v3959_v34 = vpop.eup %3958 }
0x155e   :  { %v3961_v49 = vpop.eup %3960  ;;  %2956 = vrot.lane.b32.xlu1 %v3959_v34, %s4120_s15 }
0x155f   :  { %2954 = vrot.lane.b32.xlu0 %v3961_v49, %s4120_s15 }
0x1561   :  { %v3963_v28 = vpop.eup %3962 }
0x1562   :  { %v3965_v44 = vpop.eup %3964  ;;  %3008 = vrot.lane.b32.xlu1 %v3963_v28, %s4120_s15 }
0x1563   :  { %3006 = vrot.lane.b32.xlu0 %v3965_v44, %s4120_s15 }
0x1566   :  { %872 = vrot.lane.b32.xlu1 %v3252_v37, %s4120_s15 }
0x1567   :  { %870 = vrot.lane.b32.xlu0 %v3251_v41, %s4120_s15 }
0x156a   :  { %1167 = vrot.lane.b32.xlu1 %v3254_v32, %s4120_s15 }
0x156b   :  { %1165 = vrot.lane.b32.xlu0 %v3253_v36, %s4120_s15 }
0x156e   :  { %1182 = vrot.lane.b32.xlu1 %v3256_v2, %s4120_s15 }
0x156f   :  { %1180 = vrot.lane.b32.xlu0 %v3255_v61, %s4120_s15 }
0x1572   :  { %1477 = vrot.lane.b32.xlu1 %v3258_v23, %s4120_s15 }
0x1573   :  { %1475 = vrot.lane.b32.xlu0 %v3257_v10, %s4120_s15 }
0x1576   :  { %1492 = vrot.lane.b32.xlu1 %v3260_v27, %s4120_s15 }
0x1577   :  { %1490 = vrot.lane.b32.xlu0 %v3259_v20, %s4120_s15 }
0x157a   :  { %1787 = vrot.lane.b32.xlu1 %v3262_v53, %s4120_s15 }
0x157b   :  { %1785 = vrot.lane.b32.xlu0 %v3261_v35, %s4120_s15 }
0x157e   :  { %1802 = vrot.lane.b32.xlu1 %v3264_v57, %s4120_s15 }
0x157f   :  { %1800 = vrot.lane.b32.xlu0 %v3263_v51, %s4120_s15 }
0x1582   :  { %2097 = vrot.lane.b32.xlu1 %v3266_v30, %s4120_s15 }
0x1583   :  { %2095 = vrot.lane.b32.xlu0 %v3265_v14, %s4120_s15 }
0x1586   :  { %2112 = vrot.lane.b32.xlu1 %v3268_v40, %s4120_s15 }
0x1587   :  { %2110 = vrot.lane.b32.xlu0 %v3267_v26, %s4120_s15 }
0x158a   :  { %2407 = vrot.lane.b32.xlu1 %v3270_v6, %s4120_s15 }
0x158b   :  { %2405 = vrot.lane.b32.xlu0 %v3269_v59, %s4120_s15 }
0x158e   :  { %2422 = vrot.lane.b32.xlu1 %v3272_v12, %s4120_s15 }
0x158f   :  { %2420 = vrot.lane.b32.xlu0 %v3271_v50, %s4120_s15 }
0x1592   :  { %2717 = vrot.lane.b32.xlu1 %v3274_v48, %s4120_s15 }
0x1593   :  { %2715 = vrot.lane.b32.xlu0 %v3273_v47, %s4120_s15 }
0x1596   :  { %2732 = vrot.lane.b32.xlu1 %v3276_v7, %s4120_s15 }
0x1597   :  { %2730 = vrot.lane.b32.xlu0 %v3275_v3, %s4120_s15 }
0x15d0   :  { %v2957_v39 = vpop.permute.xlu1 %2956 }
0x15d1   :  { %v2961_v58 = vmul.f32 %v2957_v39, %v2951_v52  ;;  %v2955_v62 = vpop.permute.xlu0 %2954 }
0x15d2   :  { %v2960_v11 = vmul.f32 %v2955_v62, %v2950_v55 }
0x15d3   :  { %v2965_v13 = vadd.f32 %v2963_v56, %v2961_v58 }
0x15d4   :  { %v2964_v18 = vadd.f32 %v2962_v4, %v2960_v11  ;;  %v3009_v21 = vpop.permute.xlu1 %3008 }
0x15d5   :  { %v3013_v9 = vmul.f32 %v3009_v21, %v3003_v15  ;;  %3051 = vrot.lane.b32.xlu1 %v2965_v13, %s4120_s15  ;;  %v3007_v0 = vpop.permute.xlu0 %3006  ;;  %v3278_v46 = vpack.c.bf16 %v2965_v13, %v2965_v13 }
0x15d6   :  { %v3012_v31 = vmul.f32 %v3007_v0, %v3002_v25  ;;  %3049 = vrot.lane.b32.xlu0 %v2964_v18, %s4120_s15  ;;  %v3277_v38 = vpack.c.bf16 %v2964_v18, %v2964_v18 }
0x15d7   :  { %v3017_v8 = vadd.f32 %v3015_v29, %v3013_v9 }
0x15d8   :  { %v3016_v17 = vadd.f32 %v3014_v1, %v3012_v31  ;;  %v873_v33 = vpop.permute.xlu1 %872 }
0x15d9   :  { %878 = vst.msk [vmem:[#allocation14 + $0x3c] sm:$0xf] %vm861_vm2, %v873_v33  ;;  %3026 = vrot.lane.b32.xlu1 %v3278_v46, %s4120_s15  ;;  %v871_v5 = vpop.permute.xlu0 %870  ;;  %v3280_v16 = vpack.c.bf16 %v3017_v8, %v3017_v8 }
0x15da   :  { %877 = vst.msk [vmem:[#allocation14 + $0x38] sm:$0xf] %vm861_vm2, %v871_v5  ;;  %3024 = vrot.lane.b32.xlu0 %v3277_v38, %s4120_s15  ;;  %v3279_v45 = vpack.c.bf16 %v3016_v17, %v3016_v17 }
0x15dc   :  { %v1168_v63 = vpop.permute.xlu1 %1167 }
0x15dd   :  { %1173 = vst.msk [vmem:[#allocation13 + $0xc] sm:$0xf] %vm861_vm2, %v1168_v63  ;;  %3041 = vrot.lane.b32.xlu1 %v3280_v16, %s4120_s15  ;;  %v1166_v19 = vpop.permute.xlu0 %1165 }
0x15de   :  { %1172 = vst.msk [vmem:[#allocation13 + $0x8] sm:$0xf] %vm861_vm2, %v1166_v19  ;;  %3039 = vrot.lane.b32.xlu0 %v3279_v45, %s4120_s15 }
0x15e0   :  { %v1183_v24 = vpop.permute.xlu1 %1182 }
0x15e1   :  { %1188 = vst.msk [vmem:[#allocation14 + $0x34] sm:$0xf] %vm861_vm2, %v1183_v24  ;;  %3061 = vrot.lane.b32.xlu1 %v3017_v8, %s4120_s15  ;;  %v1181_v22 = vpop.permute.xlu0 %1180 }
0x15e2   :  { %1187 = vst.msk [vmem:[#allocation14 + $0x30] sm:$0xf] %vm861_vm2, %v1181_v22  ;;  %3059 = vrot.lane.b32.xlu0 %v3016_v17, %s4120_s15 }
0x15e4   :  { %v1478_v43 = vpop.permute.xlu1 %1477 }
0x15e5   :  { %1483 = vst.msk [vmem:[#allocation13 + $0x14] sm:$0xf] %vm861_vm2, %v1478_v43  ;;  %v1476_v42 = vpop.permute.xlu0 %1475 }
0x15e6   :  { %1482 = vst.msk [vmem:[#allocation13 + $0x10] sm:$0xf] %vm861_vm2, %v1476_v42 }
0x15e8   :  { %v1493_v60 = vpop.permute.xlu1 %1492 }
0x15e9   :  { %1498 = vst.msk [vmem:[#allocation14 + $0x2c] sm:$0xf] %vm861_vm2, %v1493_v60  ;;  %v1491_v54 = vpop.permute.xlu0 %1490 }
0x15ea   :  { %1497 = vst.msk [vmem:[#allocation14 + $0x28] sm:$0xf] %vm861_vm2, %v1491_v54 }
0x15ec   :  { %v1788_v34 = vpop.permute.xlu1 %1787 }
0x15ed   :  { %1793 = vst.msk [vmem:[#allocation13 + $0x1c] sm:$0xf] %vm861_vm2, %v1788_v34  ;;  %v1786_v49 = vpop.permute.xlu0 %1785 }
0x15ee   :  { %1792 = vst.msk [vmem:[#allocation13 + $0x18] sm:$0xf] %vm861_vm2, %v1786_v49 }
0x15f0   :  { %v1803_v28 = vpop.permute.xlu1 %1802 }
0x15f1   :  { %1808 = vst.msk [vmem:[#allocation14 + $0x24] sm:$0xf] %vm861_vm2, %v1803_v28  ;;  %v1801_v44 = vpop.permute.xlu0 %1800 }
0x15f2   :  { %1807 = vst.msk [vmem:[#allocation14 + $0x20] sm:$0xf] %vm861_vm2, %v1801_v44 }
0x15f4   :  { %v2098_v37 = vpop.permute.xlu1 %2097 }
0x15f5   :  { %2103 = vst.msk [vmem:[#allocation13 + $0x24] sm:$0xf] %vm861_vm2, %v2098_v37  ;;  %v2096_v41 = vpop.permute.xlu0 %2095 }
0x15f6   :  { %2102 = vst.msk [vmem:[#allocation13 + $0x20] sm:$0xf] %vm861_vm2, %v2096_v41 }
0x15f8   :  { %v2113_v32 = vpop.permute.xlu1 %2112 }
0x15f9   :  { %2118 = vst.msk [vmem:[#allocation14 + $0x1c] sm:$0xf] %vm861_vm2, %v2113_v32  ;;  %v2111_v36 = vpop.permute.xlu0 %2110 }
0x15fa   :  { %2117 = vst.msk [vmem:[#allocation14 + $0x18] sm:$0xf] %vm861_vm2, %v2111_v36 }
0x15fc   :  { %v2408_v2 = vpop.permute.xlu1 %2407 }
0x15fd   :  { %2413 = vst.msk [vmem:[#allocation13 + $0x2c] sm:$0xf] %vm861_vm2, %v2408_v2  ;;  %v2406_v61 = vpop.permute.xlu0 %2405 }
0x15fe   :  { %2412 = vst.msk [vmem:[#allocation13 + $0x28] sm:$0xf] %vm861_vm2, %v2406_v61 }
0x1600   :  { %v2423_v23 = vpop.permute.xlu1 %2422 }
0x1601   :  { %2428 = vst.msk [vmem:[#allocation14 + $0x14] sm:$0xf] %vm861_vm2, %v2423_v23  ;;  %v2421_v10 = vpop.permute.xlu0 %2420 }
0x1602   :  { %2427 = vst.msk [vmem:[#allocation14 + $0x10] sm:$0xf] %vm861_vm2, %v2421_v10 }
0x1604   :  { %v2718_v27 = vpop.permute.xlu1 %2717 }
0x1605   :  { %2723 = vst.msk [vmem:[#allocation13 + $0x34] sm:$0xf] %vm861_vm2, %v2718_v27  ;;  %v2716_v20 = vpop.permute.xlu0 %2715 }
0x1606   :  { %2722 = vst.msk [vmem:[#allocation13 + $0x30] sm:$0xf] %vm861_vm2, %v2716_v20 }
0x1608   :  { %v2733_v53 = vpop.permute.xlu1 %2732 }
0x1609   :  { %2738 = vst.msk [vmem:[#allocation14 + $0xc] sm:$0xf] %vm861_vm2, %v2733_v53  ;;  %v2731_v35 = vpop.permute.xlu0 %2730 }
0x160a   :  { %2737 = vst.msk [vmem:[#allocation14 + $0x8] sm:$0xf] %vm861_vm2, %v2731_v35 }
0x1647   :  { %v3052_v57 = vpop.permute.xlu1 %3051 }
0x1648   :  { %3056 = vst.msk [vmem:[#allocation4 + $0x8] sm:$0xff] %vm96_vm0, %v3052_v57  ;;  %v3050_v51 = vpop.permute.xlu0 %3049 }
0x1649   :  { %3055 = vst.msk [vmem:[#allocation4] sm:$0xff] %vm96_vm0, %v3050_v51 }
0x164b   :  { %v3027_v30 = vpop.permute.xlu1 %3026 }
0x164c   :  { %3032 = vst.msk [vmem:[#allocation13 + $0x3c] sm:$0xf] %vm861_vm2, %v3027_v30  ;;  %v3025_v14 = vpop.permute.xlu0 %3024 }
0x164d   :  { %3031 = vst.msk [vmem:[#allocation13 + $0x38] sm:$0xf] %vm861_vm2, %v3025_v14 }
0x164e   :  { %4067 = shalt.err (!%p4064_p8)
}
0x164f   :  { %s4068_s24 = scalar_lea.hbm %s4920_s6, 1024 }
0x1650   :  { %p4069_p9 = scmp.ne.s32.totalorder %s4920_s6, %s4068_s24  ;;  %p4072_p10 = scmp.lt.u32.totalorder %s4068_s24, %s4920_s6 }
0x1652   :  { %p4074_p11 = pnand %p4072_p10, %p4069_p9 }
0x1654   :  { %4077 = shalt.err (!%p4074_p11)
}
0x1655   :  { %3078 = dma.vmem_to_hbm [thread:$0]  %s3073_s18, 1024, %s4920_s6, [#allocation7], %s4112_s13, %s4112_s13, %s4113_s14   ;;  %v3042_v40 = vpop.permute.xlu1 %3041  ;;  %v3040_v26 = vpop.permute.xlu0 %3039 }
0x1656   :  { %3046 = vst.msk [vmem:[#allocation14 + $0x4] sm:$0xf] %vm861_vm2, %v3042_v40  ;;  %3045 = vst.msk [vmem:[#allocation14] sm:$0xf] %vm861_vm2, %v3040_v26  ;;  %s4078_s29 = scalar_lea.vmem %s3090_s20, 1024  ;;  %p4083_p13 = scmp.lt.s32.totalorder %s3090_s20, %s3090_s20 }
0x1657   :  { %p4079_p12 = scmp.ne.s32.totalorder %s3090_s20, %s4078_s29  ;;  %p4084_p0 = scmp.lt.s32.totalorder %s4078_s29, %s4078_s29 }
0x1659   :  { %p4085_p1 = por %p4084_p0, %p4083_p13 }
0x165b   :  { %p4086_p2 = pnand %p4085_p1, %p4079_p12 }
0x165d   :  { %4089 = shalt.err (!%p4086_p2)
}
0x165e   :  { %s4090_s3 = scalar_lea.hbm %s4921_s7, 1024 }
0x165f   :  { %p4091_p3 = scmp.ne.s32.totalorder %s4921_s7, %s4090_s3  ;;  %p4094_p4 = scmp.lt.u32.totalorder %s4090_s3, %s4921_s7 }
0x1661   :  { %p4096_p5 = pnand %p4094_p4, %p4091_p3 }
0x1663   :  { %4099 = shalt.err (!%p4096_p5)
}
0x1664   :  { %3095 = dma.vmem_to_hbm [thread:$0]  %s3090_s20, 1024, %s4921_s7, [#allocation15], %s4112_s13, %s4112_s13, %s4113_s14   ;;  %v3062_v6 = vpop.permute.xlu1 %3061  ;;  %v3060_v59 = vpop.permute.xlu0 %3059 }
0x1665   :  { %3066 = vst.msk [vmem:[#allocation4 + $0x18] sm:$0xff] %vm96_vm0, %v3062_v6  ;;  %3065 = vst.msk [vmem:[#allocation4 + $0x10] sm:$0xff] %vm96_vm0, %v3060_v59 }
0x1666   :  { %4106 = dma.done.wait [#allocation7], 1024  }
0x1667   :  { %4107 = vsyncadd [#allocation7], 4294966272 }
0x1668   :  { %4108 = dma.done.wait [#allocation15], 1024  }
0x1669   :  { %4109 = vsyncadd [#allocation15], 4294966272 }
0x166a   :  { %3102 = vsyncpa [#allocation6], 1 }
0x166b   :  { %3103 = vsyncpa [#allocation9], 1 }
0x166c   :  { %3104 = vsyncpa [#allocation12], 1 }
0x166d   :  { %3105 = vsyncpa [#allocation7], 1 }
0x166e   :  { %3106 = vsyncpa [#allocation15], 1 }

</bundles_post_ra>
